<compile_context>
chip_gen: v5e
topology: v5e:2x2
jax: 0.10.0
libtpu: 0.0.40
codegen_flags: <defaults>
</compile_context>

<pallas_src>
import functools

import jax
import jax.numpy as jnp
from jax.experimental import pallas as pl
from jax.experimental.pallas import tpu as pltpu


ROW_TILE_EDGE = 256    # edge kernels: bounds K*tm f32 temporaries (K ~ 20)
ROW_TILE_POINT = 1024  # pointwise kernels (conv6 / head): weights stay resident
PDIST_TILE = 128       # (tile, N) f32 distance block fits v5e scoped VMEM @ N=4096


def _pick_tile(n, target):
    """Largest tile <= target that divides n and is a multiple of 8
    (falls back to the full dimension, which is always layout-legal)."""
    if n <= target:
        return n
    t = target - (target % 8)
    while t >= 8:
        if n % t == 0:
            return t
        t -= 8
    return n


def _lrelu(y):
    return jnp.where(y > 0, y, 0.2 * y)


# ----------------------------- Pallas kernels -----------------------------

def _neg_pdist_kernel(xi_ref, xa_ref, sqa_ref, o_ref):
    # xi: (1, tn, C) bf16 row tile; xa: (1, N, C) bf16 all points of this batch;
    # sqa: (1, 1, N) f32 precomputed squared norms of all points.
    xi = xi_ref[0]
    xa = xa_ref[0]
    inner = jax.lax.dot_general(xi, xa, (((1,), (1,)), ((), ())),
                                preferred_element_type=jnp.float32)   # (tn, N)
    xif = xi.astype(jnp.float32)
    sq_i = jnp.sum(xif * xif, axis=-1, keepdims=True)                 # (tn, 1)
    o_ref[0] = 2.0 * inner - sq_i - sqa_ref[0]


def _edge_conv2_kernel(nbr_ref, ctr_ref, wn_ref, wd_ref, ba_ref,
                       wb_ref, bb_ref, o_ref):
    # Fused conv_a(cat(nbr-ctr, ctr)) + BN + LReLU -> conv_b + BN + LReLU ->
    # max over k.  BN scale is pre-folded into wn/wd/wb; the identity
    # (nbr-ctr)@Wt + ctr@Wb == nbr@Wt + ctr@(Wb-Wt) removes the per-neighbor
    # subtraction; neighbors are processed as one stacked (K*tm, C) matmul.
    K, tm, C = nbr_ref.shape
    mid = wn_ref.shape[1]
    cout = wb_ref.shape[1]
    cb = jnp.dot(ctr_ref[...], wd_ref[...],
                 preferred_element_type=jnp.float32) + ba_ref[...]     # (tm, mid)
    nbr2d = nbr_ref[...].reshape(K * tm, C)
    y = jnp.dot(nbr2d, wn_ref[...], preferred_element_type=jnp.float32)
    y = _lrelu(y.reshape(K, tm, mid) + cb)
    z = jnp.dot(y.reshape(K * tm, mid).astype(jnp.bfloat16), wb_ref[...],
                preferred_element_type=jnp.float32)
    z = _lrelu(z.reshape(K, tm, cout) + bb_ref[...])
    o_ref[...] = jnp.max(z, axis=0).astype(o_ref.dtype)


def _edge_conv1_kernel(nbr_ref, ctr_ref, wn_ref, wd_ref, ba_ref, o_ref):
    # Fused conv(cat(nbr-ctr, ctr)) + BN + LReLU -> max over k neighbours.
    K, tm, C = nbr_ref.shape
    cout = wn_ref.shape[1]
    cb = jnp.dot(ctr_ref[...], wd_ref[...],
                 preferred_element_type=jnp.float32) + ba_ref[...]
    nbr2d = nbr_ref[...].reshape(K * tm, C)
    y = jnp.dot(nbr2d, wn_ref[...], preferred_element_type=jnp.float32)
    y = _lrelu(y.reshape(K, tm, cout) + cb)
    o_ref[...] = jnp.max(y, axis=0).astype(o_ref.dtype)


def _conv6_globalmax_kernel(x_ref, w_ref, b_ref, o_ref):
    # conv6 on the pre-concatenated (tn, 192) block (single 192-deep matmul,
    # BN scale folded into w) + global max over points, carried in the
    # revisited (1, 1, emb) output block across the "arbitrary" grid axis.
    @pl.when(pl.program_id(2) == 0)
    def _():
        o_ref[...] = jnp.full(o_ref.shape, -jnp.inf, o_ref.dtype)

    y = jnp.dot(x_ref[0], w_ref[...], preferred_element_type=jnp.float32)
    y = _lrelu(y + b_ref[...])
    o_ref[0] = jnp.maximum(o_ref[0], jnp.max(y, axis=0, keepdims=True))


def _head_kernel(yg_ref, x_ref, w7_ref, w8_ref, b8_ref, w9_ref, o_ref):
    # conv7 (1216->512): the global-feature part (glob @ w7g + shift) is
    # precomputed in the wrapper and streamed as the tiny (1, 1, 512) yg block;
    # the point part is ONE 192-deep matmul on the concatenated x1|x2|x3 block.
    y = (jnp.dot(x_ref[0], w7_ref[...], preferred_element_type=jnp.float32)
         + yg_ref[0])
    y = _lrelu(y)
    # conv8 (512->256)
    y = jnp.dot(y.astype(jnp.bfloat16), w8_ref[...],
                preferred_element_type=jnp.float32)
    y = _lrelu(y + b8_ref[...])
    # TODO(synk): dp1 dropout is identity here (eval mode); training mode would
    # use pltpu.prng_seed / pltpu.prng_random_bits.
    # conv9 (256->13, zero-padded to 128 lanes for dense stores)
    o_ref[0] = jnp.dot(y.astype(jnp.bfloat16), w9_ref[...],
                       preferred_element_type=jnp.float32)


# ----------------------------- kernel wrappers -----------------------------

def neg_pairwise_dist(x_bnc, sq_b1n):
    B, N, C = x_bnc.shape
    tn = _pick_tile(N, PDIST_TILE)
    return pl.pallas_call(
        _neg_pdist_kernel,
        grid=(B, N // tn),
        in_specs=[pl.BlockSpec((1, tn, C), lambda b, i: (b, i, 0)),
                  pl.BlockSpec((1, N, C), lambda b, i: (b, 0, 0)),
                  pl.BlockSpec((1, 1, N), lambda b, i: (b, 0, 0))],
        out_specs=pl.BlockSpec((1, tn, N), lambda b, i: (b, i, 0)),
        out_shape=jax.ShapeDtypeStruct((B, N, N), jnp.float32),
        compiler_params=pltpu.CompilerParams(
            dimension_semantics=("parallel", "parallel")),
    )(x_bnc, x_bnc, sq_b1n)


def edge_conv2(nbr, ctr, wn, wd, ba, wb, bb):
    K, M, C = nbr.shape
    mid = wn.shape[1]
    cout = wb.shape[1]
    tm = _pick_tile(M, ROW_TILE_EDGE)
    wspec = lambda shp: pl.BlockSpec(shp, lambda i: (0, 0))
    # TODO(synk): if xprof shows exposed DMA on the nbr stream, add
    # pipeline_mode=pl.Buffered(3) on the (K, tm, C) block.
    return pl.pallas_call(
        _edge_conv2_kernel,
        grid=(M // tm,),
        in_specs=[pl.BlockSpec((K, tm, C), lambda i: (0, i, 0)),
                  pl.BlockSpec((tm, C), lambda i: (i, 0)),
                  wspec((C, mid)), wspec((C, mid)), wspec((1, mid)),
                  wspec((mid, cout)), wspec((1, cout))],
        out_specs=pl.BlockSpec((tm, cout), lambda i: (i, 0)),
        out_shape=jax.ShapeDtypeStruct((M, cout), jnp.bfloat16),
        compiler_params=pltpu.CompilerParams(
            dimension_semantics=("parallel",)),
    )(nbr, ctr, wn, wd, ba, wb, bb)


def edge_conv1(nbr, ctr, wn, wd, ba):
    K, M, C = nbr.shape
    cout = wn.shape[1]
    tm = _pick_tile(M, ROW_TILE_EDGE)
    wspec = lambda shp: pl.BlockSpec(shp, lambda i: (0, 0))
    return pl.pallas_call(
        _edge_conv1_kernel,
        grid=(M // tm,),
        in_specs=[pl.BlockSpec((K, tm, C), lambda i: (0, i, 0)),
                  pl.BlockSpec((tm, C), lambda i: (i, 0)),
                  wspec((C, cout)), wspec((C, cout)), wspec((1, cout))],
        out_specs=pl.BlockSpec((tm, cout), lambda i: (i, 0)),
        out_shape=jax.ShapeDtypeStruct((M, cout), jnp.bfloat16),
        compiler_params=pltpu.CompilerParams(
            dimension_semantics=("parallel",)),
    )(nbr, ctr, wn, wd, ba)


def conv6_globalmax(x123, w6s, b6):
    B, N, C = x123.shape
    emb = w6s.shape[1]
    tn = _pick_tile(N, ROW_TILE_POINT)
    steps = N // tn
    # Split the point axis into 2 megacore-parallel chunks when possible so
    # small-batch (B=1,2) runs still occupy both TensorCores on v7x; partial
    # per-chunk maxes are combined with a tiny max in the wrapper.
    n_chunks = 2 if steps % 2 == 0 else 1
    steps //= n_chunks
    wspec = lambda shp: pl.BlockSpec(shp, lambda b, c, i: (0, 0))
    out = pl.pallas_call(
        _conv6_globalmax_kernel,
        grid=(B, n_chunks, steps),
        in_specs=[pl.BlockSpec((1, tn, C), lambda b, c, i: (b, c * steps + i, 0)),
                  wspec((C, emb)), wspec((1, emb))],
        out_specs=pl.BlockSpec((1, 1, emb), lambda b, c, i: (b, c, 0)),
        out_shape=jax.ShapeDtypeStruct((B, n_chunks, emb), jnp.float32),
        compiler_params=pltpu.CompilerParams(
            dimension_semantics=("parallel", "parallel", "arbitrary")),
    )(x123, w6s, b6)
    return jnp.max(out, axis=1, keepdims=True)                # (B, 1, emb)


def head_conv789(yg, x123, w7p, w8, b8, w9p):
    B, N, C = x123.shape
    h7 = w7p.shape[1]
    h8 = w8.shape[1]
    co = w9p.shape[1]
    tn = _pick_tile(N, ROW_TILE_POINT)
    wspec = lambda shp: pl.BlockSpec(shp, lambda b, i: (0, 0))
    return pl.pallas_call(
        _head_kernel,
        grid=(B, N // tn),
        in_specs=[pl.BlockSpec((1, 1, h7), lambda b, i: (b, 0, 0)),
                  pl.BlockSpec((1, tn, C), lambda b, i: (b, i, 0)),
                  wspec((C, h7)), wspec((h7, h8)), wspec((1, h8)),
                  wspec((h8, co))],
        out_specs=pl.BlockSpec((1, tn, co), lambda b, i: (b, i, 0)),
        out_shape=jax.ShapeDtypeStruct((B, N, co), jnp.float32),
        compiler_params=pltpu.CompilerParams(
            dimension_semantics=("parallel", "parallel")),
    )(yg, x123, w7p, w8, b8, w9p)


# ----------------------------- graph feature glue -----------------------------

def knn_idx(x_bnc, k):
    B, N, C = x_bnc.shape
    if C == 0:
        # knn on an empty channel slice (dim9 with a 6-channel input): all
        # pairwise distances are 0; tie-break to the lowest indices (iota).
        return jnp.broadcast_to(jnp.arange(k, dtype=jnp.int32), (B, N, k))
    xf = x_bnc.astype(jnp.float32)
    sq = jnp.sum(xf * xf, axis=-1).reshape(B, 1, N)           # norms computed once
    neg = neg_pairwise_dist(x_bnc, sq)                        # (B, N, N) f32, tiled
    # TODO(synk): fuse the top-k selection into the distance kernel (running
    # per-row-tile top-k in VMEM scratch across an "arbitrary" column axis) so
    # the (B,N,N) f32 matrix never hits HBM.
    return jax.lax.top_k(neg, k)[1]                           # (B, N, k)


def gather_neighbors(x_bnc, idx):
    # TODO(synk): the neighbour gather still materializes (k, B*N, C) in HBM;
    # fusing it into the edge kernel would need a scalar-prefetch DMA gather.
    B, N, C = x_bnc.shape
    k = idx.shape[-1]
    idx_t = jnp.transpose(idx, (2, 0, 1))                     # (k, B, N)
    nbr = x_bnc[jnp.arange(B)[None, :, None], idx_t]          # (k, B, N, C)
    return nbr.reshape(k, B * N, C), x_bnc.reshape(B * N, C)


# ----------------------------- forward pass -----------------------------

def _prepare_params(params, c_in):
    def scale_cols(w, s):
        return (w.astype(jnp.float32) * s).astype(jnp.bfloat16)

    def edge_split(w, c, bn):
        # Returns (Wt*s, (Wb-Wt)*s, shift) for the identity
        # ((nbr-ctr)@Wt + ctr@Wb)*s == nbr@(Wt*s) + ctr@((Wb-Wt)*s).
        s, b = bn
        wt = w[:c].astype(jnp.float32)
        wb = w[c:].astype(jnp.float32)
        return ((wt * s).astype(jnp.bfloat16),
                ((wb - wt) * s).astype(jnp.bfloat16),
                b)

    p = {}
    p['wn1'], p['wd1'], p['b1'] = edge_split(params['w1'], c_in, params['bn1'])
    p['w2s'] = scale_cols(params['w2'], params['bn2'][0]); p['b2'] = params['bn2'][1]
    p['wn3'], p['wd3'], p['b3'] = edge_split(params['w3'], 64, params['bn3'])
    p['w4s'] = scale_cols(params['w4'], params['bn4'][0]); p['b4'] = params['bn4'][1]
    p['wn5'], p['wd5'], p['b5'] = edge_split(params['w5'], 64, params['bn5'])
    p['w6s'] = scale_cols(params['w6'], params['bn6'][0]); p['b6'] = params['bn6'][1]
    emb = params['w7'].shape[0] - 192
    p['w7gs'] = scale_cols(params['w7'][:emb], params['bn7'][0])
    p['w7ps'] = scale_cols(params['w7'][emb:], params['bn7'][0])
    p['b7'] = params['bn7'][1]
    p['w8s'] = scale_cols(params['w8'], params['bn8'][0]); p['b8'] = params['bn8'][1]
    w9 = params['w9']
    p['w9p'] = jnp.pad(w9, ((0, 0), (0, 128 - w9.shape[1])))  # 13 -> 128 lanes
    return p


def dgcnn_semseg_forward(x, params, k):
    # x: (B, 6, N) in PyTorch NCW layout
    xyzn = x
    B, C, N = x.shape
    p = _prepare_params(params, C)

    xp = jnp.transpose(x, (0, 2, 1)).astype(jnp.bfloat16)     # (B, N, 6)

    # EdgeConv block 1: knn on x[:, 6:] (dim9); conv1 -> conv2 -> max over k
    idx = knn_idx(xp[..., 6:], k)
    nbr, ctr = gather_neighbors(xp, idx)
    x1 = edge_conv2(nbr, ctr, p['wn1'], p['wd1'], p['b1'],
                    p['w2s'], p['b2'])                        # (M, 64) bf16
    x1_bnc = x1.reshape(B, N, 64)

    # EdgeConv block 2: conv3 -> conv4 -> max over k
    idx = knn_idx(x1_bnc, k)
    nbr, ctr = gather_neighbors(x1_bnc, idx)
    x2 = edge_conv2(nbr, ctr, p['wn3'], p['wd3'], p['b3'],
                    p['w4s'], p['b4'])
    x2_bnc = x2.reshape(B, N, 64)

    # EdgeConv block 3: conv5 -> max over k
    idx = knn_idx(x2_bnc, k)
    nbr, ctr = gather_neighbors(x2_bnc, idx)
    x3 = edge_conv1(nbr, ctr, p['wn5'], p['wd5'], p['b5'])
    x3_bnc = x3.reshape(B, N, 64)

    # Single concat so conv6 / conv7 use 192-deep contractions.
    x123 = jnp.concatenate([x1_bnc, x2_bnc, x3_bnc], axis=-1)  # (B, N, 192) bf16

    # conv6 + global max over points (fused, max carried across the N grid axis)
    glob = conv6_globalmax(x123, p['w6s'], p['b6'])            # (B, 1, emb) f32

    # Hoisted global-feature part of conv7: (B,1,emb) @ (emb,512) + shift.
    yg = jax.lax.dot_general(glob.astype(jnp.bfloat16), p['w7gs'],
                             (((2,), (0,)), ((), ())),
                             preferred_element_type=jnp.float32) + p['b7']

    # conv7 -> conv8 -> (dropout=identity) -> conv9, fused per row tile
    out = head_conv789(yg, x123, p['w7ps'], p['w8s'], p['b8'], p['w9p'])
    f_out = out[..., :13]                                      # (B, N, 13)

    to_bcn = lambda a: jnp.transpose(a, (0, 2, 1))
    f_t = to_bcn(f_out)
    x1_t = to_bcn(x1_bnc.astype(jnp.float32))
    x2_t = to_bcn(x2_bnc.astype(jnp.float32))
    x3_t = to_bcn(x3_bnc.astype(jnp.float32))
    logits = [f_t]
    activations = [x1_t, x2_t, x3_t, f_t]
    return f_t, logits, activations, xyzn


# ----------------------------- parameter init -----------------------------

def init_params(key, emb_dims=1024):
    def conv_w(kk, cin, cout):
        w = jax.random.normal(kk, (cin, cout), jnp.float32) / jnp.sqrt(float(cin))
        return w.astype(jnp.bfloat16)                         # MXU-native

    def bn(kk, c):
        k1, k2, k3, k4 = jax.random.split(kk, 4)
        gamma = 1.0 + 0.1 * jax.random.normal(k1, (c,))
        beta = 0.1 * jax.random.normal(k2, (c,))
        mean = 0.1 * jax.random.normal(k3, (c,))
        var = 1.0 + 0.1 * jnp.abs(jax.random.normal(k4, (c,)))
        scale = gamma * jax.lax.rsqrt(var + 1e-5)
        shift = beta - mean * scale
        return (scale.reshape(1, c).astype(jnp.float32),      # BN math stays f32
                shift.reshape(1, c).astype(jnp.float32))

    keys = jax.random.split(key, 18)
    p = {}
    p['w1'] = conv_w(keys[0], 12, 64);               p['bn1'] = bn(keys[1], 64)
    p['w2'] = conv_w(keys[2], 64, 64);               p['bn2'] = bn(keys[3], 64)
    p['w3'] = conv_w(keys[4], 128, 64);              p['bn3'] = bn(keys[5], 64)
    p['w4'] = conv_w(keys[6], 64, 64);               p['bn4'] = bn(keys[7], 64)
    p['w5'] = conv_w(keys[8], 128, 64);              p['bn5'] = bn(keys[9], 64)
    p['w6'] = conv_w(keys[10], 192, emb_dims);       p['bn6'] = bn(keys[11], emb_dims)
    p['w7'] = conv_w(keys[12], emb_dims + 192, 512); p['bn7'] = bn(keys[13], 512)
    p['w8'] = conv_w(keys[14], 512, 256);            p['bn8'] = bn(keys[15], 256)
    p['w9'] = conv_w(keys[16], 256, 13)
    return p


# ----------------------------- main -----------------------------

if __name__ == "__main__":
    B, C, N, K_NN = 2, 6, 16, 4      # small shapes; conv1(12,...) forces C=6
    EMB = 1024                       # conv7 in_channels = 1216 = 1024 + 192

    key = jax.random.PRNGKey(0)
    kx, kp = jax.random.split(key)
    x = jax.random.normal(kx, (B, C, N), jnp.float32)
    params = init_params(kp, emb_dims=EMB)

    fwd = jax.jit(functools.partial(dgcnn_semseg_forward, k=K_NN))
    out, logits, activations, xyzn = fwd(x, params)
    jax.block_until_ready(out)

    assert out.shape == (B, 13, N)
    assert logits[0].shape == (B, 13, N)
    assert activations[0].shape == (B, 64, N)
    assert activations[1].shape == (B, 64, N)
    assert activations[2].shape == (B, 64, N)
    assert activations[3].shape == (B, 13, N)
    assert xyzn.shape == (B, C, N)
    assert bool(jnp.all(jnp.isfinite(out)))
    print("KERNEL_OK")
</pallas_src>

<mosaic_0001>
module attributes {stable_mosaic.version = 11 : i64} {
  func.func @_neg_pdist_kernel(%arg0: i32, %arg1: i32, %arg2: memref<1x16x64xbf16, #tpu.memory_space<vmem>>, %arg3: memref<1x16x64xbf16, #tpu.memory_space<vmem>>, %arg4: memref<1x1x16xf32, #tpu.memory_space<vmem>>, %arg5: memref<1x16x16xf32, #tpu.memory_space<vmem>>) attributes {dimension_semantics = [#tpu.dimension_semantics<parallel>, #tpu.dimension_semantics<parallel>], iteration_bounds = array<i64: 2, 1>, scalar_prefetch = 0 : i64, scratch_operands = 0 : i64, tpu.core_type = #tpu.core_type<tc>, window_params = [{transform_indices = @transform_0, window_bounds = array<i64: 1, 16, 64>}, {transform_indices = @transform_1, window_bounds = array<i64: 1, 16, 64>}, {transform_indices = @transform_2, window_bounds = array<i64: 1, 1, 16>}, {transform_indices = @transform_3, window_bounds = array<i64: 1, 16, 16>}]} {
    %c0 = arith.constant 0 : index
    %c0_0 = arith.constant 0 : index
    %c0_1 = arith.constant 0 : index
    %0 = vector.load %arg2[%c0, %c0_0, %c0_1] : memref<1x16x64xbf16, #tpu.memory_space<vmem>>, vector<1x16x64xbf16>
    %1 = vector.shape_cast %0 : vector<1x16x64xbf16> to vector<16x64xbf16>
    %c0_2 = arith.constant 0 : index
    %c0_3 = arith.constant 0 : index
    %c0_4 = arith.constant 0 : index
    %2 = vector.load %arg3[%c0_2, %c0_3, %c0_4] : memref<1x16x64xbf16, #tpu.memory_space<vmem>>, vector<1x16x64xbf16>
    %3 = vector.shape_cast %2 : vector<1x16x64xbf16> to vector<16x64xbf16>
    %cst = arith.constant dense<0.000000e+00> : vector<16x16xf32>
    %4 = tpu.matmul %1, %3, %cst {dimension_numbers = #tpu.dot_dimension_numbers<[1], [1], [0], [0], [0, 0, 1, 0], [], []>} : vector<16x64xbf16>, vector<16x64xbf16>, vector<16x16xf32> -> vector<16x16xf32>
    %5 = arith.extf %1 : vector<16x64xbf16> to vector<16x64xf32>
    %6 = arith.mulf %5, %5 : vector<16x64xf32>
    %cst_5 = arith.constant dense<0.000000e+00> : vector<16xf32>
    %7 = vector.multi_reduction <add>, %6, %cst_5 [1] : vector<16x64xf32> to vector<16xf32>
    %8 = vector.shape_cast %7 : vector<16xf32> to vector<16x1xf32>
    %cst_6 = arith.constant 2.000000e+00 : f32
    %9 = vector.broadcast %cst_6 : f32 to vector<16x16xf32>
    %10 = arith.mulf %9, %4 : vector<16x16xf32>
    %11 = vector.broadcast %8 : vector<16x1xf32> to vector<16x16xf32>
    %12 = arith.subf %10, %11 : vector<16x16xf32>
    %c0_7 = arith.constant 0 : index
    %c0_8 = arith.constant 0 : index
    %c0_9 = arith.constant 0 : index
    %13 = vector.load %arg4[%c0_7, %c0_8, %c0_9] : memref<1x1x16xf32, #tpu.memory_space<vmem>>, vector<1x1x16xf32>
    %14 = vector.shape_cast %13 : vector<1x1x16xf32> to vector<1x16xf32>
    %15 = vector.broadcast %14 : vector<1x16xf32> to vector<16x16xf32>
    %16 = arith.subf %12, %15 : vector<16x16xf32>
    %c0_10 = arith.constant 0 : index
    %c0_11 = arith.constant 0 : index
    %c0_12 = arith.constant 0 : index
    %17 = vector.load %arg5[%c0_10, %c0_11, %c0_12] : memref<1x16x16xf32, #tpu.memory_space<vmem>>, vector<1x16x16xf32>
    %18 = vector.shape_cast %17 : vector<1x16x16xf32> to vector<16x16xf32>
    %19 = vector.shape_cast %16 : vector<16x16xf32> to vector<1x16x16xf32>
    tpu.vector_store %arg5[%c0_10, %c0_11, %c0_12], %19 {strides = array<i32>} : memref<1x16x16xf32, #tpu.memory_space<vmem>>, vector<1x16x16xf32>,
    return
  }
  func.func @transform_0(%arg0: i32, %arg1: i32) -> (i32, i32, i32) {
    %c0_i32 = arith.constant 0 : i32
    %c0_i32_0 = arith.constant 0 : i32
    return %arg0, %arg1, %c0_i32 : i32, i32, i32
  }
  func.func @transform_1(%arg0: i32, %arg1: i32) -> (i32, i32, i32) {
    %c0_i32 = arith.constant 0 : i32
    %c0_i32_0 = arith.constant 0 : i32
    %c0_i32_1 = arith.constant 0 : i32
    return %arg0, %c0_i32, %c0_i32_0 : i32, i32, i32
  }
  func.func @transform_2(%arg0: i32, %arg1: i32) -> (i32, i32, i32) {
    %c0_i32 = arith.constant 0 : i32
    %c0_i32_0 = arith.constant 0 : i32
    %c0_i32_1 = arith.constant 0 : i32
    return %arg0, %c0_i32, %c0_i32_0 : i32, i32, i32
  }
  func.func @transform_3(%arg0: i32, %arg1: i32) -> (i32, i32, i32) {
    %c0_i32 = arith.constant 0 : i32
    %c0_i32_0 = arith.constant 0 : i32
    return %arg0, %arg1, %c0_i32 : i32, i32, i32
  }
}

module attributes {stable_mosaic.version = 11 : i64} {
  func.func @_edge_conv2_kernel(%arg0: i32, %arg1: memref<4x32x6xbf16, #tpu.memory_space<vmem>>, %arg2: memref<32x6xbf16, #tpu.memory_space<vmem>>, %arg3: memref<6x64xbf16, #tpu.memory_space<vmem>>, %arg4: memref<6x64xbf16, #tpu.memory_space<vmem>>, %arg5: memref<1x64xf32, #tpu.memory_space<vmem>>, %arg6: memref<64x64xbf16, #tpu.memory_space<vmem>>, %arg7: memref<1x64xf32, #tpu.memory_space<vmem>>, %arg8: memref<32x64xbf16, #tpu.memory_space<vmem>>) attributes {dimension_semantics = [#tpu.dimension_semantics<parallel>], iteration_bounds = array<i64: 1>, scalar_prefetch = 0 : i64, scratch_operands = 0 : i64, tpu.core_type = #tpu.core_type<tc>, window_params = [{transform_indices = @transform_0, window_bounds = array<i64: 4, 32, 6>}, {transform_indices = @transform_1, window_bounds = array<i64: 32, 6>}, {pipeline_mode = #tpu.pipeline_mode<synchronous>, transform_indices = @transform_2, window_bounds = array<i64: 6, 64>}, {pipeline_mode = #tpu.pipeline_mode<synchronous>, transform_indices = @transform_3, window_bounds = array<i64: 6, 64>}, {pipeline_mode = #tpu.pipeline_mode<synchronous>, transform_indices = @transform_4, window_bounds = array<i64: 1, 64>}, {pipeline_mode = #tpu.pipeline_mode<synchronous>, transform_indices = @transform_5, window_bounds = array<i64: 64, 64>}, {pipeline_mode = #tpu.pipeline_mode<synchronous>, transform_indices = @transform_6, window_bounds = array<i64: 1, 64>}, {transform_indices = @transform_7, window_bounds = array<i64: 32, 64>}]} {
    %c0 = arith.constant 0 : index
    %c0_0 = arith.constant 0 : index
    %0 = vector.load %arg2[%c0, %c0_0] : memref<32x6xbf16, #tpu.memory_space<vmem>>, vector<32x6xbf16>
    %c0_1 = arith.constant 0 : index
    %c0_2 = arith.constant 0 : index
    %1 = vector.load %arg4[%c0_1, %c0_2] : memref<6x64xbf16, #tpu.memory_space<vmem>>, vector<6x64xbf16>
    %cst = arith.constant dense<0.000000e+00> : vector<32x64xf32>
    %2 = tpu.matmul %0, %1, %cst {dimension_numbers = #tpu.dot_dimension_numbers<[1], [0], [0], [1], [0, 0, 1, 1], [], []>} : vector<32x6xbf16>, vector<6x64xbf16>, vector<32x64xf32> -> vector<32x64xf32>
    %c0_3 = arith.constant 0 : index
    %c0_4 = arith.constant 0 : index
    %3 = vector.load %arg5[%c0_3, %c0_4] : memref<1x64xf32, #tpu.memory_space<vmem>>, vector<1x64xf32>
    %4 = vector.broadcast %3 : vector<1x64xf32> to vector<32x64xf32>
    %5 = arith.addf %2, %4 : vector<32x64xf32>
    %c0_5 = arith.constant 0 : index
    %c0_6 = arith.constant 0 : index
    %c0_7 = arith.constant 0 : index
    %6 = vector.load %arg1[%c0_5, %c0_6, %c0_7] : memref<4x32x6xbf16, #tpu.memory_space<vmem>>, vector<4x32x6xbf16>
    %7 = vector.shape_cast %6 : vector<4x32x6xbf16> to vector<128x6xbf16>
    %c0_8 = arith.constant 0 : index
    %c0_9 = arith.constant 0 : index
    %8 = vector.load %arg3[%c0_8, %c0_9] : memref<6x64xbf16, #tpu.memory_space<vmem>>, vector<6x64xbf16>
    %cst_10 = arith.constant dense<0.000000e+00> : vector<128x64xf32>
    %9 = tpu.matmul %7, %8, %cst_10 {dimension_numbers = #tpu.dot_dimension_numbers<[1], [0], [0], [1], [0, 0, 1, 1], [], []>} : vector<128x6xbf16>, vector<6x64xbf16>, vector<128x64xf32> -> vector<128x64xf32>
    %10 = vector.shape_cast %9 : vector<128x64xf32> to vector<4x32x64xf32>
    %11 = vector.shape_cast %5 : vector<32x64xf32> to vector<1x32x64xf32>
    %12 = vector.broadcast %11 : vector<1x32x64xf32> to vector<4x32x64xf32>
    %13 = arith.addf %10, %12 : vector<4x32x64xf32>
    %cst_11 = arith.constant 0.000000e+00 : f32
    %14 = vector.broadcast %cst_11 : f32 to vector<4x32x64xf32>
    %15 = arith.cmpf ogt, %13, %14 : vector<4x32x64xf32>
    %cst_12 = arith.constant 2.000000e-01 : f32
    %16 = vector.broadcast %cst_12 : f32 to vector<4x32x64xf32>
    %17 = arith.mulf %16, %13 : vector<4x32x64xf32>
    %18 = arith.select %15, %13, %17 : vector<4x32x64xi1>, vector<4x32x64xf32>
    %19 = vector.shape_cast %18 : vector<4x32x64xf32> to vector<128x64xf32>
    %20 = arith.truncf %19 : vector<128x64xf32> to vector<128x64xbf16>
    %c0_13 = arith.constant 0 : index
    %c0_14 = arith.constant 0 : index
    %21 = vector.load %arg6[%c0_13, %c0_14] : memref<64x64xbf16, #tpu.memory_space<vmem>>, vector<64x64xbf16>
    %cst_15 = arith.constant dense<0.000000e+00> : vector<128x64xf32>
    %22 = tpu.matmul %20, %21, %cst_15 {dimension_numbers = #tpu.dot_dimension_numbers<[1], [0], [0], [1], [0, 0, 1, 1], [], []>} : vector<128x64xbf16>, vector<64x64xbf16>, vector<128x64xf32> -> vector<128x64xf32>
    %23 = vector.shape_cast %22 : vector<128x64xf32> to vector<4x32x64xf32>
    %c0_16 = arith.constant 0 : index
    %c0_17 = arith.constant 0 : index
    %24 = vector.load %arg7[%c0_16, %c0_17] : memref<1x64xf32, #tpu.memory_space<vmem>>, vector<1x64xf32>
    %25 = vector.shape_cast %24 : vector<1x64xf32> to vector<1x1x64xf32>
    %26 = vector.broadcast %25 : vector<1x1x64xf32> to vector<4x32x64xf32>
    %27 = arith.addf %23, %26 : vector<4x32x64xf32>
    %cst_18 = arith.constant 0.000000e+00 : f32
    %28 = vector.broadcast %cst_18 : f32 to vector<4x32x64xf32>
    %29 = arith.cmpf ogt, %27, %28 : vector<4x32x64xf32>
    %cst_19 = arith.constant 2.000000e-01 : f32
    %30 = vector.broadcast %cst_19 : f32 to vector<4x32x64xf32>
    %31 = arith.mulf %30, %27 : vector<4x32x64xf32>
    %32 = arith.select %29, %27, %31 : vector<4x32x64xi1>, vector<4x32x64xf32>
    %cst_20 = arith.constant dense<0xFF800000> : vector<32x64xf32>
    %33 = vector.multi_reduction <maximumf>, %32, %cst_20 [0] : vector<4x32x64xf32> to vector<32x64xf32>
    %34 = arith.truncf %33 : vector<32x64xf32> to vector<32x64xbf16>
    %c0_21 = arith.constant 0 : index
    %c0_22 = arith.constant 0 : index
    %35 = vector.load %arg8[%c0_21, %c0_22] : memref<32x64xbf16, #tpu.memory_space<vmem>>, vector<32x64xbf16>
    tpu.vector_store %arg8[%c0_21, %c0_22], %34 {strides = array<i32>} : memref<32x64xbf16, #tpu.memory_space<vmem>>, vector<32x64xbf16>,
    return
  }
  func.func @transform_0(%arg0: i32) -> (i32, i32, i32) {
    %c0_i32 = arith.constant 0 : i32
    %c0_i32_0 = arith.constant 0 : i32
    %c0_i32_1 = arith.constant 0 : i32
    return %c0_i32, %arg0, %c0_i32_0 : i32, i32, i32
  }
  func.func @transform_1(%arg0: i32) -> (i32, i32) {
    %c0_i32 = arith.constant 0 : i32
    %c0_i32_0 = arith.constant 0 : i32
    return %arg0, %c0_i32 : i32, i32
  }
  func.func @transform_2(%arg0: i32) -> (i32, i32) {
    %c0_i32 = arith.constant 0 : i32
    %c0_i32_0 = arith.constant 0 : i32
    %c0_i32_1 = arith.constant 0 : i32
    return %c0_i32, %c0_i32_0 : i32, i32
  }
  func.func @transform_3(%arg0: i32) -> (i32, i32) {
    %c0_i32 = arith.constant 0 : i32
    %c0_i32_0 = arith.constant 0 : i32
    %c0_i32_1 = arith.constant 0 : i32
    return %c0_i32, %c0_i32_0 : i32, i32
  }
  func.func @transform_4(%arg0: i32) -> (i32, i32) {
    %c0_i32 = arith.constant 0 : i32
    %c0_i32_0 = arith.constant 0 : i32
    %c0_i32_1 = arith.constant 0 : i32
    return %c0_i32, %c0_i32_0 : i32, i32
  }
  func.func @transform_5(%arg0: i32) -> (i32, i32) {
    %c0_i32 = arith.constant 0 : i32
    %c0_i32_0 = arith.constant 0 : i32
    %c0_i32_1 = arith.constant 0 : i32
    return %c0_i32, %c0_i32_0 : i32, i32
  }
  func.func @transform_6(%arg0: i32) -> (i32, i32) {
    %c0_i32 = arith.constant 0 : i32
    %c0_i32_0 = arith.constant 0 : i32
    %c0_i32_1 = arith.constant 0 : i32
    return %c0_i32, %c0_i32_0 : i32, i32
  }
  func.func @transform_7(%arg0: i32) -> (i32, i32) {
    %c0_i32 = arith.constant 0 : i32
    %c0_i32_0 = arith.constant 0 : i32
    return %arg0, %c0_i32 : i32, i32
  }
}

module attributes {stable_mosaic.version = 11 : i64} {
  func.func @_edge_conv2_kernel(%arg0: i32, %arg1: memref<4x32x64xbf16, #tpu.memory_space<vmem>>, %arg2: memref<32x64xbf16, #tpu.memory_space<vmem>>, %arg3: memref<64x64xbf16, #tpu.memory_space<vmem>>, %arg4: memref<64x64xbf16, #tpu.memory_space<vmem>>, %arg5: memref<1x64xf32, #tpu.memory_space<vmem>>, %arg6: memref<64x64xbf16, #tpu.memory_space<vmem>>, %arg7: memref<1x64xf32, #tpu.memory_space<vmem>>, %arg8: memref<32x64xbf16, #tpu.memory_space<vmem>>) attributes {dimension_semantics = [#tpu.dimension_semantics<parallel>], iteration_bounds = array<i64: 1>, scalar_prefetch = 0 : i64, scratch_operands = 0 : i64, tpu.core_type = #tpu.core_type<tc>, window_params = [{transform_indices = @transform_0, window_bounds = array<i64: 4, 32, 64>}, {transform_indices = @transform_1, window_bounds = array<i64: 32, 64>}, {pipeline_mode = #tpu.pipeline_mode<synchronous>, transform_indices = @transform_2, window_bounds = array<i64: 64, 64>}, {pipeline_mode = #tpu.pipeline_mode<synchronous>, transform_indices = @transform_3, window_bounds = array<i64: 64, 64>}, {pipeline_mode = #tpu.pipeline_mode<synchronous>, transform_indices = @transform_4, window_bounds = array<i64: 1, 64>}, {pipeline_mode = #tpu.pipeline_mode<synchronous>, transform_indices = @transform_5, window_bounds = array<i64: 64, 64>}, {pipeline_mode = #tpu.pipeline_mode<synchronous>, transform_indices = @transform_6, window_bounds = array<i64: 1, 64>}, {transform_indices = @transform_7, window_bounds = array<i64: 32, 64>}]} {
    %c0 = arith.constant 0 : index
    %c0_0 = arith.constant 0 : index
    %0 = vector.load %arg2[%c0, %c0_0] : memref<32x64xbf16, #tpu.memory_space<vmem>>, vector<32x64xbf16>
    %c0_1 = arith.constant 0 : index
    %c0_2 = arith.constant 0 : index
    %1 = vector.load %arg4[%c0_1, %c0_2] : memref<64x64xbf16, #tpu.memory_space<vmem>>, vector<64x64xbf16>
    %cst = arith.constant dense<0.000000e+00> : vector<32x64xf32>
    %2 = tpu.matmul %0, %1, %cst {dimension_numbers = #tpu.dot_dimension_numbers<[1], [0], [0], [1], [0, 0, 1, 1], [], []>} : vector<32x64xbf16>, vector<64x64xbf16>, vector<32x64xf32> -> vector<32x64xf32>
    %c0_3 = arith.constant 0 : index
    %c0_4 = arith.constant 0 : index
    %3 = vector.load %arg5[%c0_3, %c0_4] : memref<1x64xf32, #tpu.memory_space<vmem>>, vector<1x64xf32>
    %4 = vector.broadcast %3 : vector<1x64xf32> to vector<32x64xf32>
    %5 = arith.addf %2, %4 : vector<32x64xf32>
    %c0_5 = arith.constant 0 : index
    %c0_6 = arith.constant 0 : index
    %c0_7 = arith.constant 0 : index
    %6 = vector.load %arg1[%c0_5, %c0_6, %c0_7] : memref<4x32x64xbf16, #tpu.memory_space<vmem>>, vector<4x32x64xbf16>
    %7 = vector.shape_cast %6 : vector<4x32x64xbf16> to vector<128x64xbf16>
    %c0_8 = arith.constant 0 : index
    %c0_9 = arith.constant 0 : index
    %8 = vector.load %arg3[%c0_8, %c0_9] : memref<64x64xbf16, #tpu.memory_space<vmem>>, vector<64x64xbf16>
    %cst_10 = arith.constant dense<0.000000e+00> : vector<128x64xf32>
    %9 = tpu.matmul %7, %8, %cst_10 {dimension_numbers = #tpu.dot_dimension_numbers<[1], [0], [0], [1], [0, 0, 1, 1], [], []>} : vector<128x64xbf16>, vector<64x64xbf16>, vector<128x64xf32> -> vector<128x64xf32>
    %10 = vector.shape_cast %9 : vector<128x64xf32> to vector<4x32x64xf32>
    %11 = vector.shape_cast %5 : vector<32x64xf32> to vector<1x32x64xf32>
    %12 = vector.broadcast %11 : vector<1x32x64xf32> to vector<4x32x64xf32>
    %13 = arith.addf %10, %12 : vector<4x32x64xf32>
    %cst_11 = arith.constant 0.000000e+00 : f32
    %14 = vector.broadcast %cst_11 : f32 to vector<4x32x64xf32>
    %15 = arith.cmpf ogt, %13, %14 : vector<4x32x64xf32>
    %cst_12 = arith.constant 2.000000e-01 : f32
    %16 = vector.broadcast %cst_12 : f32 to vector<4x32x64xf32>
    %17 = arith.mulf %16, %13 : vector<4x32x64xf32>
    %18 = arith.select %15, %13, %17 : vector<4x32x64xi1>, vector<4x32x64xf32>
    %19 = vector.shape_cast %18 : vector<4x32x64xf32> to vector<128x64xf32>
    %20 = arith.truncf %19 : vector<128x64xf32> to vector<128x64xbf16>
    %c0_13 = arith.constant 0 : index
    %c0_14 = arith.constant 0 : index
    %21 = vector.load %arg6[%c0_13, %c0_14] : memref<64x64xbf16, #tpu.memory_space<vmem>>, vector<64x64xbf16>
    %cst_15 = arith.constant dense<0.000000e+00> : vector<128x64xf32>
    %22 = tpu.matmul %20, %21, %cst_15 {dimension_numbers = #tpu.dot_dimension_numbers<[1], [0], [0], [1], [0, 0, 1, 1], [], []>} : vector<128x64xbf16>, vector<64x64xbf16>, vector<128x64xf32> -> vector<128x64xf32>
    %23 = vector.shape_cast %22 : vector<128x64xf32> to vector<4x32x64xf32>
    %c0_16 = arith.constant 0 : index
    %c0_17 = arith.constant 0 : index
    %24 = vector.load %arg7[%c0_16, %c0_17] : memref<1x64xf32, #tpu.memory_space<vmem>>, vector<1x64xf32>
    %25 = vector.shape_cast %24 : vector<1x64xf32> to vector<1x1x64xf32>
    %26 = vector.broadcast %25 : vector<1x1x64xf32> to vector<4x32x64xf32>
    %27 = arith.addf %23, %26 : vector<4x32x64xf32>
    %cst_18 = arith.constant 0.000000e+00 : f32
    %28 = vector.broadcast %cst_18 : f32 to vector<4x32x64xf32>
    %29 = arith.cmpf ogt, %27, %28 : vector<4x32x64xf32>
    %cst_19 = arith.constant 2.000000e-01 : f32
    %30 = vector.broadcast %cst_19 : f32 to vector<4x32x64xf32>
    %31 = arith.mulf %30, %27 : vector<4x32x64xf32>
    %32 = arith.select %29, %27, %31 : vector<4x32x64xi1>, vector<4x32x64xf32>
    %cst_20 = arith.constant dense<0xFF800000> : vector<32x64xf32>
    %33 = vector.multi_reduction <maximumf>, %32, %cst_20 [0] : vector<4x32x64xf32> to vector<32x64xf32>
    %34 = arith.truncf %33 : vector<32x64xf32> to vector<32x64xbf16>
    %c0_21 = arith.constant 0 : index
    %c0_22 = arith.constant 0 : index
    %35 = vector.load %arg8[%c0_21, %c0_22] : memref<32x64xbf16, #tpu.memory_space<vmem>>, vector<32x64xbf16>
    tpu.vector_store %arg8[%c0_21, %c0_22], %34 {strides = array<i32>} : memref<32x64xbf16, #tpu.memory_space<vmem>>, vector<32x64xbf16>,
    return
  }
  func.func @transform_0(%arg0: i32) -> (i32, i32, i32) {
    %c0_i32 = arith.constant 0 : i32
    %c0_i32_0 = arith.constant 0 : i32
    %c0_i32_1 = arith.constant 0 : i32
    return %c0_i32, %arg0, %c0_i32_0 : i32, i32, i32
  }
  func.func @transform_1(%arg0: i32) -> (i32, i32) {
    %c0_i32 = arith.constant 0 : i32
    %c0_i32_0 = arith.constant 0 : i32
    return %arg0, %c0_i32 : i32, i32
  }
  func.func @transform_2(%arg0: i32) -> (i32, i32) {
    %c0_i32 = arith.constant 0 : i32
    %c0_i32_0 = arith.constant 0 : i32
    %c0_i32_1 = arith.constant 0 : i32
    return %c0_i32, %c0_i32_0 : i32, i32
  }
  func.func @transform_3(%arg0: i32) -> (i32, i32) {
    %c0_i32 = arith.constant 0 : i32
    %c0_i32_0 = arith.constant 0 : i32
    %c0_i32_1 = arith.constant 0 : i32
    return %c0_i32, %c0_i32_0 : i32, i32
  }
  func.func @transform_4(%arg0: i32) -> (i32, i32) {
    %c0_i32 = arith.constant 0 : i32
    %c0_i32_0 = arith.constant 0 : i32
    %c0_i32_1 = arith.constant 0 : i32
    return %c0_i32, %c0_i32_0 : i32, i32
  }
  func.func @transform_5(%arg0: i32) -> (i32, i32) {
    %c0_i32 = arith.constant 0 : i32
    %c0_i32_0 = arith.constant 0 : i32
    %c0_i32_1 = arith.constant 0 : i32
    return %c0_i32, %c0_i32_0 : i32, i32
  }
  func.func @transform_6(%arg0: i32) -> (i32, i32) {
    %c0_i32 = arith.constant 0 : i32
    %c0_i32_0 = arith.constant 0 : i32
    %c0_i32_1 = arith.constant 0 : i32
    return %c0_i32, %c0_i32_0 : i32, i32
  }
  func.func @transform_7(%arg0: i32) -> (i32, i32) {
    %c0_i32 = arith.constant 0 : i32
    %c0_i32_0 = arith.constant 0 : i32
    return %arg0, %c0_i32 : i32, i32
  }
}

module attributes {stable_mosaic.version = 11 : i64} {
  func.func @_edge_conv1_kernel(%arg0: i32, %arg1: memref<4x32x64xbf16, #tpu.memory_space<vmem>>, %arg2: memref<32x64xbf16, #tpu.memory_space<vmem>>, %arg3: memref<64x64xbf16, #tpu.memory_space<vmem>>, %arg4: memref<64x64xbf16, #tpu.memory_space<vmem>>, %arg5: memref<1x64xf32, #tpu.memory_space<vmem>>, %arg6: memref<32x64xbf16, #tpu.memory_space<vmem>>) attributes {dimension_semantics = [#tpu.dimension_semantics<parallel>], iteration_bounds = array<i64: 1>, scalar_prefetch = 0 : i64, scratch_operands = 0 : i64, tpu.core_type = #tpu.core_type<tc>, window_params = [{transform_indices = @transform_0, window_bounds = array<i64: 4, 32, 64>}, {transform_indices = @transform_1, window_bounds = array<i64: 32, 64>}, {pipeline_mode = #tpu.pipeline_mode<synchronous>, transform_indices = @transform_2, window_bounds = array<i64: 64, 64>}, {pipeline_mode = #tpu.pipeline_mode<synchronous>, transform_indices = @transform_3, window_bounds = array<i64: 64, 64>}, {pipeline_mode = #tpu.pipeline_mode<synchronous>, transform_indices = @transform_4, window_bounds = array<i64: 1, 64>}, {transform_indices = @transform_5, window_bounds = array<i64: 32, 64>}]} {
    %c0 = arith.constant 0 : index
    %c0_0 = arith.constant 0 : index
    %0 = vector.load %arg2[%c0, %c0_0] : memref<32x64xbf16, #tpu.memory_space<vmem>>, vector<32x64xbf16>
    %c0_1 = arith.constant 0 : index
    %c0_2 = arith.constant 0 : index
    %1 = vector.load %arg4[%c0_1, %c0_2] : memref<64x64xbf16, #tpu.memory_space<vmem>>, vector<64x64xbf16>
    %cst = arith.constant dense<0.000000e+00> : vector<32x64xf32>
    %2 = tpu.matmul %0, %1, %cst {dimension_numbers = #tpu.dot_dimension_numbers<[1], [0], [0], [1], [0, 0, 1, 1], [], []>} : vector<32x64xbf16>, vector<64x64xbf16>, vector<32x64xf32> -> vector<32x64xf32>
    %c0_3 = arith.constant 0 : index
    %c0_4 = arith.constant 0 : index
    %3 = vector.load %arg5[%c0_3, %c0_4] : memref<1x64xf32, #tpu.memory_space<vmem>>, vector<1x64xf32>
    %4 = vector.broadcast %3 : vector<1x64xf32> to vector<32x64xf32>
    %5 = arith.addf %2, %4 : vector<32x64xf32>
    %c0_5 = arith.constant 0 : index
    %c0_6 = arith.constant 0 : index
    %c0_7 = arith.constant 0 : index
    %6 = vector.load %arg1[%c0_5, %c0_6, %c0_7] : memref<4x32x64xbf16, #tpu.memory_space<vmem>>, vector<4x32x64xbf16>
    %7 = vector.shape_cast %6 : vector<4x32x64xbf16> to vector<128x64xbf16>
    %c0_8 = arith.constant 0 : index
    %c0_9 = arith.constant 0 : index
    %8 = vector.load %arg3[%c0_8, %c0_9] : memref<64x64xbf16, #tpu.memory_space<vmem>>, vector<64x64xbf16>
    %cst_10 = arith.constant dense<0.000000e+00> : vector<128x64xf32>
    %9 = tpu.matmul %7, %8, %cst_10 {dimension_numbers = #tpu.dot_dimension_numbers<[1], [0], [0], [1], [0, 0, 1, 1], [], []>} : vector<128x64xbf16>, vector<64x64xbf16>, vector<128x64xf32> -> vector<128x64xf32>
    %10 = vector.shape_cast %9 : vector<128x64xf32> to vector<4x32x64xf32>
    %11 = vector.shape_cast %5 : vector<32x64xf32> to vector<1x32x64xf32>
    %12 = vector.broadcast %11 : vector<1x32x64xf32> to vector<4x32x64xf32>
    %13 = arith.addf %10, %12 : vector<4x32x64xf32>
    %cst_11 = arith.constant 0.000000e+00 : f32
    %14 = vector.broadcast %cst_11 : f32 to vector<4x32x64xf32>
    %15 = arith.cmpf ogt, %13, %14 : vector<4x32x64xf32>
    %cst_12 = arith.constant 2.000000e-01 : f32
    %16 = vector.broadcast %cst_12 : f32 to vector<4x32x64xf32>
    %17 = arith.mulf %16, %13 : vector<4x32x64xf32>
    %18 = arith.select %15, %13, %17 : vector<4x32x64xi1>, vector<4x32x64xf32>
    %cst_13 = arith.constant dense<0xFF800000> : vector<32x64xf32>
    %19 = vector.multi_reduction <maximumf>, %18, %cst_13 [0] : vector<4x32x64xf32> to vector<32x64xf32>
    %20 = arith.truncf %19 : vector<32x64xf32> to vector<32x64xbf16>
    %c0_14 = arith.constant 0 : index
    %c0_15 = arith.constant 0 : index
    %21 = vector.load %arg6[%c0_14, %c0_15] : memref<32x64xbf16, #tpu.memory_space<vmem>>, vector<32x64xbf16>
    tpu.vector_store %arg6[%c0_14, %c0_15], %20 {strides = array<i32>} : memref<32x64xbf16, #tpu.memory_space<vmem>>, vector<32x64xbf16>,
    return
  }
  func.func @transform_0(%arg0: i32) -> (i32, i32, i32) {
    %c0_i32 = arith.constant 0 : i32
    %c0_i32_0 = arith.constant 0 : i32
    %c0_i32_1 = arith.constant 0 : i32
    return %c0_i32, %arg0, %c0_i32_0 : i32, i32, i32
  }
  func.func @transform_1(%arg0: i32) -> (i32, i32) {
    %c0_i32 = arith.constant 0 : i32
    %c0_i32_0 = arith.constant 0 : i32
    return %arg0, %c0_i32 : i32, i32
  }
  func.func @transform_2(%arg0: i32) -> (i32, i32) {
    %c0_i32 = arith.constant 0 : i32
    %c0_i32_0 = arith.constant 0 : i32
    %c0_i32_1 = arith.constant 0 : i32
    return %c0_i32, %c0_i32_0 : i32, i32
  }
  func.func @transform_3(%arg0: i32) -> (i32, i32) {
    %c0_i32 = arith.constant 0 : i32
    %c0_i32_0 = arith.constant 0 : i32
    %c0_i32_1 = arith.constant 0 : i32
    return %c0_i32, %c0_i32_0 : i32, i32
  }
  func.func @transform_4(%arg0: i32) -> (i32, i32) {
    %c0_i32 = arith.constant 0 : i32
    %c0_i32_0 = arith.constant 0 : i32
    %c0_i32_1 = arith.constant 0 : i32
    return %c0_i32, %c0_i32_0 : i32, i32
  }
  func.func @transform_5(%arg0: i32) -> (i32, i32) {
    %c0_i32 = arith.constant 0 : i32
    %c0_i32_0 = arith.constant 0 : i32
    return %arg0, %c0_i32 : i32, i32
  }
}

module attributes {stable_mosaic.version = 11 : i64} {
  func.func @_conv6_globalmax_kernel(%arg0: i32, %arg1: i32, %arg2: i32, %arg3: memref<1x16x192xbf16, #tpu.memory_space<vmem>>, %arg4: memref<192x1024xbf16, #tpu.memory_space<vmem>>, %arg5: memref<1x1024xf32, #tpu.memory_space<vmem>>, %arg6: memref<1x1x1024xf32, #tpu.memory_space<vmem>>) attributes {dimension_semantics = [#tpu.dimension_semantics<parallel>, #tpu.dimension_semantics<parallel>, #tpu.dimension_semantics<arbitrary>], iteration_bounds = array<i64: 2, 1, 1>, scalar_prefetch = 0 : i64, scratch_operands = 0 : i64, tpu.core_type = #tpu.core_type<tc>, window_params = [{transform_indices = @transform_0, window_bounds = array<i64: 1, 16, 192>}, {pipeline_mode = #tpu.pipeline_mode<synchronous>, transform_indices = @transform_1, window_bounds = array<i64: 192, 1024>}, {pipeline_mode = #tpu.pipeline_mode<synchronous>, transform_indices = @transform_2, window_bounds = array<i64: 1, 1024>}, {transform_indices = @transform_3, window_bounds = array<i64: 1, 1, 1024>}]} {
    %c0_i32 = arith.constant 0 : i32
    %0 = arith.cmpi eq, %arg2, %c0_i32 : i32
    %1 = arith.extui %0 : i1 to i32
    %c0_i32_0 = arith.constant 0 : i32
    %2 = arith.cmpi ne, %1, %c0_i32_0 : i32
    scf.if %2 {
      %cst_16 = arith.constant 0xFF800000 : f32
      %23 = vector.broadcast %cst_16 : f32 to vector<1x1x1024xf32>
      %c0_17 = arith.constant 0 : index
      %c0_18 = arith.constant 0 : index
      %c0_19 = arith.constant 0 : index
      %24 = vector.load %arg6[%c0_17, %c0_18, %c0_19] : memref<1x1x1024xf32, #tpu.memory_space<vmem>>, vector<1x1x1024xf32>
      tpu.vector_store %arg6[%c0_17, %c0_18, %c0_19], %23 {strides = array<i32>} : memref<1x1x1024xf32, #tpu.memory_space<vmem>>, vector<1x1x1024xf32>,
    } else {
    }
    %c0 = arith.constant 0 : index
    %c0_1 = arith.constant 0 : index
    %c0_2 = arith.constant 0 : index
    %3 = vector.load %arg3[%c0, %c0_1, %c0_2] : memref<1x16x192xbf16, #tpu.memory_space<vmem>>, vector<1x16x192xbf16>
    %4 = vector.shape_cast %3 : vector<1x16x192xbf16> to vector<16x192xbf16>
    %c0_3 = arith.constant 0 : index
    %c0_4 = arith.constant 0 : index
    %5 = vector.load %arg4[%c0_3, %c0_4] : memref<192x1024xbf16, #tpu.memory_space<vmem>>, vector<192x1024xbf16>
    %cst = arith.constant dense<0.000000e+00> : vector<16x1024xf32>
    %6 = tpu.matmul %4, %5, %cst {dimension_numbers = #tpu.dot_dimension_numbers<[1], [0], [0], [1], [0, 0, 1, 1], [], []>} : vector<16x192xbf16>, vector<192x1024xbf16>, vector<16x1024xf32> -> vector<16x1024xf32>
    %c0_5 = arith.constant 0 : index
    %c0_6 = arith.constant 0 : index
    %7 = vector.load %arg5[%c0_5, %c0_6] : memref<1x1024xf32, #tpu.memory_space<vmem>>, vector<1x1024xf32>
    %8 = vector.broadcast %7 : vector<1x1024xf32> to vector<16x1024xf32>
    %9 = arith.addf %6, %8 : vector<16x1024xf32>
    %cst_7 = arith.constant 0.000000e+00 : f32
    %10 = vector.broadcast %cst_7 : f32 to vector<16x1024xf32>
    %11 = arith.cmpf ogt, %9, %10 : vector<16x1024xf32>
    %cst_8 = arith.constant 2.000000e-01 : f32
    %12 = vector.broadcast %cst_8 : f32 to vector<16x1024xf32>
    %13 = arith.mulf %12, %9 : vector<16x1024xf32>
    %14 = arith.select %11, %9, %13 : vector<16x1024xi1>, vector<16x1024xf32>
    %c0_9 = arith.constant 0 : index
    %c0_10 = arith.constant 0 : index
    %c0_11 = arith.constant 0 : index
    %15 = vector.load %arg6[%c0_9, %c0_10, %c0_11] : memref<1x1x1024xf32, #tpu.memory_space<vmem>>, vector<1x1x1024xf32>
    %16 = vector.shape_cast %15 : vector<1x1x1024xf32> to vector<1x1024xf32>
    %cst_12 = arith.constant dense<0xFF800000> : vector<1024xf32>
    %17 = vector.multi_reduction <maximumf>, %14, %cst_12 [0] : vector<16x1024xf32> to vector<1024xf32>
    %18 = vector.shape_cast %17 : vector<1024xf32> to vector<1x1024xf32>
    %19 = arith.maximumf %16, %18 : vector<1x1024xf32>
    %c0_13 = arith.constant 0 : index
    %c0_14 = arith.constant 0 : index
    %c0_15 = arith.constant 0 : index
    %20 = vector.load %arg6[%c0_13, %c0_14, %c0_15] : memref<1x1x1024xf32, #tpu.memory_space<vmem>>, vector<1x1x1024xf32>
    %21 = vector.shape_cast %20 : vector<1x1x1024xf32> to vector<1x1024xf32>
    %22 = vector.shape_cast %19 : vector<1x1024xf32> to vector<1x1x1024xf32>
    tpu.vector_store %arg6[%c0_13, %c0_14, %c0_15], %22 {strides = array<i32>} : memref<1x1x1024xf32, #tpu.memory_space<vmem>>, vector<1x1x1024xf32>,
    return
  }
  func.func @transform_0(%arg0: i32, %arg1: i32, %arg2: i32) -> (i32, i32, i32) {
    %c1_i32 = arith.constant 1 : i32
    %0 = arith.muli %arg1, %c1_i32 : i32
    %1 = arith.addi %0, %arg2 : i32
    %c0_i32 = arith.constant 0 : i32
    %c0_i32_0 = arith.constant 0 : i32
    return %arg0, %1, %c0_i32 : i32, i32, i32
  }
  func.func @transform_1(%arg0: i32, %arg1: i32, %arg2: i32) -> (i32, i32) {
    %c0_i32 = arith.constant 0 : i32
    %c0_i32_0 = arith.constant 0 : i32
    %c0_i32_1 = arith.constant 0 : i32
    return %c0_i32, %c0_i32_0 : i32, i32
  }
  func.func @transform_2(%arg0: i32, %arg1: i32, %arg2: i32) -> (i32, i32) {
    %c0_i32 = arith.constant 0 : i32
    %c0_i32_0 = arith.constant 0 : i32
    %c0_i32_1 = arith.constant 0 : i32
    return %c0_i32, %c0_i32_0 : i32, i32
  }
  func.func @transform_3(%arg0: i32, %arg1: i32, %arg2: i32) -> (i32, i32, i32) {
    %c0_i32 = arith.constant 0 : i32
    %c0_i32_0 = arith.constant 0 : i32
    return %arg0, %arg1, %c0_i32 : i32, i32, i32
  }
}

module attributes {stable_mosaic.version = 11 : i64} {
  func.func @_head_kernel(%arg0: i32, %arg1: i32, %arg2: memref<1x1x512xf32, #tpu.memory_space<vmem>>, %arg3: memref<1x16x192xbf16, #tpu.memory_space<vmem>>, %arg4: memref<192x512xbf16, #tpu.memory_space<vmem>>, %arg5: memref<512x256xbf16, #tpu.memory_space<vmem>>, %arg6: memref<1x256xf32, #tpu.memory_space<vmem>>, %arg7: memref<256x128xbf16, #tpu.memory_space<vmem>>, %arg8: memref<1x16x128xf32, #tpu.memory_space<vmem>>) attributes {dimension_semantics = [#tpu.dimension_semantics<parallel>, #tpu.dimension_semantics<parallel>], iteration_bounds = array<i64: 2, 1>, scalar_prefetch = 0 : i64, scratch_operands = 0 : i64, tpu.core_type = #tpu.core_type<tc>, window_params = [{transform_indices = @transform_0, window_bounds = array<i64: 1, 1, 512>}, {transform_indices = @transform_1, window_bounds = array<i64: 1, 16, 192>}, {pipeline_mode = #tpu.pipeline_mode<synchronous>, transform_indices = @transform_2, window_bounds = array<i64: 192, 512>}, {pipeline_mode = #tpu.pipeline_mode<synchronous>, transform_indices = @transform_3, window_bounds = array<i64: 512, 256>}, {pipeline_mode = #tpu.pipeline_mode<synchronous>, transform_indices = @transform_4, window_bounds = array<i64: 1, 256>}, {pipeline_mode = #tpu.pipeline_mode<synchronous>, transform_indices = @transform_5, window_bounds = array<i64: 256, 128>}, {transform_indices = @transform_6, window_bounds = array<i64: 1, 16, 128>}]} {
    %c0 = arith.constant 0 : index
    %c0_0 = arith.constant 0 : index
    %c0_1 = arith.constant 0 : index
    %0 = vector.load %arg3[%c0, %c0_0, %c0_1] : memref<1x16x192xbf16, #tpu.memory_space<vmem>>, vector<1x16x192xbf16>
    %1 = vector.shape_cast %0 : vector<1x16x192xbf16> to vector<16x192xbf16>
    %c0_2 = arith.constant 0 : index
    %c0_3 = arith.constant 0 : index
    %2 = vector.load %arg4[%c0_2, %c0_3] : memref<192x512xbf16, #tpu.memory_space<vmem>>, vector<192x512xbf16>
    %cst = arith.constant dense<0.000000e+00> : vector<16x512xf32>
    %3 = tpu.matmul %1, %2, %cst {dimension_numbers = #tpu.dot_dimension_numbers<[1], [0], [0], [1], [0, 0, 1, 1], [], []>} : vector<16x192xbf16>, vector<192x512xbf16>, vector<16x512xf32> -> vector<16x512xf32>
    %c0_4 = arith.constant 0 : index
    %c0_5 = arith.constant 0 : index
    %c0_6 = arith.constant 0 : index
    %4 = vector.load %arg2[%c0_4, %c0_5, %c0_6] : memref<1x1x512xf32, #tpu.memory_space<vmem>>, vector<1x1x512xf32>
    %5 = vector.shape_cast %4 : vector<1x1x512xf32> to vector<1x512xf32>
    %6 = vector.broadcast %5 : vector<1x512xf32> to vector<16x512xf32>
    %7 = arith.addf %3, %6 : vector<16x512xf32>
    %cst_7 = arith.constant 0.000000e+00 : f32
    %8 = vector.broadcast %cst_7 : f32 to vector<16x512xf32>
    %9 = arith.cmpf ogt, %7, %8 : vector<16x512xf32>
    %cst_8 = arith.constant 2.000000e-01 : f32
    %10 = vector.broadcast %cst_8 : f32 to vector<16x512xf32>
    %11 = arith.mulf %10, %7 : vector<16x512xf32>
    %12 = arith.select %9, %7, %11 : vector<16x512xi1>, vector<16x512xf32>
    %13 = arith.truncf %12 : vector<16x512xf32> to vector<16x512xbf16>
    %c0_9 = arith.constant 0 : index
    %c0_10 = arith.constant 0 : index
    %14 = vector.load %arg5[%c0_9, %c0_10] : memref<512x256xbf16, #tpu.memory_space<vmem>>, vector<512x256xbf16>
    %cst_11 = arith.constant dense<0.000000e+00> : vector<16x256xf32>
    %15 = tpu.matmul %13, %14, %cst_11 {dimension_numbers = #tpu.dot_dimension_numbers<[1], [0], [0], [1], [0, 0, 1, 1], [], []>} : vector<16x512xbf16>, vector<512x256xbf16>, vector<16x256xf32> -> vector<16x256xf32>
    %c0_12 = arith.constant 0 : index
    %c0_13 = arith.constant 0 : index
    %16 = vector.load %arg6[%c0_12, %c0_13] : memref<1x256xf32, #tpu.memory_space<vmem>>, vector<1x256xf32>
    %17 = vector.broadcast %16 : vector<1x256xf32> to vector<16x256xf32>
    %18 = arith.addf %15, %17 : vector<16x256xf32>
    %cst_14 = arith.constant 0.000000e+00 : f32
    %19 = vector.broadcast %cst_14 : f32 to vector<16x256xf32>
    %20 = arith.cmpf ogt, %18, %19 : vector<16x256xf32>
    %cst_15 = arith.constant 2.000000e-01 : f32
    %21 = vector.broadcast %cst_15 : f32 to vector<16x256xf32>
    %22 = arith.mulf %21, %18 : vector<16x256xf32>
    %23 = arith.select %20, %18, %22 : vector<16x256xi1>, vector<16x256xf32>
    %24 = arith.truncf %23 : vector<16x256xf32> to vector<16x256xbf16>
    %c0_16 = arith.constant 0 : index
    %c0_17 = arith.constant 0 : index
    %25 = vector.load %arg7[%c0_16, %c0_17] : memref<256x128xbf16, #tpu.memory_space<vmem>>, vector<256x128xbf16>
    %cst_18 = arith.constant dense<0.000000e+00> : vector<16x128xf32>
    %26 = tpu.matmul %24, %25, %cst_18 {dimension_numbers = #tpu.dot_dimension_numbers<[1], [0], [0], [1], [0, 0, 1, 1], [], []>} : vector<16x256xbf16>, vector<256x128xbf16>, vector<16x128xf32> -> vector<16x128xf32>
    %c0_19 = arith.constant 0 : index
    %c0_20 = arith.constant 0 : index
    %c0_21 = arith.constant 0 : index
    %27 = vector.load %arg8[%c0_19, %c0_20, %c0_21] : memref<1x16x128xf32, #tpu.memory_space<vmem>>, vector<1x16x128xf32>
    %28 = vector.shape_cast %27 : vector<1x16x128xf32> to vector<16x128xf32>
    %29 = vector.shape_cast %26 : vector<16x128xf32> to vector<1x16x128xf32>
    tpu.vector_store %arg8[%c0_19, %c0_20, %c0_21], %29 {strides = array<i32>} : memref<1x16x128xf32, #tpu.memory_space<vmem>>, vector<1x16x128xf32>,
    return
  }
  func.func @transform_0(%arg0: i32, %arg1: i32) -> (i32, i32, i32) {
    %c0_i32 = arith.constant 0 : i32
    %c0_i32_0 = arith.constant 0 : i32
    %c0_i32_1 = arith.constant 0 : i32
    return %arg0, %c0_i32, %c0_i32_0 : i32, i32, i32
  }
  func.func @transform_1(%arg0: i32, %arg1: i32) -> (i32, i32, i32) {
    %c0_i32 = arith.constant 0 : i32
    %c0_i32_0 = arith.constant 0 : i32
    return %arg0, %arg1, %c0_i32 : i32, i32, i32
  }
  func.func @transform_2(%arg0: i32, %arg1: i32) -> (i32, i32) {
    %c0_i32 = arith.constant 0 : i32
    %c0_i32_0 = arith.constant 0 : i32
    %c0_i32_1 = arith.constant 0 : i32
    return %c0_i32, %c0_i32_0 : i32, i32
  }
  func.func @transform_3(%arg0: i32, %arg1: i32) -> (i32, i32) {
    %c0_i32 = arith.constant 0 : i32
    %c0_i32_0 = arith.constant 0 : i32
    %c0_i32_1 = arith.constant 0 : i32
    return %c0_i32, %c0_i32_0 : i32, i32
  }
  func.func @transform_4(%arg0: i32, %arg1: i32) -> (i32, i32) {
    %c0_i32 = arith.constant 0 : i32
    %c0_i32_0 = arith.constant 0 : i32
    %c0_i32_1 = arith.constant 0 : i32
    return %c0_i32, %c0_i32_0 : i32, i32
  }
  func.func @transform_5(%arg0: i32, %arg1: i32) -> (i32, i32) {
    %c0_i32 = arith.constant 0 : i32
    %c0_i32_0 = arith.constant 0 : i32
    %c0_i32_1 = arith.constant 0 : i32
    return %c0_i32, %c0_i32_0 : i32, i32
  }
  func.func @transform_6(%arg0: i32, %arg1: i32) -> (i32, i32, i32) {
    %c0_i32 = arith.constant 0 : i32
    %c0_i32_0 = arith.constant 0 : i32
    return %arg0, %arg1, %c0_i32 : i32, i32, i32
  }
}

</mosaic_0001>

<bundles_post_ra>
// kernel: dgcnn_semseg_forward.8
= control target key start
LH: loop header
LB: loop body
LE: loop exit
PB: predicated region body
PF: predicated region fallthrough
CT: control target
= control target key end

     0   :  { %s507_s12 = smov 0   ;;  %s509_s13 = smov 0   ;;  %s546_s0 = inlined_call_operand.vmem [shape: bf16[2,16,64], index: 0, kind: input, shape index: {}, may-alias: {0,1}]   ;;  %s547_s1 = inlined_call_operand.vmem [shape: bf16[2,16,64], index: 1, kind: input, shape index: {}, may-alias: {0,1}]   ;;  %s548_s2 = inlined_call_operand.vmem [shape: f32[2,1,16], index: 2, kind: input, shape index: {}]   ;;  %s549_s3 = inlined_call_operand.vmem [shape: f32[2,16,16], index: 3, kind: output, shape index: {}]  }
   0x1   :  { %s511_s14 = smov 0  }
   0x2 LB: > { %s25_s15 = sadd.s32 1, %s481_s13  ;;  %p415_p0 = scmp.ge.s32.totalorder %s485_s14, 1  ;;  %s485_s14 = sphi %s511_s14, %s13_s14   ;;  %s481_s13 = sphi %s509_s13, %s551_s13   ;;  %s477_s12 = sphi %s507_s12, %s550_s12  }
   0x3   : > { %p27_p1 = scmp.ge.s32.totalorder %s25_s15, 2  ;;  %p176_p2 = scmp.lt.s32.totalorder %s485_s14, 3 }
   0x5   : > { %s553_s15 = smov (%p27_p1, %s25_s15), 0  ;;  %p177_p3 = pnand %p415_p0, %p176_p2 }
   0x6   : > { %p217_p4 = scmp.lt.s32.totalorder (!%p177_p3), %s477_s12, 1 }
   0x7   : > { %180 = sbr.rel (%p177_p3) target bundleno = 165 (0xa5), region = 32 }
   0xc   : > { %s555_s12 = smov (!%p217_p4, %s477_s12), 1  ;;  %vm259_vm0 = vcmask 523264   ;;  %vm300_vm1 = vcmask 130048  }
   0xd   : > { %s433_s16 = sshll.u32 %s555_s12, 3  ;;  %s233_s25 = scalar_lea.vmem %s548_s2, %s555_s12 }
   0xe   : > { %s224_s19 = scalar_lea.vmem %s546_s0, %s433_s16  ;;  %s230_s22 = scalar_lea.vmem %s547_s1, %s433_s16  ;;  %v462_v13 = vld [vmem:[%s233_s25] ss:$0 sm:$0xff] }
   0xf   : > { %v437_v0 = vld [vmem:[%s230_s22] sm:$0xff]  ;;  %s435_s26 = sshll.u32 %s555_s12, 4 }
  0x10   : > { %v245_v1 = vld [vmem:[%s224_s19] sm:$0xff]   ;;  %v264_v3 = vsel %vm259_vm0, %v437_v0, 0  ;;  %s242_s29 = scalar_lea.vmem %s549_s3, %s435_s26 }
  0x11   : > { %v280_v2 = vunpack.c.l.bf16 %v245_v1  ;;  %273 = vmatpush.bf16.xpose.msra.mxu0 %v264_v3  ;;  %v281_v5 = vunpack.c.h.bf16 %v245_v1  ;;  %v436_v7 = vld [vmem:[%s224_s19] sm:$0xff] }
  0x13   : > { %v282_v4 = vmul.f32 %v280_v2, %v280_v2  ;;  %v283_v8 = vmul.f32 %v281_v5, %v281_v5 }
  0x15   : > { %v284_v6 = vsel %vm259_vm0, %v282_v4, 0.0  ;;  %v287_v9 = vsel %vm259_vm0, %v283_v8, 0.0 }
  0x16   : > { %285 = vadd.xlane.f32.xlu0 %v284_v6 }
  0x18   : > { %430 = vmatmul.msk.bf16.vlgmr.msra.gmra.mxu0 %vm259_vm0, %v436_v7 }
  0x1e   : > { %288 = vadd.xlane.f32.xlu0 %v287_v9 }
  0x89   : > { %v286_v10 = vpop.xlane.xlu0 %285 }
  0x91   : > { %v289_v17 = vpop.xlane.xlu0 %288 }
  0x95   : > { %v275_v11 = vpop.f32.mrf.mxu0 }
  0x96   : > { %v290_v12 = vmul.f32 2.0, %v275_v11 }
  0x98   : > { %v292_v14 = vsub.f32 %v290_v12, %v286_v10 }
  0x9a   : > { %v298_v15 = vsub.f32 %v292_v14, %v462_v13 }
  0x9c   : > { %301 = vst.msk [vmem:[%s242_s29] sm:$0xff] %vm300_vm1, %v298_v15 }
  0x9d   : > { %v277_v16 = vpop.f32.mrf.mxu0 }
  0x9e   : > { %v291_v18 = vmul.f32 2.0, %v277_v16 }
  0xa0   : > { %v293_v19 = vsub.f32 %v291_v18, %v289_v17 }
  0xa2   : > { %v299_v20 = vsub.f32 %v293_v19, %v462_v13 }
  0xa4   : > { %302 = vst.msk [vmem:[%s242_s29 + $0x8] sm:$0xff] %vm300_vm1, %v299_v20 }
  0xa5 PF: > { %s13_s14 = sadd.s32 1, %s485_s14   ;;  %s550_s12 = smov %s481_s13 }
  0xa6   : > { %p10_p5 = scmp.ge.s32.totalorder %s13_s14, 4   ;;  %s551_s13 = smov %s553_s15 }
  0xa8   :  { %12 = sbr.rel (!%p10_p5) target bundleno = 2 (0x2), region = 68 }

// kernel: dgcnn_semseg_forward.7
= control target key start
LH: loop header
LB: loop body
LE: loop exit
PB: predicated region body
PF: predicated region fallthrough
CT: control target
= control target key end

     0   :  { %12 = vsyncpa [#allocation3], 0  ;;  %s887_s0 = inlined_call_operand.vmem [shape: bf16[4,32,6], index: 0, kind: input, shape index: {}]   ;;  %s888_s1 = inlined_call_operand.vmem [shape: bf16[32,6], index: 1, kind: input, shape index: {}]   ;;  %s889_s2 = inlined_call_operand.vmem [shape: bf16[6,64], index: 2, kind: input, shape index: {}]   ;;  %s890_s3 = inlined_call_operand.vmem [shape: bf16[6,64], index: 3, kind: input, shape index: {}]   ;;  %s891_s4 = inlined_call_operand.hbm [shape: f32[1,64], index: 4, kind: input, shape index: {}]   ;;  %s892_s5 = inlined_call_operand.vmem [shape: bf16[64,64], index: 5, kind: input, shape index: {}]   ;;  %s893_s6 = inlined_call_operand.hbm [shape: f32[1,64], index: 6, kind: input, shape index: {}]   ;;  %s894_s7 = inlined_call_operand.vmem [shape: bf16[32,64], index: 7, kind: output, shape index: {}]  }
   0x1   :  { %s27_s26 = sshll.u32 %s891_s4, 4  ;;  %s28_s26 = int_to_ptr.hbm [resolvable:$true] %s27_s26 }
   0x2   :  { %13 = vsyncpa [#allocation5], 0  ;;  %s675_s27 = smov [#allocation2]   ;;  %s40_s8 = sshll.u32 %s893_s6, 4  ;;  %s41_s8 = int_to_ptr.hbm [resolvable:$true] %s40_s8 }
   0x3   :  { %s29_s28 = sshll.u32 %s675_s27, 4  ;;  %s676_s9 = smov [#allocation4]   ;;  %s30_s28 = int_to_ptr.vmem [resolvable:$true] %s29_s28 }
   0x4   :  { %32 = dma.hbm_to_vmem [thread:$0]  %s28_s26, 16, %s30_s28, [#allocation3]  }
   0x5   :  { %s42_s10 = sshll.u32 %s676_s9, 4  ;;  %s43_s10 = int_to_ptr.vmem [resolvable:$true] %s42_s10 }
   0x6   :  { %45 = dma.hbm_to_vmem [thread:$0]  %s41_s8, 16, %s43_s10, [#allocation5]  }
   0x7   :  { %671 = dma.done.wait [#allocation3], 16  }
   0x8   :  { %672 = vsyncadd [#allocation3], 4294967280 }
   0x9   :  { %673 = dma.done.wait [#allocation5], 16  }
   0xa   :  { %674 = vsyncadd [#allocation5], 4294967280  ;;  %vm81_vm0 = vcmask 1042432   ;;  %v59_v0 = vld [vmem:[%s890_s3] sm:$0x7]  ;;  %v605_v5 = vld [vmem:[%s887_s0 + $0x18] sm:$0xff] }
   0xb   :  { %v120_v1 = vld [vmem:[%s889_s2] sm:$0x7]  ;;  %v83_v2 = vsel %vm81_vm0, %v59_v0, 0  ;;  %vm74_vm1 = vcmask 48128   ;;  %v601_v6 = vld [vmem:[%s888_s1 + $0x8] sm:$0xff]  ;;  %v608_v11 = vld [vmem:[%s887_s0 + $0x30] sm:$0xff] }
   0xc   :  { %v186_v3 = vsel %vm81_vm0, %v120_v1, 0  ;;  %v600_v4 = vld [vmem:[%s888_s1] sm:$0xff]  ;;  %92 = vmatpush.bf16.msra.mxu0 %v83_v2  ;;  %v607_v9 = vld [vmem:[%s887_s0 + $0x28] sm:$0xff]  ;;  %v604_v12 = vld [vmem:[%s887_s0 + $0x10] sm:$0xff]  ;;  %vm341_vm10 = vcmask 523264  }
   0xd   :  { %614 = vmatpush.bf16.msra.mxu1 %v186_v3  ;;  %v606_v7 = vld [vmem:[%s887_s0 + $0x20] sm:$0xff]  ;;  %v603_v10 = vld [vmem:[%s887_s0 + $0x8] sm:$0xff]  ;;  %v609_v13 = vld [vmem:[%s887_s0 + $0x38] sm:$0xff] }
   0xe   :  { %v602_v8 = vld [vmem:[%s887_s0] sm:$0xff]  ;;  %v613_v14 = vld [vmem:[%s892_s5 + $0x18] sm:$0xff]  ;;  %v612_v17 = vld [vmem:[%s892_s5 + $0x10] sm:$0xff] }
   0xf   :  { %534 = vmatmul.msk.bf16.vlgmr.msra.gmra.mxu0 %vm74_vm1, %v600_v4  ;;  %370 = vmatpush.bf16.msra.mxu2 %v613_v14  ;;  %v611_v18 = vld [vmem:[%s892_s5 + $0x8] sm:$0xff]  ;;  %v621_v21 = vld [vmem:[#allocation2] ss:$0 sm:$0xff] }
  0x10   :  { %195 = vmatpush.bf16.msrb.mxu0 %v186_v3  ;;  %571 = vmatmul.msk.bf16.vlgmr.msra.gmra.mxu1 %vm74_vm1, %v605_v5  ;;  %v610_v22 = vld [vmem:[%s892_s5] sm:$0xff] }
  0x11   :  { %615 = vmatpush.bf16.msra.mxu3 %v613_v14 }
  0x13   :  { %371 = vmatpush.bf16.msra.mxu2 %v612_v17 }
  0x15   :  { %616 = vmatpush.bf16.msra.mxu3 %v612_v17 }
  0x17   :  { %372 = vmatpush.bf16.msra.mxu2 %v611_v18 }
  0x19   :  { %617 = vmatpush.bf16.msra.mxu3 %v611_v18 }
  0x1b   :  { %373 = vmatpush.bf16.msra.mxu2 %v610_v22 }
  0x1d   :  { %618 = vmatpush.bf16.msra.mxu3 %v610_v22 }
  0x1f   :  { %535 = vmatmul.msk.bf16.gmra.mxu0 %vm74_vm1, %v601_v6 }
  0x20   :  { %572 = vmatmul.msk.bf16.gmra.mxu1 %vm74_vm1, %v606_v7 }
  0x2f   :  { %568 = vmatmul.msk.bf16.vlgmr.msrb.gmra.mxu0 %vm74_vm1, %v602_v8 }
  0x30   :  { %573 = vmatmul.msk.bf16.gmra.mxu1 %vm74_vm1, %v607_v9 }
  0x3f   :  { %569 = vmatmul.msk.bf16.gmra.mxu0 %vm74_vm1, %v603_v10 }
  0x40   :  { %574 = vmatmul.msk.bf16.gmra.mxu1 %vm74_vm1, %v608_v11 }
  0x4f   :  { %570 = vmatmul.msk.bf16.gmra.mxu0 %vm74_vm1, %v604_v12 }
  0x50   :  { %575 = vmatmul.msk.bf16.gmra.mxu1 %vm74_vm1, %v609_v13 }
  0x8c   :  { %v94_v15 = vpop.f32.mrf.mxu0 }
  0x8d   :  { %v212_v16 = vpop.f32.mrf.mxu1  ;;  %v781_v23 = vadd.f32 %v621_v21, %v94_v15 }
  0x94   :  { %v96_v19 = vpop.f32.mrf.mxu0 }
  0x95   :  { %v214_v20 = vpop.f32.mrf.mxu1  ;;  %v786_v28 = vadd.f32 %v621_v21, %v96_v19 }
  0x9c   :  { %v99_v24 = vpop.f32.mrf.mxu0 }
  0x9d   :  { %v217_v25 = vpop.f32.mrf.mxu1  ;;  %v784_v27 = vadd.f32 %v621_v21, %v99_v24 }
  0x9e   :  { %v245_v26 = vadd.f32 %v217_v25, %v781_v23 }
  0x9f   :  { %v243_v29 = vadd.f32 %v212_v16, %v784_v27 }
  0xa0   :  { %v277_v32 = vmul.f32 0.2, %v245_v26  ;;  %vm261_vm2 = vcmp.gt.f32.partialorder %v245_v26, 0.0 }
  0xa1   :  { %v275_v37 = vmul.f32 0.2, %v243_v29  ;;  %vm259_vm4 = vcmp.gt.f32.partialorder %v243_v29, 0.0 }
  0xa2   :  { %v793_v39 = vsel %vm261_vm2, %v245_v26, %v277_v32 }
  0xa3   :  { %v799_v42 = vsel %vm259_vm4, %v243_v29, %v275_v37 }
  0xa4   :  { %v101_v30 = vpop.f32.mrf.mxu0 }
  0xa5   :  { %v219_v31 = vpop.f32.mrf.mxu1  ;;  %v789_v33 = vadd.f32 %v621_v21, %v101_v30 }
  0xa6   :  { %v246_v34 = vadd.f32 %v219_v31, %v786_v28 }
  0xa7   :  { %v244_v35 = vadd.f32 %v214_v20, %v789_v33 }
  0xa8   :  { %vm262_vm3 = vcmp.gt.f32.partialorder %v246_v34, 0.0  ;;  %v278_v36 = vmul.f32 0.2, %v246_v34 }
  0xa9   :  { %vm260_vm5 = vcmp.gt.f32.partialorder %v244_v35, 0.0  ;;  %v276_v38 = vmul.f32 0.2, %v244_v35 }
  0xaa   :  { %v795_v40 = vsel %vm262_vm3, %v246_v34, %v278_v36 }
  0xab   :  { %v305_v41 = vpack.c.bf16 %v795_v40, %v793_v39  ;;  %v801_v43 = vsel %vm260_vm5, %v244_v35, %v276_v38 }
  0xac   :  { %v197_v44 = vpop.f32.mrf.mxu0  ;;  %v304_v46 = vpack.c.bf16 %v801_v43, %v799_v42  ;;  %v835_v42 = vld [vmem:[#allocation4] ss:$0 sm:$0xff] }
  0xad   :  { %v222_v45 = vpop.f32.mrf.mxu1  ;;  %v237_v47 = vadd.f32 %v197_v44, %v781_v23 }
  0xae   :  { %v247_v48 = vadd.f32 %v222_v45, %v784_v27 }
  0xaf   :  { %v269_v51 = vmul.f32 0.2, %v237_v47  ;;  %vm253_vm6 = vcmp.gt.f32.partialorder %v237_v47, 0.0 }
  0xb0   :  { %v279_v52 = vmul.f32 0.2, %v247_v48  ;;  %vm263_vm7 = vcmp.gt.f32.partialorder %v247_v48, 0.0 }
  0xb1   :  { %v285_v57 = vsel %vm253_vm6, %v237_v47, %v269_v51 }
  0xb2   :  { %v295_v59 = vsel %vm263_vm7, %v247_v48, %v279_v52 }
  0xb4   :  { %v199_v49 = vpop.f32.mrf.mxu0 }
  0xb5   :  { %v224_v50 = vpop.f32.mrf.mxu1  ;;  %v238_v53 = vadd.f32 %v199_v49, %v786_v28 }
  0xb6   :  { %v248_v54 = vadd.f32 %v224_v50, %v789_v33 }
  0xb7   :  { %vm254_vm8 = vcmp.gt.f32.partialorder %v238_v53, 0.0  ;;  %v270_v55 = vmul.f32 0.2, %v238_v53 }
  0xb8   :  { %vm264_vm9 = vcmp.gt.f32.partialorder %v248_v54, 0.0  ;;  %v280_v56 = vmul.f32 0.2, %v248_v54 }
  0xb9   :  { %v286_v58 = vsel %vm254_vm8, %v238_v53, %v270_v55 }
  0xba   :  { %v296_v60 = vsel %vm264_vm9, %v248_v54, %v280_v56  ;;  %v301_v61 = vpack.c.bf16 %v286_v58, %v285_v57 }
  0xbb   :  { %v306_v62 = vpack.c.bf16 %v296_v60, %v295_v59 }
  0xbc   :  { %v202_v63 = vpop.f32.mrf.mxu0  ;;  %592 = vmatmul.msk.bf16.vlgmr.msra.gmra.mxu2 %vm341_vm10, %v301_v61 }
  0xbd   :  { %v227_v0 = vpop.f32.mrf.mxu1  ;;  %597 = vmatmul.msk.bf16.vlgmr.msra.gmra.mxu3 %vm341_vm10, %v306_v62  ;;  %v239_v1 = vadd.f32 %v202_v63, %v784_v27 }
  0xbe   :  { %v249_v2 = vadd.f32 %v227_v0, %v781_v23 }
  0xbf   :  { %v271_v5 = vmul.f32 0.2, %v239_v1  ;;  %vm255_vm11 = vcmp.gt.f32.partialorder %v239_v1, 0.0 }
  0xc0   :  { %v281_v6 = vmul.f32 0.2, %v249_v2  ;;  %vm265_vm12 = vcmp.gt.f32.partialorder %v249_v2, 0.0 }
  0xc1   :  { %v287_v11 = vsel %vm255_vm11, %v239_v1, %v271_v5 }
  0xc2   :  { %v297_v13 = vsel %vm265_vm12, %v249_v2, %v281_v6 }
  0xc4   :  { %v204_v3 = vpop.f32.mrf.mxu0 }
  0xc5   :  { %v229_v4 = vpop.f32.mrf.mxu1  ;;  %v240_v7 = vadd.f32 %v204_v3, %v789_v33 }
  0xc6   :  { %v250_v8 = vadd.f32 %v229_v4, %v786_v28 }
  0xc7   :  { %vm256_vm13 = vcmp.gt.f32.partialorder %v240_v7, 0.0  ;;  %v272_v9 = vmul.f32 0.2, %v240_v7 }
  0xc8   :  { %vm266_vm14 = vcmp.gt.f32.partialorder %v250_v8, 0.0  ;;  %v282_v10 = vmul.f32 0.2, %v250_v8 }
  0xc9   :  { %v288_v12 = vsel %vm256_vm13, %v240_v7, %v272_v9  ;;  %vm515_vm13 = vcmask 519168  }
  0xca   :  { %v298_v14 = vsel %vm266_vm14, %v250_v8, %v282_v10  ;;  %v302_v15 = vpack.c.bf16 %v288_v12, %v287_v11 }
  0xcb   :  { %v307_v16 = vpack.c.bf16 %v298_v14, %v297_v13 }
  0xcc   :  { %v207_v17 = vpop.f32.mrf.mxu0  ;;  %593 = vmatmul.msk.bf16.gmra.mxu2 %vm341_vm10, %v302_v15 }
  0xcd   :  { %v232_v18 = vpop.f32.mrf.mxu1  ;;  %598 = vmatmul.msk.bf16.gmra.mxu3 %vm341_vm10, %v307_v16  ;;  %v241_v19 = vadd.f32 %v207_v17, %v781_v23 }
  0xce   :  { %v251_v20 = vadd.f32 %v232_v18, %v784_v27 }
  0xcf   :  { %v273_v24 = vmul.f32 0.2, %v241_v19  ;;  %vm257_vm15 = vcmp.gt.f32.partialorder %v241_v19, 0.0 }
  0xd0   :  { %v283_v25 = vmul.f32 0.2, %v251_v20  ;;  %vm267_vm0 = vcmp.gt.f32.partialorder %v251_v20, 0.0 }
  0xd1   :  { %v289_v32 = vsel %vm257_vm15, %v241_v19, %v273_v24 }
  0xd2   :  { %v299_v35 = vsel %vm267_vm0, %v251_v20, %v283_v25 }
  0xd4   :  { %v209_v21 = vpop.f32.mrf.mxu0 }
  0xd5   :  { %v234_v22 = vpop.f32.mrf.mxu1  ;;  %v242_v26 = vadd.f32 %v209_v21, %v786_v28 }
  0xd6   :  { %v252_v29 = vadd.f32 %v234_v22, %v789_v33 }
  0xd7   :  { %vm258_vm1 = vcmp.gt.f32.partialorder %v242_v26, 0.0  ;;  %v274_v30 = vmul.f32 0.2, %v242_v26 }
  0xd8   :  { %vm268_vm2 = vcmp.gt.f32.partialorder %v252_v29, 0.0  ;;  %v284_v31 = vmul.f32 0.2, %v252_v29 }
  0xd9   :  { %v290_v34 = vsel %vm258_vm1, %v242_v26, %v274_v30 }
  0xda   :  { %v300_v23 = vsel %vm268_vm2, %v252_v29, %v284_v31  ;;  %v303_v36 = vpack.c.bf16 %v290_v34, %v289_v32 }
  0xdb   :  { %v308_v27 = vpack.c.bf16 %v300_v23, %v299_v35 }
  0xdc   :  { %594 = vmatmul.msk.bf16.gmra.mxu2 %vm341_vm10, %v303_v36 }
  0xdd   :  { %599 = vmatmul.msk.bf16.gmra.mxu3 %vm341_vm10, %v308_v27 }
  0xec   :  { %595 = vmatmul.msk.bf16.gmra.mxu2 %vm341_vm10, %v304_v46 }
  0xfc   :  { %596 = vmatmul.msk.bf16.gmra.mxu2 %vm341_vm10, %v305_v41 }
 0x13f   :  { %v375_v28 = vpop.f32.mrf.mxu2 }
 0x140   :  { %v400_v33 = vpop.f32.mrf.mxu3  ;;  %v419_v7 = vadd.f32 %v835_v42, %v375_v28 }
 0x141   :  { %v429_v39 = vadd.f32 %v835_v42, %v400_v33 }
 0x142   :  { %v451_v18 = vmul.f32 0.2, %v419_v7  ;;  %vm435_vm14 = vcmp.gt.f32.partialorder %v419_v7, 0.0 }
 0x143   :  { %v461_v52 = vmul.f32 0.2, %v429_v39  ;;  %vm445_vm4 = vcmp.gt.f32.partialorder %v429_v39, 0.0 }
 0x144   :  { %v467_v23 = vsel %vm435_vm14, %v419_v7, %v451_v18 }
 0x145   :  { %v477_v59 = vsel %vm445_vm4, %v429_v39, %v461_v52 }
 0x146   :  { %v500_v5 = vsel %vm341_vm10, %v477_v59, -inf }
 0x147   :  { %v831_v37 = vpop.f32.mrf.mxu2 }
 0x148   :  { %v402_v38 = vpop.f32.mrf.mxu3  ;;  %v420_v31 = vadd.f32 %v835_v42, %v831_v37 }
 0x149   :  { %v430_v60 = vadd.f32 %v835_v42, %v402_v38 }
 0x14a   :  { %v452_v37 = vmul.f32 0.2, %v420_v31  ;;  %vm436_vm2 = vcmp.gt.f32.partialorder %v420_v31, 0.0 }
 0x14b   :  { %v462_v8 = vmul.f32 0.2, %v430_v60  ;;  %vm446_vm8 = vcmp.gt.f32.partialorder %v430_v60, 0.0 }
 0x14d   :  { %v478_v19 = vsel %vm446_vm8, %v430_v60, %v462_v8 }
 0x14e   :  { %v507_v32 = vsel %vm341_vm10, %v478_v19, -inf }
 0x14f   :  { %v380_v44 = vpop.f32.mrf.mxu2 }
 0x150   :  { %v405_v45 = vpop.f32.mrf.mxu3  ;;  %v421_v46 = vadd.f32 %v835_v42, %v380_v44 }
 0x151   :  { %v431_v17 = vadd.f32 %v835_v42, %v405_v45 }
 0x152   :  { %v453_v40 = vmul.f32 0.2, %v421_v46  ;;  %vm437_vm3 = vcmp.gt.f32.partialorder %v421_v46, 0.0 }
 0x153   :  { %v463_v34 = vmul.f32 0.2, %v431_v17  ;;  %vm447_vm15 = vcmp.gt.f32.partialorder %v431_v17, 0.0 }
 0x154   :  { %v469_v55 = vsel %vm437_vm3, %v421_v46, %v453_v40 }
 0x155   :  { %v497_v62 = vsel %vm341_vm10, %v469_v55, -inf }
 0x157   :  { %v382_v47 = vpop.f32.mrf.mxu2 }
 0x158   :  { %v833_v48 = vpop.f32.mrf.mxu3  ;;  %v422_v54 = vadd.f32 %v835_v42, %v382_v47  ;;  %v483_v47 = vsel %vm341_vm10, %v467_v23, -inf }
 0x15a   :  { %v454_v63 = vmul.f32 0.2, %v422_v54  ;;  %vm438_vm7 = vcmp.gt.f32.partialorder %v422_v54, 0.0 }
 0x15c   :  { %v470_v11 = vsel %vm438_vm7, %v422_v54, %v454_v63  ;;  %v468_v54 = vsel %vm436_vm2, %v420_v31, %v452_v37 }
 0x15d   :  { %v504_v22 = vsel %vm341_vm10, %v470_v11, -inf  ;;  %v490_v60 = vsel %vm341_vm10, %v468_v54, -inf }
 0x15f   :  { %v385_v49 = vpop.f32.mrf.mxu2 }
 0x160   :  { %v410_v43 = vpop.f32.mrf.mxu3  ;;  %v423_v0 = vadd.f32 %v835_v42, %v385_v49  ;;  %v479_v49 = vsel %vm447_vm15, %v431_v17, %v463_v34 }
 0x161   :  { %v433_v41 = vadd.f32 %v835_v42, %v410_v43  ;;  %v488_v52 = vsel %vm341_vm10, %v479_v49, -inf }
 0x162   :  { %v455_v12 = vmul.f32 0.2, %v423_v0  ;;  %vm439_vm11 = vcmp.gt.f32.partialorder %v423_v0, 0.0 }
 0x163   :  { %v465_v56 = vmul.f32 0.2, %v433_v41  ;;  %vm449_vm6 = vcmp.gt.f32.partialorder %v433_v41, 0.0 }
 0x164   :  { %v471_v25 = vsel %vm439_vm11, %v423_v0, %v455_v12 }
 0x165   :  { %v481_v2 = vsel %vm449_vm6, %v433_v41, %v465_v56  ;;  %v484_v28 = vsel %vm341_vm10, %v471_v25, -inf }
 0x166   :  { %v502_v13 = vsel %vm341_vm10, %v481_v2, -inf  ;;  %v485_v43 = vmax.f32 %v483_v47, %v484_v28 }
 0x167   :  { %v387_v50 = vpop.f32.mrf.mxu2 }
 0x168   :  { %v412_v58 = vpop.f32.mrf.mxu3  ;;  %v424_v26 = vadd.f32 %v835_v42, %v387_v50  ;;  %v432_v50 = vadd.f32 %v835_v42, %v833_v48 }
 0x169   :  { %v434_v3 = vadd.f32 %v835_v42, %v412_v58 }
 0x16a   :  { %v456_v38 = vmul.f32 0.2, %v424_v26  ;;  %vm440_vm1 = vcmp.gt.f32.partialorder %v424_v26, 0.0  ;;  %v464_v55 = vmul.f32 0.2, %v432_v50  ;;  %vm448_vm3 = vcmp.gt.f32.partialorder %v432_v50, 0.0 }
 0x16b   :  { %v466_v14 = vmul.f32 0.2, %v434_v3  ;;  %vm450_vm12 = vcmp.gt.f32.partialorder %v434_v3, 0.0 }
 0x16c   :  { %v472_v41 = vsel %vm440_vm1, %v424_v26, %v456_v38 }
 0x16d   :  { %v482_v29 = vsel %vm450_vm12, %v434_v3, %v466_v14 }
 0x16e   :  { %v509_v33 = vsel %vm341_vm10, %v482_v29, -inf }
 0x16f   :  { %v390_v51 = vpop.f32.mrf.mxu2 }
 0x170   :  { %v425_v53 = vadd.f32 %v835_v42, %v390_v51 }
 0x172   :  { %vm441_vm5 = vcmp.gt.f32.partialorder %v425_v53, 0.0  ;;  %v457_v57 = vmul.f32 0.2, %v425_v53 }
 0x174   :  { %v473_v61 = vsel %vm441_vm5, %v425_v53, %v457_v57  ;;  %v491_v57 = vsel %vm341_vm10, %v472_v41, -inf }
 0x175   :  { %v498_v1 = vsel %vm341_vm10, %v473_v61, -inf  ;;  %v480_v61 = vsel %vm448_vm3, %v432_v50, %v464_v55 }
 0x176   :  { %v499_v4 = vmax.f32 %v497_v62, %v498_v1  ;;  %v492_v62 = vmax.f32 %v490_v60, %v491_v57 }
 0x177   :  { %v392_v6 = vpop.f32.mrf.mxu2 }
 0x178   :  { %v501_v9 = vmax.f32 %v499_v4, %v500_v5  ;;  %v426_v10 = vadd.f32 %v835_v42, %v392_v6 }
 0x17a   :  { %v503_v15 = vmax.f32 %v501_v9, %v502_v13  ;;  %vm442_vm9 = vcmp.gt.f32.partialorder %v426_v10, 0.0  ;;  %v458_v16 = vmul.f32 0.2, %v426_v10 }
 0x17c   :  { %v513_v20 = vpack.c.bf16 %v503_v15, %v503_v15  ;;  %v474_v21 = vsel %vm442_vm9, %v426_v10, %v458_v16 }
 0x17d   :  { %v505_v24 = vsel %vm341_vm10, %v474_v21, -inf }
 0x17e   :  { %518 = vst.msk [vmem:[%s894_s7 + $0x8] sm:$0xf] %vm515_vm13, %v513_v20  ;;  %v506_v30 = vmax.f32 %v504_v22, %v505_v24 }
 0x17f   :  { %v395_v35 = vpop.f32.mrf.mxu2 }
 0x180   :  { %v508_v36 = vmax.f32 %v506_v30, %v507_v32  ;;  %v427_v27 = vadd.f32 %v835_v42, %v395_v35 }
 0x182   :  { %v510_v44 = vmax.f32 %v508_v36, %v509_v33  ;;  %vm443_vm0 = vcmp.gt.f32.partialorder %v427_v27, 0.0  ;;  %v459_v45 = vmul.f32 0.2, %v427_v27 }
 0x184   :  { %v514_v46 = vpack.c.bf16 %v510_v44, %v510_v44  ;;  %v475_v39 = vsel %vm443_vm0, %v427_v27, %v459_v45 }
 0x185   :  { %v486_v40 = vsel %vm341_vm10, %v475_v39, -inf }
 0x186   :  { %519 = vst.msk [vmem:[%s894_s7 + $0xc] sm:$0xf] %vm515_vm13, %v514_v46  ;;  %v487_v51 = vmax.f32 %v485_v43, %v486_v40 }
 0x187   :  { %v397_v53 = vpop.f32.mrf.mxu2 }
 0x188   :  { %v489_v56 = vmax.f32 %v487_v51, %v488_v52  ;;  %v428_v48 = vadd.f32 %v835_v42, %v397_v53  ;;  %v495_v42 = vsel %vm341_vm10, %v480_v61, -inf }
 0x18a   :  { %v511_v58 = vpack.c.bf16 %v489_v56, %v489_v56  ;;  %vm444_vm4 = vcmp.gt.f32.partialorder %v428_v48, 0.0  ;;  %v460_v59 = vmul.f32 0.2, %v428_v48 }
 0x18c   :  { %516 = vst.msk [vmem:[%s894_s7] sm:$0xf] %vm515_vm13, %v511_v58  ;;  %v476_v63 = vsel %vm444_vm4, %v428_v48, %v460_v59 }
 0x18d   :  { %v493_v0 = vsel %vm341_vm10, %v476_v63, -inf }
 0x18e   :  { %v494_v1 = vmax.f32 %v492_v62, %v493_v0 }
 0x190   :  { %v496_v2 = vmax.f32 %v494_v1, %v495_v42 }
 0x192   :  { %v512_v3 = vpack.c.bf16 %v496_v2, %v496_v2 }
 0x194   :  { %517 = vst.msk [vmem:[%s894_s7 + $0x4] sm:$0xf] %vm515_vm13, %v512_v3 }
 0x195   :  { %524 = vsyncpa [#allocation3], 1 }
 0x196   :  { %525 = vsyncpa [#allocation5], 1 }

// kernel: dgcnn_semseg_forward.9
= control target key start
LH: loop header
LB: loop body
LE: loop exit
PB: predicated region body
PF: predicated region fallthrough
CT: control target
= control target key end

     0   :  { %12 = vsyncpa [#allocation3], 0  ;;  %s976_s0 = inlined_call_operand.vmem [shape: bf16[4,32,64], index: 0, kind: input, shape index: {}]   ;;  %s977_s1 = inlined_call_operand.vmem [shape: bf16[32,64], index: 1, kind: input, shape index: {}]   ;;  %s978_s2 = inlined_call_operand.vmem [shape: bf16[64,64], index: 2, kind: input, shape index: {}]   ;;  %s979_s3 = inlined_call_operand.vmem [shape: bf16[64,64], index: 3, kind: input, shape index: {}]   ;;  %s980_s4 = inlined_call_operand.hbm [shape: f32[1,64], index: 4, kind: input, shape index: {}]   ;;  %s981_s5 = inlined_call_operand.vmem [shape: bf16[64,64], index: 5, kind: input, shape index: {}]   ;;  %s982_s6 = inlined_call_operand.hbm [shape: f32[1,64], index: 6, kind: input, shape index: {}]   ;;  %s983_s7 = inlined_call_operand.vmem [shape: bf16[32,64], index: 7, kind: output, shape index: {}]  }
   0x1   :  { %s27_s26 = sshll.u32 %s980_s4, 4  ;;  %s28_s26 = int_to_ptr.hbm [resolvable:$true] %s27_s26 }
   0x2   :  { %13 = vsyncpa [#allocation5], 0  ;;  %s776_s27 = smov [#allocation2]   ;;  %s40_s8 = sshll.u32 %s982_s6, 4  ;;  %s41_s8 = int_to_ptr.hbm [resolvable:$true] %s40_s8 }
   0x3   :  { %s29_s28 = sshll.u32 %s776_s27, 4  ;;  %s777_s9 = smov [#allocation4]   ;;  %s30_s28 = int_to_ptr.vmem [resolvable:$true] %s29_s28 }
   0x4   :  { %32 = dma.hbm_to_vmem [thread:$0]  %s28_s26, 16, %s30_s28, [#allocation3]  }
   0x5   :  { %s42_s10 = sshll.u32 %s777_s9, 4  ;;  %s43_s10 = int_to_ptr.vmem [resolvable:$true] %s42_s10 }
   0x6   :  { %45 = dma.hbm_to_vmem [thread:$0]  %s41_s8, 16, %s43_s10, [#allocation5]  }
   0x7   :  { %772 = dma.done.wait [#allocation3], 16  }
   0x8   :  { %773 = vsyncadd [#allocation3], 4294967280 }
   0x9   :  { %774 = dma.done.wait [#allocation5], 16  }
   0xa   :  { %775 = vsyncadd [#allocation5], 4294967280  ;;  %v691_v0 = vld [vmem:[%s979_s3 + $0x18] sm:$0xff]  ;;  %v690_v2 = vld [vmem:[%s979_s3 + $0x10] sm:$0xff]  ;;  %vm105_vm0 = vcmask 523264  }
   0xb   :  { %v703_v1 = vld [vmem:[%s978_s2 + $0x18] sm:$0xff]  ;;  %116 = vmatpush.bf16.msra.mxu0 %v691_v0  ;;  %708 = vmatpush.bf16.msra.mxu3 %v691_v0  ;;  %v702_v3 = vld [vmem:[%s978_s2 + $0x10] sm:$0xff]  ;;  %v689_v4 = vld [vmem:[%s979_s3 + $0x8] sm:$0xff] }
   0xc   :  { %247 = vmatpush.bf16.msra.mxu1 %v703_v1  ;;  %v701_v5 = vld [vmem:[%s978_s2 + $0x8] sm:$0xff]  ;;  %v688_v6 = vld [vmem:[%s979_s3] sm:$0xff]  ;;  %v698_v13 = vld [vmem:[%s976_s0 + $0x30] sm:$0xff] }
   0xd   :  { %v700_v7 = vld [vmem:[%s978_s2] sm:$0xff]  ;;  %v687_v9 = vld [vmem:[%s977_s1 + $0x8] sm:$0xff]  ;;  %v694_v14 = vld [vmem:[%s976_s0 + $0x10] sm:$0xff] }
   0xe   :  { %v686_v8 = vld [vmem:[%s977_s1] sm:$0xff]  ;;  %v697_v11 = vld [vmem:[%s976_s0 + $0x28] sm:$0xff]  ;;  %v699_v15 = vld [vmem:[%s976_s0 + $0x38] sm:$0xff] }
   0xf   :  { %117 = vmatpush.bf16.msra.mxu0 %v690_v2  ;;  %709 = vmatpush.bf16.msra.mxu3 %v690_v2  ;;  %v692_v10 = vld [vmem:[%s976_s0] sm:$0xff]  ;;  %v693_v12 = vld [vmem:[%s976_s0 + $0x8] sm:$0xff]  ;;  %v695_v16 = vld [vmem:[%s976_s0 + $0x18] sm:$0xff] }
  0x10   :  { %248 = vmatpush.bf16.msra.mxu1 %v702_v3  ;;  %v696_v17 = vld [vmem:[%s976_s0 + $0x20] sm:$0xff]  ;;  %v707_v18 = vld [vmem:[%s981_s5 + $0x18] sm:$0xff]  ;;  %v706_v19 = vld [vmem:[%s981_s5 + $0x10] sm:$0xff] }
  0x11   :  { %716 = vmatpush.bf16.msra.mxu2 %v707_v18  ;;  %v705_v20 = vld [vmem:[%s981_s5 + $0x8] sm:$0xff]  ;;  %v704_v21 = vld [vmem:[%s981_s5] sm:$0xff] }
  0x12   :  { %v722_v22 = vld [vmem:[#allocation2] ss:$0 sm:$0xff] }
  0x13   :  { %118 = vmatpush.bf16.msra.mxu0 %v689_v4  ;;  %710 = vmatpush.bf16.msra.mxu3 %v689_v4 }
  0x14   :  { %249 = vmatpush.bf16.msra.mxu1 %v701_v5 }
  0x15   :  { %717 = vmatpush.bf16.msra.mxu2 %v706_v19 }
  0x17   :  { %119 = vmatpush.bf16.msra.mxu0 %v688_v6  ;;  %711 = vmatpush.bf16.msra.mxu3 %v688_v6 }
  0x18   :  { %250 = vmatpush.bf16.msra.mxu1 %v700_v7 }
  0x19   :  { %718 = vmatpush.bf16.msra.mxu2 %v705_v20 }
  0x1a   :  { %604 = vmatmul.msk.bf16.vlgmr.msra.gmra.mxu0 %vm105_vm0, %v686_v8  ;;  %605 = vmatmul.msk.bf16.vlgmr.msra.gmra.mxu3 %vm105_vm0, %v687_v9 }
  0x1b   :  { %712 = vmatpush.bf16.msrb.mxu3 %v703_v1  ;;  %654 = vmatmul.msk.bf16.vlgmr.msra.gmra.mxu1 %vm105_vm0, %v692_v10 }
  0x1c   :  { %424 = vmatpush.bf16.msrb.mxu0 %v707_v18 }
  0x1d   :  { %719 = vmatpush.bf16.msra.mxu2 %v704_v21 }
  0x1f   :  { %713 = vmatpush.bf16.msrb.mxu3 %v702_v3 }
  0x20   :  { %425 = vmatpush.bf16.msrb.mxu0 %v706_v19 }
  0x23   :  { %714 = vmatpush.bf16.msrb.mxu3 %v701_v5 }
  0x24   :  { %426 = vmatpush.bf16.msrb.mxu0 %v705_v20 }
  0x27   :  { %715 = vmatpush.bf16.msrb.mxu3 %v700_v7 }
  0x28   :  { %427 = vmatpush.bf16.msrb.mxu0 %v704_v21 }
  0x2a   :  { %659 = vmatmul.msk.bf16.vlgmr.msrb.gmra.mxu3 %vm105_vm0, %v697_v11 }
  0x2b   :  { %655 = vmatmul.msk.bf16.gmra.mxu1 %vm105_vm0, %v693_v12 }
  0x3a   :  { %660 = vmatmul.msk.bf16.gmra.mxu3 %vm105_vm0, %v698_v13 }
  0x3b   :  { %656 = vmatmul.msk.bf16.gmra.mxu1 %vm105_vm0, %v694_v14 }
  0x4a   :  { %661 = vmatmul.msk.bf16.gmra.mxu3 %vm105_vm0, %v699_v15 }
  0x4b   :  { %657 = vmatmul.msk.bf16.gmra.mxu1 %vm105_vm0, %v695_v16 }
  0x5b   :  { %658 = vmatmul.msk.bf16.gmra.mxu1 %vm105_vm0, %v696_v17 }
  0x97   :  { %v121_v23 = vpop.f32.mrf.mxu0 }
  0x98   :  { %v252_v24 = vpop.f32.mrf.mxu1  ;;  %v900_v25 = vadd.f32 %v722_v22, %v121_v23 }
  0x9a   :  { %v292_v27 = vadd.f32 %v252_v24, %v900_v25 }
  0x9c   :  { %v324_v31 = vmul.f32 0.2, %v292_v27  ;;  %vm308_vm1 = vcmp.gt.f32.partialorder %v292_v27, 0.0 }
  0x9d   :  { %v126_v26 = vpop.f32.mrf.mxu3 }
  0x9e   :  { %v340_v35 = vsel %vm308_vm1, %v292_v27, %v324_v31  ;;  %v127_v39 = vadd.f32 %v722_v22, %v126_v26 }
  0x9f   :  { %v123_v28 = vpop.f32.mrf.mxu0 }
  0xa0   :  { %v903_v29 = vadd.f32 %v722_v22, %v123_v28  ;;  %v254_v30 = vpop.f32.mrf.mxu1 }
  0xa2   :  { %v293_v32 = vadd.f32 %v254_v30, %v903_v29 }
  0xa4   :  { %vm309_vm2 = vcmp.gt.f32.partialorder %v293_v32, 0.0  ;;  %v325_v33 = vmul.f32 0.2, %v293_v32 }
  0xa5   :  { %v128_v34 = vpop.f32.mrf.mxu3 }
  0xa6   :  { %v341_v36 = vsel %vm309_vm2, %v293_v32, %v325_v33  ;;  %v129_v40 = vadd.f32 %v722_v22, %v128_v34 }
  0xa7   :  { %v356_v37 = vpack.c.bf16 %v341_v36, %v340_v35 }
  0xa8   :  { %v257_v38 = vpop.f32.mrf.mxu1 }
  0xa9   :  { %678 = vmatmul.msk.bf16.vlgmr.msrb.gmra.mxu0 %vm105_vm0, %v356_v37  ;;  %v294_v42 = vadd.f32 %v257_v38, %v127_v39 }
  0xab   :  { %v326_v46 = vmul.f32 0.2, %v294_v42  ;;  %vm310_vm3 = vcmp.gt.f32.partialorder %v294_v42, 0.0 }
  0xad   :  { %v277_v41 = vpop.f32.mrf.mxu3  ;;  %v342_v52 = vsel %vm310_vm3, %v294_v42, %v326_v46 }
  0xae   :  { %v302_v43 = vadd.f32 %v277_v41, %v127_v39 }
  0xb0   :  { %v259_v44 = vpop.f32.mrf.mxu1  ;;  %v334_v48 = vmul.f32 0.2, %v302_v43  ;;  %vm318_vm5 = vcmp.gt.f32.partialorder %v302_v43, 0.0 }
  0xb1   :  { %v295_v45 = vadd.f32 %v259_v44, %v129_v40 }
  0xb2   :  { %v350_v56 = vsel %vm318_vm5, %v302_v43, %v334_v48 }
  0xb3   :  { %vm311_vm4 = vcmp.gt.f32.partialorder %v295_v45, 0.0  ;;  %v327_v47 = vmul.f32 0.2, %v295_v45 }
  0xb5   :  { %v279_v49 = vpop.f32.mrf.mxu3  ;;  %v343_v50 = vsel %vm311_vm4, %v295_v45, %v327_v47 }
  0xb6   :  { %v303_v51 = vadd.f32 %v279_v49, %v129_v40  ;;  %v357_v53 = vpack.c.bf16 %v343_v50, %v342_v52  ;;  %v924_v49 = vld [vmem:[#allocation4] ss:$0 sm:$0xff] }
  0xb8   :  { %vm319_vm6 = vcmp.gt.f32.partialorder %v303_v51, 0.0  ;;  %v335_v54 = vmul.f32 0.2, %v303_v51  ;;  %v262_v55 = vpop.f32.mrf.mxu1 }
  0xb9   :  { %679 = vmatmul.msk.bf16.gmra.mxu0 %vm105_vm0, %v357_v53  ;;  %v296_v60 = vadd.f32 %v262_v55, %v900_v25 }
  0xba   :  { %v351_v57 = vsel %vm319_vm6, %v303_v51, %v335_v54 }
  0xbb   :  { %v361_v58 = vpack.c.bf16 %v351_v57, %v350_v56  ;;  %v328_v0 = vmul.f32 0.2, %v296_v60  ;;  %vm312_vm7 = vcmp.gt.f32.partialorder %v296_v60, 0.0 }
  0xbd   :  { %v282_v59 = vpop.f32.mrf.mxu3  ;;  %v344_v6 = vsel %vm312_vm7, %v296_v60, %v328_v0 }
  0xbe   :  { %v304_v61 = vadd.f32 %v282_v59, %v900_v25 }
  0xc0   :  { %v264_v62 = vpop.f32.mrf.mxu1  ;;  %v336_v2 = vmul.f32 0.2, %v304_v61  ;;  %vm320_vm9 = vcmp.gt.f32.partialorder %v304_v61, 0.0 }
  0xc1   :  { %v297_v63 = vadd.f32 %v264_v62, %v903_v29 }
  0xc2   :  { %v352_v10 = vsel %vm320_vm9, %v304_v61, %v336_v2  ;;  %vm569_vm9 = vcmask 519168  }
  0xc3   :  { %vm313_vm8 = vcmp.gt.f32.partialorder %v297_v63, 0.0  ;;  %v329_v1 = vmul.f32 0.2, %v297_v63 }
  0xc5   :  { %v284_v3 = vpop.f32.mrf.mxu3  ;;  %v345_v4 = vsel %vm313_vm8, %v297_v63, %v329_v1 }
  0xc6   :  { %v305_v5 = vadd.f32 %v284_v3, %v903_v29  ;;  %v358_v7 = vpack.c.bf16 %v345_v4, %v344_v6 }
  0xc8   :  { %vm321_vm10 = vcmp.gt.f32.partialorder %v305_v5, 0.0  ;;  %v337_v8 = vmul.f32 0.2, %v305_v5  ;;  %v267_v9 = vpop.f32.mrf.mxu1 }
  0xc9   :  { %680 = vmatmul.msk.bf16.gmra.mxu0 %vm105_vm0, %v358_v7  ;;  %v298_v13 = vadd.f32 %v267_v9, %v127_v39 }
  0xca   :  { %v353_v11 = vsel %vm321_vm10, %v305_v5, %v337_v8 }
  0xcb   :  { %v362_v12 = vpack.c.bf16 %v353_v11, %v352_v10  ;;  %v330_v16 = vmul.f32 0.2, %v298_v13  ;;  %vm314_vm11 = vcmp.gt.f32.partialorder %v298_v13, 0.0 }
  0xcd   :  { %v287_v14 = vpop.f32.mrf.mxu3  ;;  %v346_v21 = vsel %vm314_vm11, %v298_v13, %v330_v16 }
  0xce   :  { %v306_v18 = vadd.f32 %v287_v14, %v127_v39 }
  0xd0   :  { %v269_v15 = vpop.f32.mrf.mxu1  ;;  %v338_v23 = vmul.f32 0.2, %v306_v18  ;;  %vm322_vm13 = vcmp.gt.f32.partialorder %v306_v18, 0.0 }
  0xd1   :  { %v299_v17 = vadd.f32 %v269_v15, %v129_v40 }
  0xd2   :  { %v354_v30 = vsel %vm322_vm13, %v306_v18, %v338_v23 }
  0xd3   :  { %vm315_vm12 = vcmp.gt.f32.partialorder %v299_v17, 0.0  ;;  %v331_v19 = vmul.f32 0.2, %v299_v17 }
  0xd5   :  { %v289_v20 = vpop.f32.mrf.mxu3  ;;  %v347_v22 = vsel %vm315_vm12, %v299_v17, %v331_v19 }
  0xd6   :  { %v307_v24 = vadd.f32 %v289_v20, %v129_v40  ;;  %v359_v26 = vpack.c.bf16 %v347_v22, %v346_v21 }
  0xd8   :  { %vm323_vm14 = vcmp.gt.f32.partialorder %v307_v24, 0.0  ;;  %v339_v27 = vmul.f32 0.2, %v307_v24  ;;  %v272_v28 = vpop.f32.mrf.mxu1  ;;  %681 = vmatmul.msk.bf16.vlgmr.msra.gmra.mxu2 %vm105_vm0, %v359_v26 }
  0xd9   :  { %v300_v33 = vadd.f32 %v272_v28, %v900_v25 }
  0xda   :  { %v355_v31 = vsel %vm323_vm14, %v307_v24, %v339_v27 }
  0xdb   :  { %v363_v32 = vpack.c.bf16 %v355_v31, %v354_v30  ;;  %v332_v35 = vmul.f32 0.2, %v300_v33  ;;  %vm316_vm15 = vcmp.gt.f32.partialorder %v300_v33, 0.0 }
  0xdd   :  { %v348_v38 = vsel %vm316_vm15, %v300_v33, %v332_v35 }
  0xe0   :  { %v274_v34 = vpop.f32.mrf.mxu1 }
  0xe1   :  { %v301_v36 = vadd.f32 %v274_v34, %v903_v29 }
  0xe3   :  { %vm317_vm1 = vcmp.gt.f32.partialorder %v301_v36, 0.0  ;;  %v333_v37 = vmul.f32 0.2, %v301_v36 }
  0xe5   :  { %v349_v39 = vsel %vm317_vm1, %v301_v36, %v333_v37 }
  0xe6   :  { %v360_v40 = vpack.c.bf16 %v349_v39, %v348_v38 }
  0xe8   :  { %682 = vmatmul.msk.bf16.gmra.mxu2 %vm105_vm0, %v360_v40 }
  0xf8   :  { %683 = vmatmul.msk.bf16.gmra.mxu2 %vm105_vm0, %v361_v58 }
 0x108   :  { %684 = vmatmul.msk.bf16.gmra.mxu2 %vm105_vm0, %v362_v12 }
 0x118   :  { %685 = vmatmul.msk.bf16.gmra.mxu2 %vm105_vm0, %v363_v32 }
 0x126   :  { %v429_v41 = vpop.f32.mrf.mxu0 }
 0x127   :  { %v473_v51 = vadd.f32 %v924_v49, %v429_v41 }
 0x129   :  { %v505_v55 = vmul.f32 0.2, %v473_v51  ;;  %vm489_vm3 = vcmp.gt.f32.partialorder %v473_v51, 0.0 }
 0x12b   :  { %v521_v60 = vsel %vm489_vm3, %v473_v51, %v505_v55 }
 0x12c   :  { %v537_v2 = vsel %vm105_vm0, %v521_v60, -inf }
 0x12e   :  { %v431_v42 = vpop.f32.mrf.mxu0 }
 0x12f   :  { %v474_v61 = vadd.f32 %v924_v49, %v431_v42 }
 0x131   :  { %vm490_vm5 = vcmp.gt.f32.partialorder %v474_v61, 0.0  ;;  %v506_v5 = vmul.f32 0.2, %v474_v61 }
 0x133   :  { %v522_v14 = vsel %vm490_vm5, %v474_v61, %v506_v5 }
 0x134   :  { %v544_v22 = vsel %vm105_vm0, %v522_v14, -inf }
 0x136   :  { %v434_v29 = vpop.f32.mrf.mxu0 }
 0x137   :  { %v475_v15 = vadd.f32 %v924_v49, %v434_v29 }
 0x139   :  { %v507_v27 = vmul.f32 0.2, %v475_v15  ;;  %vm491_vm11 = vcmp.gt.f32.partialorder %v475_v15, 0.0 }
 0x13b   :  { %v523_v37 = vsel %vm491_vm11, %v475_v15, %v507_v27 }
 0x13e   :  { %v922_v45 = vpop.f32.mrf.mxu0 }
 0x13f   :  { %v476_v38 = vadd.f32 %v924_v49, %v922_v45 }
 0x141   :  { %vm492_vm1 = vcmp.gt.f32.partialorder %v476_v38, 0.0 }
 0x146   :  { %v439_v47 = vpop.f32.mrf.mxu0 }
 0x147   :  { %v477_v50 = vadd.f32 %v924_v49, %v439_v47 }
 0x149   :  { %v509_v54 = vmul.f32 0.2, %v477_v50  ;;  %vm493_vm2 = vcmp.gt.f32.partialorder %v477_v50, 0.0 }
 0x14b   :  { %v525_v58 = vsel %vm493_vm2, %v477_v50, %v509_v54 }
 0x14c   :  { %v538_v0 = vsel %vm105_vm0, %v525_v58, -inf }
 0x14d   :  { %v539_v7 = vmax.f32 %v537_v2, %v538_v0 }
 0x14e   :  { %v441_v56 = vpop.f32.mrf.mxu0 }
 0x14f   :  { %v478_v59 = vadd.f32 %v924_v49, %v441_v56 }
 0x151   :  { %v510_v3 = vmul.f32 0.2, %v478_v59  ;;  %vm494_vm6 = vcmp.gt.f32.partialorder %v478_v59, 0.0 }
 0x153   :  { %v526_v10 = vsel %vm494_vm6, %v478_v59, %v510_v3 }
 0x154   :  { %v545_v20 = vsel %vm105_vm0, %v526_v10, -inf }
 0x155   :  { %v546_v31 = vmax.f32 %v544_v22, %v545_v20 }
 0x15b   :  { %v444_v25 = vpop.f32.mrf.mxu2 }
 0x15c   :  { %v479_v11 = vadd.f32 %v924_v49, %v444_v25 }
 0x15e   :  { %v511_v23 = vmul.f32 0.2, %v479_v11  ;;  %vm495_vm10 = vcmp.gt.f32.partialorder %v479_v11, 0.0 }
 0x160   :  { %v527_v33 = vsel %vm495_vm10, %v479_v11, %v511_v23 }
 0x161   :  { %v552_v42 = vsel %vm105_vm0, %v527_v33, -inf }
 0x163   :  { %v920_v43 = vpop.f32.mrf.mxu2 }
 0x164   :  { %v480_v34 = vadd.f32 %v924_v49, %v920_v43 }
 0x166   :  { %vm496_vm14 = vcmp.gt.f32.partialorder %v480_v34, 0.0 }
 0x16b   :  { %v449_v44 = vpop.f32.mrf.mxu2 }
 0x16c   :  { %v481_v52 = vadd.f32 %v924_v49, %v449_v44  ;;  %v551_v44 = vsel %vm105_vm0, %v523_v37, -inf }
 0x16d   :  { %v553_v51 = vmax.f32 %v551_v44, %v552_v42 }
 0x16e   :  { %v513_v57 = vmul.f32 0.2, %v481_v52  ;;  %vm497_vm4 = vcmp.gt.f32.partialorder %v481_v52, 0.0 }
 0x170   :  { %v529_v62 = vsel %vm497_vm4, %v481_v52, %v513_v57 }
 0x171   :  { %v540_v6 = vsel %vm105_vm0, %v529_v62, -inf }
 0x172   :  { %v541_v12 = vmax.f32 %v539_v7, %v540_v6 }
 0x173   :  { %v451_v46 = vpop.f32.mrf.mxu2 }
 0x174   :  { %v482_v63 = vadd.f32 %v924_v49, %v451_v46  ;;  %v512_v46 = vmul.f32 0.2, %v480_v34 }
 0x176   :  { %v514_v8 = vmul.f32 0.2, %v482_v63  ;;  %vm498_vm8 = vcmp.gt.f32.partialorder %v482_v63, 0.0 }
 0x178   :  { %v530_v18 = vsel %vm498_vm8, %v482_v63, %v514_v8 }
 0x179   :  { %v547_v28 = vsel %vm105_vm0, %v530_v18, -inf }
 0x17a   :  { %v548_v35 = vmax.f32 %v546_v31, %v547_v28 }
 0x17b   :  { %v454_v48 = vpop.f32.mrf.mxu2 }
 0x17c   :  { %v483_v16 = vadd.f32 %v924_v49, %v454_v48  ;;  %v508_v48 = vmul.f32 0.2, %v476_v38 }
 0x17e   :  { %v515_v30 = vmul.f32 0.2, %v483_v16  ;;  %vm499_vm13 = vcmp.gt.f32.partialorder %v483_v16, 0.0  ;;  %v524_v57 = vsel %vm492_vm1, %v476_v38, %v508_v48 }
 0x17f   :  { %v558_v0 = vsel %vm105_vm0, %v524_v57, -inf }
 0x180   :  { %v531_v41 = vsel %vm499_vm13, %v483_v16, %v515_v30 }
 0x181   :  { %v554_v50 = vsel %vm105_vm0, %v531_v41, -inf }
 0x182   :  { %v555_v54 = vmax.f32 %v553_v51, %v554_v50 }
 0x183   :  { %v456_v53 = vpop.f32.mrf.mxu2 }
 0x184   :  { %v484_v39 = vadd.f32 %v924_v49, %v456_v53  ;;  %v528_v53 = vsel %vm496_vm14, %v480_v34, %v512_v46 }
 0x185   :  { %v559_v60 = vsel %vm105_vm0, %v528_v53, -inf }
 0x186   :  { %v516_v45 = vmul.f32 0.2, %v484_v39  ;;  %vm500_vm2 = vcmp.gt.f32.partialorder %v484_v39, 0.0  ;;  %v560_v2 = vmax.f32 %v558_v0, %v559_v60 }
 0x188   :  { %v532_v58 = vsel %vm500_vm2, %v484_v39, %v516_v45 }
 0x18b   :  { %v459_v1 = vpop.f32.mrf.mxu2 }
 0x18c   :  { %v485_v4 = vadd.f32 %v924_v49, %v459_v1  ;;  %v561_v1 = vsel %vm105_vm0, %v532_v58, -inf }
 0x18e   :  { %vm501_vm7 = vcmp.gt.f32.partialorder %v485_v4, 0.0  ;;  %v517_v9 = vmul.f32 0.2, %v485_v4 }
 0x190   :  { %v533_v13 = vsel %vm501_vm7, %v485_v4, %v517_v9  ;;  %v562_v4 = vmax.f32 %v560_v2, %v561_v1 }
 0x191   :  { %v542_v17 = vsel %vm105_vm0, %v533_v13, -inf }
 0x192   :  { %v543_v19 = vmax.f32 %v541_v12, %v542_v17 }
 0x193   :  { %v461_v21 = vpop.f32.mrf.mxu2 }
 0x194   :  { %v565_v24 = vpack.c.bf16 %v543_v19, %v543_v19  ;;  %v486_v26 = vadd.f32 %v924_v49, %v461_v21 }
 0x196   :  { %570 = vst.msk [vmem:[%s983_s7] sm:$0xf] %vm569_vm9, %v565_v24  ;;  %vm502_vm12 = vcmp.gt.f32.partialorder %v486_v26, 0.0  ;;  %v518_v32 = vmul.f32 0.2, %v486_v26 }
 0x198   :  { %v534_v36 = vsel %vm502_vm12, %v486_v26, %v518_v32 }
 0x199   :  { %v549_v40 = vsel %vm105_vm0, %v534_v36, -inf }
 0x19a   :  { %v550_v25 = vmax.f32 %v548_v35, %v549_v40 }
 0x19b   :  { %v464_v29 = vpop.f32.mrf.mxu2 }
 0x19c   :  { %v566_v47 = vpack.c.bf16 %v550_v25, %v550_v25  ;;  %v487_v43 = vadd.f32 %v924_v49, %v464_v29 }
 0x19e   :  { %571 = vst.msk [vmem:[%s983_s7 + $0x4] sm:$0xf] %vm569_vm9, %v566_v47  ;;  %vm503_vm15 = vcmp.gt.f32.partialorder %v487_v43, 0.0  ;;  %v519_v52 = vmul.f32 0.2, %v487_v43 }
 0x1a0   :  { %v535_v55 = vsel %vm503_vm15, %v487_v43, %v519_v52 }
 0x1a1   :  { %v556_v56 = vsel %vm105_vm0, %v535_v55, -inf }
 0x1a2   :  { %v557_v59 = vmax.f32 %v555_v54, %v556_v56 }
 0x1a3   :  { %v466_v61 = vpop.f32.mrf.mxu2 }
 0x1a4   :  { %v567_v62 = vpack.c.bf16 %v557_v59, %v557_v59  ;;  %v488_v63 = vadd.f32 %v924_v49, %v466_v61 }
 0x1a6   :  { %572 = vst.msk [vmem:[%s983_s7 + $0x8] sm:$0xf] %vm569_vm9, %v567_v62  ;;  %vm504_vm3 = vcmp.gt.f32.partialorder %v488_v63, 0.0  ;;  %v520_v3 = vmul.f32 0.2, %v488_v63 }
 0x1a8   :  { %v536_v5 = vsel %vm504_vm3, %v488_v63, %v520_v3 }
 0x1a9   :  { %v563_v6 = vsel %vm105_vm0, %v536_v5, -inf }
 0x1aa   :  { %v564_v7 = vmax.f32 %v562_v4, %v563_v6 }
 0x1ac   :  { %v568_v8 = vpack.c.bf16 %v564_v7, %v564_v7 }
 0x1ae   :  { %573 = vst.msk [vmem:[%s983_s7 + $0xc] sm:$0xf] %vm569_vm9, %v568_v8 }
 0x1af   :  { %578 = vsyncpa [#allocation3], 1 }
 0x1b0   :  { %579 = vsyncpa [#allocation5], 1 }

// kernel: dgcnn_semseg_forward.11
= control target key start
LH: loop header
LB: loop body
LE: loop exit
PB: predicated region body
PF: predicated region fallthrough
CT: control target
= control target key end

     0   :  { %vm71_vm0 = vcmask 523264   ;;  %vm354_vm8 = vcmask 519168   ;;  %s610_s3 = inlined_call_operand.vmem [shape: bf16[64,64], index: 3, kind: input, shape index: {}]   ;;  %s611_s2 = inlined_call_operand.vmem [shape: bf16[64,64], index: 2, kind: input, shape index: {}]   ;;  %s612_s4 = inlined_call_operand.vmem [shape: f32[1,64], index: 4, kind: input, shape index: {}]   ;;  %s613_s1 = inlined_call_operand.vmem [shape: bf16[32,64], index: 1, kind: input, shape index: {}]   ;;  %s614_s0 = inlined_call_operand.vmem [shape: bf16[4,32,64], index: 0, kind: input, shape index: {}]   ;;  %s615_s5 = inlined_call_operand.vmem [shape: bf16[32,64], index: 5, kind: output, shape index: {}]  }
   0x1   :  { %v450_v0 = vld [vmem:[%s610_s3 + $0x18] sm:$0xff]  ;;  %v449_v2 = vld [vmem:[%s610_s3 + $0x10] sm:$0xff]  ;;  %v448_v4 = vld [vmem:[%s610_s3 + $0x8] sm:$0xff] }
   0x2   :  { %v462_v1 = vld [vmem:[%s611_s2 + $0x18] sm:$0xff]  ;;  %82 = vmatpush.bf16.msra.mxu0 %v450_v0  ;;  %v461_v3 = vld [vmem:[%s611_s2 + $0x10] sm:$0xff]  ;;  %v460_v5 = vld [vmem:[%s611_s2 + $0x8] sm:$0xff] }
   0x3   :  { %213 = vmatpush.bf16.msra.mxu1 %v462_v1  ;;  %463 = vmatpush.bf16.msra.mxu2 %v462_v1  ;;  %v447_v6 = vld [vmem:[%s610_s3] sm:$0xff]  ;;  %v454_v10 = vld [vmem:[%s614_s0 + $0x18] sm:$0xff]  ;;  %v457_v11 = vld [vmem:[%s614_s0 + $0x30] sm:$0xff] }
   0x4   :  { %464 = vmatpush.bf16.msra.mxu3 %v462_v1  ;;  %v459_v7 = vld [vmem:[%s611_s2] sm:$0xff]  ;;  %v446_v12 = vld [vmem:[%s613_s1 + $0x8] sm:$0xff]  ;;  %v458_v15 = vld [vmem:[%s614_s0 + $0x38] sm:$0xff] }
   0x5   :  { %v445_v8 = vld [vmem:[%s613_s1] sm:$0xff]  ;;  %v452_v13 = vld [vmem:[%s614_s0 + $0x8] sm:$0xff]  ;;  %v453_v16 = vld [vmem:[%s614_s0 + $0x10] sm:$0xff] }
   0x6   :  { %83 = vmatpush.bf16.msra.mxu0 %v449_v2  ;;  %v451_v9 = vld [vmem:[%s614_s0] sm:$0xff]  ;;  %v456_v17 = vld [vmem:[%s614_s0 + $0x28] sm:$0xff] }
   0x7   :  { %214 = vmatpush.bf16.msra.mxu1 %v461_v3  ;;  %465 = vmatpush.bf16.msra.mxu2 %v461_v3  ;;  %v455_v14 = vld [vmem:[%s614_s0 + $0x20] sm:$0xff] }
   0x8   :  { %466 = vmatpush.bf16.msra.mxu3 %v461_v3  ;;  %v471_v24 = vld [vmem:[%s612_s4] ss:$0 sm:$0xff] }
   0xa   :  { %84 = vmatpush.bf16.msra.mxu0 %v448_v4 }
   0xb   :  { %215 = vmatpush.bf16.msra.mxu1 %v460_v5  ;;  %467 = vmatpush.bf16.msra.mxu2 %v460_v5 }
   0xc   :  { %468 = vmatpush.bf16.msra.mxu3 %v460_v5 }
   0xe   :  { %85 = vmatpush.bf16.msra.mxu0 %v447_v6 }
   0xf   :  { %216 = vmatpush.bf16.msra.mxu1 %v459_v7  ;;  %469 = vmatpush.bf16.msra.mxu2 %v459_v7 }
  0x10   :  { %470 = vmatpush.bf16.msra.mxu3 %v459_v7 }
  0x11   :  { %387 = vmatmul.msk.bf16.vlgmr.msra.gmra.mxu0 %vm71_vm0, %v445_v8 }
  0x12   :  { %437 = vmatmul.msk.bf16.vlgmr.msra.gmra.mxu1 %vm71_vm0, %v451_v9  ;;  %440 = vmatmul.msk.bf16.vlgmr.msra.gmra.mxu2 %vm71_vm0, %v454_v10 }
  0x13   :  { %443 = vmatmul.msk.bf16.vlgmr.msra.gmra.mxu3 %vm71_vm0, %v457_v11 }
  0x21   :  { %388 = vmatmul.msk.bf16.gmra.mxu0 %vm71_vm0, %v446_v12 }
  0x22   :  { %438 = vmatmul.msk.bf16.gmra.mxu1 %vm71_vm0, %v452_v13  ;;  %441 = vmatmul.msk.bf16.gmra.mxu2 %vm71_vm0, %v455_v14 }
  0x23   :  { %444 = vmatmul.msk.bf16.gmra.mxu3 %vm71_vm0, %v458_v15 }
  0x32   :  { %439 = vmatmul.msk.bf16.gmra.mxu1 %vm71_vm0, %v453_v16  ;;  %442 = vmatmul.msk.bf16.gmra.mxu2 %vm71_vm0, %v456_v17 }
  0x8e   :  { %v87_v18 = vpop.f32.mrf.mxu0 }
  0x8f   :  { %v218_v19 = vpop.f32.mrf.mxu1  ;;  %v88_v27 = vadd.f32 %v471_v24, %v87_v18 }
  0x91   :  { %v258_v30 = vadd.f32 %v218_v19, %v88_v27 }
  0x93   :  { %v290_v36 = vmul.f32 0.2, %v258_v30  ;;  %vm274_vm1 = vcmp.gt.f32.partialorder %v258_v30, 0.0 }
  0x95   :  { %v233_v20 = vpop.f32.mrf.mxu2  ;;  %v306_v43 = vsel %vm274_vm1, %v258_v30, %v290_v36 }
  0x96   :  { %v89_v22 = vpop.f32.mrf.mxu0  ;;  %v248_v23 = vpop.f32.mrf.mxu3  ;;  %v322_v54 = vsel %vm71_vm0, %v306_v43, -inf }
  0x97   :  { %v220_v21 = vpop.f32.mrf.mxu1  ;;  %v90_v31 = vadd.f32 %v471_v24, %v89_v22  ;;  %v270_v32 = vadd.f32 %v248_v23, %v88_v27 }
  0x99   :  { %v259_v37 = vadd.f32 %v220_v21, %v90_v31  ;;  %v302_v38 = vmul.f32 0.2, %v270_v32  ;;  %vm286_vm2 = vcmp.gt.f32.partialorder %v270_v32, 0.0 }
  0x9b   :  { %v291_v44 = vmul.f32 0.2, %v259_v37  ;;  %v318_v45 = vsel %vm286_vm2, %v270_v32, %v302_v38  ;;  %vm275_vm3 = vcmp.gt.f32.partialorder %v259_v37, 0.0 }
  0x9c   :  { %v327_v55 = vsel %vm71_vm0, %v318_v45, -inf }
  0x9d   :  { %v235_v25 = vpop.f32.mrf.mxu2  ;;  %v307_v57 = vsel %vm275_vm3, %v259_v37, %v291_v44 }
  0x9e   :  { %v92_v28 = vpop.f32.mrf.mxu0  ;;  %v250_v29 = vpop.f32.mrf.mxu3  ;;  %v329_v3 = vsel %vm71_vm0, %v307_v57, -inf }
  0x9f   :  { %v223_v26 = vpop.f32.mrf.mxu1  ;;  %v93_v34 = vadd.f32 %v471_v24, %v92_v28  ;;  %v271_v56 = vadd.f32 %v250_v29, %v90_v31 }
  0xa1   :  { %v264_v39 = vadd.f32 %v233_v20, %v93_v34  ;;  %v260_v40 = vadd.f32 %v223_v26, %v93_v34  ;;  %vm287_vm9 = vcmp.gt.f32.partialorder %v271_v56, 0.0  ;;  %v303_v4 = vmul.f32 0.2, %v271_v56 }
  0xa3   :  { %v296_v48 = vmul.f32 0.2, %v264_v39  ;;  %v292_v49 = vmul.f32 0.2, %v260_v40  ;;  %vm276_vm4 = vcmp.gt.f32.partialorder %v260_v40, 0.0  ;;  %vm280_vm5 = vcmp.gt.f32.partialorder %v264_v39, 0.0 }
  0xa5   :  { %v238_v33 = vpop.f32.mrf.mxu2  ;;  %v308_v60 = vsel %vm276_vm4, %v260_v40, %v292_v49  ;;  %v312_v61 = vsel %vm280_vm5, %v264_v39, %v296_v48 }
  0xa6   :  { %v266_v41 = vadd.f32 %v238_v33, %v88_v27  ;;  %v94_v42 = vpop.f32.mrf.mxu0  ;;  %v253_v46 = vpop.f32.mrf.mxu3  ;;  %v336_v6 = vsel %vm71_vm0, %v308_v60, -inf  ;;  %v337_v7 = vsel %vm71_vm0, %v312_v61, -inf }
  0xa7   :  { %v225_v35 = vpop.f32.mrf.mxu1  ;;  %v569_v50 = vadd.f32 %v471_v24, %v94_v42  ;;  %v272_v58 = vadd.f32 %v253_v46, %v93_v34  ;;  %v338_v23 = vmax.f32 %v336_v6, %v337_v7 }
  0xa8   :  { %v298_v52 = vmul.f32 0.2, %v266_v41  ;;  %vm282_vm6 = vcmp.gt.f32.partialorder %v266_v41, 0.0 }
  0xa9   :  { %v265_v62 = vadd.f32 %v235_v25, %v569_v50  ;;  %v261_v0 = vadd.f32 %v225_v35, %v569_v50  ;;  %vm288_vm10 = vcmp.gt.f32.partialorder %v272_v58, 0.0  ;;  %v304_v12 = vmul.f32 0.2, %v272_v58 }
  0xaa   :  { %v314_v63 = vsel %vm282_vm6, %v266_v41, %v298_v52  ;;  %v319_v35 = vsel %vm287_vm9, %v271_v56, %v303_v4 }
  0xab   :  { %v325_v10 = vsel %vm71_vm0, %v314_v63, -inf  ;;  %v297_v11 = vmul.f32 0.2, %v265_v62  ;;  %vm277_vm11 = vcmp.gt.f32.partialorder %v261_v0, 0.0  ;;  %v293_v19 = vmul.f32 0.2, %v261_v0 }
  0xac   :  { %vm281_vm14 = vcmp.gt.f32.partialorder %v265_v62, 0.0  ;;  %v320_v24 = vsel %vm288_vm10, %v272_v58, %v304_v12  ;;  %v334_v46 = vsel %vm71_vm0, %v319_v35, -inf }
  0xad   :  { %v240_v47 = vpop.f32.mrf.mxu2  ;;  %v313_v32 = vsel %vm281_vm14, %v265_v62, %v297_v11  ;;  %v341_v36 = vsel %vm71_vm0, %v320_v24, -inf }
  0xae   :  { %v267_v1 = vadd.f32 %v240_v47, %v90_v31  ;;  %v255_v17 = vpop.f32.mrf.mxu3  ;;  %v344_v44 = vsel %vm71_vm0, %v313_v32, -inf }
  0xaf   :  { %v228_v51 = vpop.f32.mrf.mxu1  ;;  %v273_v25 = vadd.f32 %v255_v17, %v569_v50 }
  0xb0   :  { %v262_v53 = vadd.f32 %v228_v51, %v88_v27  ;;  %v299_v15 = vmul.f32 0.2, %v267_v1  ;;  %vm283_vm12 = vcmp.gt.f32.partialorder %v267_v1, 0.0 }
  0xb1   :  { %v305_v40 = vmul.f32 0.2, %v273_v25  ;;  %vm289_vm1 = vcmp.gt.f32.partialorder %v273_v25, 0.0 }
  0xb2   :  { %vm278_vm7 = vcmp.gt.f32.partialorder %v262_v53, 0.0  ;;  %v294_v59 = vmul.f32 0.2, %v262_v53  ;;  %v315_v27 = vsel %vm283_vm12, %v267_v1, %v299_v15 }
  0xb3   :  { %v332_v39 = vsel %vm71_vm0, %v315_v27, -inf  ;;  %v321_v52 = vsel %vm289_vm1, %v273_v25, %v305_v40 }
  0xb4   :  { %v310_v2 = vsel %vm278_vm7, %v262_v53, %v294_v59  ;;  %v348_v56 = vsel %vm71_vm0, %v321_v52, -inf }
  0xb5   :  { %v323_v5 = vsel %vm71_vm0, %v310_v2, -inf  ;;  %v243_v9 = vpop.f32.mrf.mxu2 }
  0xb6   :  { %v324_v8 = vmax.f32 %v322_v54, %v323_v5  ;;  %v268_v13 = vadd.f32 %v243_v9, %v93_v34 }
  0xb7   :  { %v230_v14 = vpop.f32.mrf.mxu1 }
  0xb8   :  { %v326_v16 = vmax.f32 %v324_v8, %v325_v10  ;;  %v263_v18 = vadd.f32 %v230_v14, %v90_v31  ;;  %vm284_vm13 = vcmp.gt.f32.partialorder %v268_v13, 0.0  ;;  %v300_v20 = vmul.f32 0.2, %v268_v13 }
  0xb9   :  { %v309_v31 = vsel %vm277_vm11, %v261_v0, %v293_v19 }
  0xba   :  { %v328_v21 = vmax.f32 %v326_v16, %v327_v55  ;;  %vm279_vm15 = vcmp.gt.f32.partialorder %v263_v18, 0.0  ;;  %v295_v22 = vmul.f32 0.2, %v263_v18  ;;  %v316_v26 = vsel %vm284_vm13, %v268_v13, %v300_v20 }
  0xbb   :  { %v339_v29 = vsel %vm71_vm0, %v316_v26, -inf  ;;  %v343_v43 = vsel %vm71_vm0, %v309_v31, -inf }
  0xbc   :  { %v350_v28 = vpack.c.bf16 %v328_v21, %v328_v21  ;;  %v311_v30 = vsel %vm279_vm15, %v263_v18, %v295_v22  ;;  %v340_v33 = vmax.f32 %v338_v23, %v339_v29  ;;  %v345_v51 = vmax.f32 %v343_v43, %v344_v44 }
  0xbd   :  { %v330_v34 = vsel %vm71_vm0, %v311_v30, -inf  ;;  %v245_v38 = vpop.f32.mrf.mxu2 }
  0xbe   :  { %355 = vst.msk [vmem:[%s615_s5] sm:$0xf] %vm354_vm8, %v350_v28  ;;  %v331_v37 = vmax.f32 %v329_v3, %v330_v34  ;;  %v342_v41 = vmax.f32 %v340_v33, %v341_v36  ;;  %v269_v42 = vadd.f32 %v245_v38, %v569_v50 }
  0xc0   :  { %v333_v45 = vmax.f32 %v331_v37, %v332_v39  ;;  %v352_v47 = vpack.c.bf16 %v342_v41, %v342_v41  ;;  %vm285_vm2 = vcmp.gt.f32.partialorder %v269_v42, 0.0  ;;  %v301_v48 = vmul.f32 0.2, %v269_v42 }
  0xc2   :  { %v335_v49 = vmax.f32 %v333_v45, %v334_v46  ;;  %357 = vst.msk [vmem:[%s615_s5 + $0x8] sm:$0xf] %vm354_vm8, %v352_v47  ;;  %v317_v50 = vsel %vm285_vm2, %v269_v42, %v301_v48 }
  0xc3   :  { %v346_v54 = vsel %vm71_vm0, %v317_v50, -inf }
  0xc4   :  { %v351_v53 = vpack.c.bf16 %v335_v49, %v335_v49  ;;  %v347_v55 = vmax.f32 %v345_v51, %v346_v54 }
  0xc6   :  { %356 = vst.msk [vmem:[%s615_s5 + $0x4] sm:$0xf] %vm354_vm8, %v351_v53  ;;  %v349_v57 = vmax.f32 %v347_v55, %v348_v56 }
  0xc8   :  { %v353_v58 = vpack.c.bf16 %v349_v57, %v349_v57 }
  0xca   :  { %358 = vst.msk [vmem:[%s615_s5 + $0xc] sm:$0xf] %vm354_vm8, %v353_v58 }

// kernel: dgcnn_semseg_forward.12
= control target key start
LH: loop header
LB: loop body
LE: loop exit
PB: predicated region body
PF: predicated region fallthrough
CT: control target
= control target key end

     0   :  { %s1867_s12 = smov 0   ;;  %s1869_s13 = smov 0   ;;  %s2537_s0 = inlined_call_operand.vmem [shape: bf16[2,16,192], index: 0, kind: input, shape index: {}]   ;;  %s2538_s1 = inlined_call_operand.vmem [shape: bf16[192,1024], index: 1, kind: input, shape index: {}]   ;;  %s2539_s2 = inlined_call_operand.vmem [shape: f32[1,1024], index: 2, kind: input, shape index: {}]   ;;  %s2540_s3 = inlined_call_operand.vmem [shape: f32[2,1,1024], index: 3, kind: output, shape index: {}]  }
   0x1   :  { %s1871_s14 = smov 0  }
   0x2 LB: > { %s32_s15 = sadd.s32 1, %s1841_s13  ;;  %p1293_p0 = scmp.ge.s32.totalorder %s1845_s14, 1  ;;  %s1845_s14 = sphi %s1871_s14, %s13_s14   ;;  %s1841_s13 = sphi %s1869_s13, %s2542_s13   ;;  %s1837_s12 = sphi %s1867_s12, %s2541_s12  }
   0x3   : > { %p34_p1 = scmp.ge.s32.totalorder %s32_s15, 2  ;;  %p170_p2 = scmp.lt.s32.totalorder %s1845_s14, 3 }
   0x5   : > { %s2544_s15 = smov (%p34_p1, %s32_s15), 0  ;;  %p171_p3 = pnand %p1293_p0, %p170_p2 }
   0x6   : > { %p205_p4 = scmp.lt.s32.totalorder (!%p171_p3), %s1837_s12, 1 }
   0x7   : > { %174 = sbr.rel (%p171_p3) target bundleno = 278 (0x116), region = 32 }
   0xc   : > { %v1531_v0 = vld [vmem:[%s2538_s1 + $0x1c0] sm:$0xf]  ;;  %v1758_v5 = vld [vmem:[%s2538_s1 + $0x1c4] sm:$0xf]  ;;  %v1539_v44 = vld [vmem:[%s2538_s1 + $0x1c8] sm:$0xf] }
   0xd   : > { %v1762_v1 = vld [vmem:[%s2538_s1 + $0x1dc] sm:$0xf0]  ;;  %v1533_v6 = vld [vmem:[%s2538_s1 + $0x1e0] sm:$0xf0]  ;;  %v1763_v46 = vld [vmem:[%s2538_s1 + $0x1e4] sm:$0xf0] }
   0xe   : > { %v1659_v2 = vld [vmem:[%s2538_s1 + $0x2c0] sm:$0xf]  ;;  %v1532_v3 = vor.u32 %v1762_v1, %v1531_v0  ;;  %v1536_v8 = vor.u32 %v1758_v5, %v1533_v6  ;;  %v1790_v9 = vld [vmem:[%s2538_s1 + $0x2c4] sm:$0xf]  ;;  %v1667_v47 = vld [vmem:[%s2538_s1 + $0x2c8] sm:$0xf]  ;;  %v1540_v54 = vor.u32 %v1763_v46, %v1539_v44 }
   0xf   : > { %v1794_v4 = vld [vmem:[%s2538_s1 + $0x2dc] sm:$0xf0]  ;;  %v1661_v10 = vld [vmem:[%s2538_s1 + $0x2e0] sm:$0xf0]  ;;  %v1795_v48 = vld [vmem:[%s2538_s1 + $0x2e4] sm:$0xf0] }
  0x10   : > { %v1660_v7 = vor.u32 %v1794_v4, %v1659_v2  ;;  %v1499_v11 = vld [vmem:[%s2538_s1 + $0x180] sm:$0xf]  ;;  %839 = vmatpush.bf16.msra.mxu0 %v1532_v3  ;;  %v1664_v12 = vor.u32 %v1790_v9, %v1661_v10  ;;  %867 = vmatpush.bf16.msra.mxu2 %v1536_v8  ;;  %v1750_v18 = vld [vmem:[%s2538_s1 + $0x184] sm:$0xf]  ;;  %v1668_v57 = vor.u32 %v1795_v48, %v1667_v47  ;;  %v1507_v58 = vld [vmem:[%s2538_s1 + $0x188] sm:$0xf] }
  0x11   : > { %v1754_v13 = vld [vmem:[%s2538_s1 + $0x19c] sm:$0xf0]  ;;  %v1501_v19 = vld [vmem:[%s2538_s1 + $0x1a0] sm:$0xf0]  ;;  %v1755_v59 = vld [vmem:[%s2538_s1 + $0x1a4] sm:$0xf0] }
  0x12   : > { %v1627_v14 = vld [vmem:[%s2538_s1 + $0x280] sm:$0xf]  ;;  %857 = vmatpush.bf16.msra.mxu1 %v1660_v7  ;;  %v1500_v16 = vor.u32 %v1754_v13, %v1499_v11  ;;  %v1782_v20 = vld [vmem:[%s2538_s1 + $0x284] sm:$0xf]  ;;  %885 = vmatpush.bf16.msra.mxu3 %v1664_v12  ;;  %v1504_v21 = vor.u32 %v1750_v18, %v1501_v19  ;;  %s2546_s12 = smov (!%p205_p4, %s1837_s12), 1  ;;  %v1508_v2 = vor.u32 %v1755_v59, %v1507_v58  ;;  %vm835_vm0 = vcmask 523264  }
  0x13   : > { %v1786_v15 = vld [vmem:[%s2538_s1 + $0x29c] sm:$0xf0]  ;;  %v1629_v22 = vld [vmem:[%s2538_s1 + $0x2a0] sm:$0xf0]  ;;  %v1635_v61 = vld [vmem:[%s2538_s1 + $0x288] sm:$0xf] }
  0x14   : > { %v1628_v17 = vor.u32 %v1786_v15, %v1627_v14  ;;  %v1467_v23 = vld [vmem:[%s2538_s1 + $0x140] sm:$0xf]  ;;  %v1632_v25 = vor.u32 %v1782_v20, %v1629_v22  ;;  %v1742_v28 = vld [vmem:[%s2538_s1 + $0x144] sm:$0xf]  ;;  %840 = vmatpush.bf16.msra.mxu0 %v1500_v16  ;;  %868 = vmatpush.bf16.msra.mxu2 %v1504_v21  ;;  %v1787_v63 = vld [vmem:[%s2538_s1 + $0x2a4] sm:$0xf0] }
  0x15   : > { %v1746_v24 = vld [vmem:[%s2538_s1 + $0x15c] sm:$0xf0]  ;;  %v1469_v30 = vld [vmem:[%s2538_s1 + $0x160] sm:$0xf0]  ;;  %s1699_s16 = sshll.u32 %s2546_s12, 4  ;;  %v1636_v9 = vor.u32 %v1787_v63, %v1635_v61 }
  0x16   : > { %v1595_v26 = vld [vmem:[%s2538_s1 + $0x240] sm:$0xf]  ;;  %v1468_v29 = vor.u32 %v1746_v24, %v1467_v23  ;;  %v1774_v31 = vld [vmem:[%s2538_s1 + $0x244] sm:$0xf]  ;;  %858 = vmatpush.bf16.msra.mxu1 %v1628_v17  ;;  %v1472_v34 = vor.u32 %v1742_v28, %v1469_v30  ;;  %886 = vmatpush.bf16.msra.mxu3 %v1632_v25  ;;  %s2039_s23 = scalar_lea.vmem %s2537_s0, %s1699_s16  ;;  %v1475_v5 = vld [vmem:[%s2538_s1 + $0x148] sm:$0xf] }
  0x17   : > { %v1778_v27 = vld [vmem:[%s2538_s1 + $0x25c] sm:$0xf0]  ;;  %v1597_v32 = vld [vmem:[%s2538_s1 + $0x260] sm:$0xf0]  ;;  %v1747_v6 = vld [vmem:[%s2538_s1 + $0x164] sm:$0xf0] }
  0x18   : > { %v1596_v33 = vor.u32 %v1778_v27, %v1595_v26  ;;  %v1435_v35 = vld [vmem:[%s2538_s1 + $0x100] sm:$0xf]  ;;  %v1600_v38 = vor.u32 %v1774_v31, %v1597_v32  ;;  %v1734_v40 = vld [vmem:[%s2538_s1 + $0x104] sm:$0xf]  ;;  %841 = vmatpush.bf16.msra.mxu0 %v1468_v29  ;;  %869 = vmatpush.bf16.msra.mxu2 %v1472_v34  ;;  %v1301_v8 = vld [vmem:[%s2039_s23 + $0x8] sm:$0xf0]  ;;  %v1476_v17 = vor.u32 %v1747_v6, %v1475_v5 }
  0x19   : > { %v1738_v36 = vld [vmem:[%s2538_s1 + $0x11c] sm:$0xf0]  ;;  %v1437_v41 = vld [vmem:[%s2538_s1 + $0x120] sm:$0xf0]  ;;  %v1603_v11 = vld [vmem:[%s2538_s1 + $0x248] sm:$0xf] }
  0x1a   : > { %v1563_v37 = vld [vmem:[%s2538_s1 + $0x200] sm:$0xf]  ;;  %v1766_v42 = vld [vmem:[%s2538_s1 + $0x204] sm:$0xf]  ;;  %v1436_v45 = vor.u32 %v1738_v36, %v1435_v35  ;;  %859 = vmatpush.bf16.msra.mxu1 %v1596_v33  ;;  %v1440_v50 = vor.u32 %v1734_v40, %v1437_v41  ;;  %887 = vmatpush.bf16.msra.mxu3 %v1600_v38  ;;  %v1779_v14 = vld [vmem:[%s2538_s1 + $0x264] sm:$0xf0] }
  0x1b   : > { %v1770_v39 = vld [vmem:[%s2538_s1 + $0x21c] sm:$0xf0]  ;;  %v1565_v43 = vld [vmem:[%s2538_s1 + $0x220] sm:$0xf0]  ;;  %v1443_v20 = vld [vmem:[%s2538_s1 + $0x108] sm:$0xf]  ;;  %v1604_v23 = vor.u32 %v1779_v14, %v1603_v11 }
  0x1c   : > { %v1564_v49 = vor.u32 %v1770_v39, %v1563_v37  ;;  %v1403_v51 = vld [vmem:[%s2538_s1 + $0xc0] sm:$0xf]  ;;  %v1568_v53 = vor.u32 %v1766_v42, %v1565_v43  ;;  %v1726_v55 = vld [vmem:[%s2538_s1 + $0xc4] sm:$0xf]  ;;  %842 = vmatpush.bf16.msra.mxu0 %v1436_v45  ;;  %870 = vmatpush.bf16.msra.mxu2 %v1440_v50  ;;  %v1739_v21 = vld [vmem:[%s2538_s1 + $0x124] sm:$0xf0] }
  0x1d   : > { %v1730_v52 = vld [vmem:[%s2538_s1 + $0xdc] sm:$0xf0]  ;;  %v1405_v56 = vld [vmem:[%s2538_s1 + $0xe0] sm:$0xf0]  ;;  %v1571_v22 = vld [vmem:[%s2538_s1 + $0x208] sm:$0xf]  ;;  %v1444_v32 = vor.u32 %v1739_v21, %v1443_v20 }
  0x1e   : > { %v1404_v60 = vor.u32 %v1730_v52, %v1403_v51  ;;  %860 = vmatpush.bf16.msra.mxu1 %v1564_v49  ;;  %v1408_v62 = vor.u32 %v1726_v55, %v1405_v56  ;;  %v1371_v0 = vld [vmem:[%s2538_s1 + $0x80] sm:$0xf]  ;;  %888 = vmatpush.bf16.msra.mxu3 %v1568_v53  ;;  %v1718_v3 = vld [vmem:[%s2538_s1 + $0x84] sm:$0xf]  ;;  %v1771_v25 = vld [vmem:[%s2538_s1 + $0x224] sm:$0xf0] }
  0x1f   : > { %v1722_v1 = vld [vmem:[%s2538_s1 + $0x9c] sm:$0xf0]  ;;  %v1373_v4 = vld [vmem:[%s2538_s1 + $0xa0] sm:$0xf0]  ;;  %v1547_v26 = vld [vmem:[%s2538_s1 + $0x1d0] sm:$0xf]  ;;  %v1572_v39 = vor.u32 %v1771_v25, %v1571_v22 }
  0x20   : > { %843 = vmatpush.bf16.msra.mxu0 %v1404_v60  ;;  %v1700_v7 = vld [vmem:[%s2039_s23 + $0x4] sm:$0xf]  ;;  %v1372_v10 = vor.u32 %v1722_v1, %v1371_v0  ;;  %871 = vmatpush.bf16.msra.mxu2 %v1408_v62  ;;  %v1376_v13 = vor.u32 %v1718_v3, %v1373_v4  ;;  %v1339_v15 = vld [vmem:[%s2538_s1 + $0x40] sm:$0xf]  ;;  %v1764_v27 = vld [vmem:[%s2538_s1 + $0x1ec] sm:$0xf0] }
  0x21   : > { %v2052_v12 = vor.u32 %v1700_v7, %v1301_v8  ;;  %v1714_v16 = vld [vmem:[%s2538_s1 + $0x5c] sm:$0xf0]  ;;  %v1710_v18 = vld [vmem:[%s2538_s1 + $0x44] sm:$0xf]  ;;  %v1411_v34 = vld [vmem:[%s2538_s1 + $0xc8] sm:$0xf]  ;;  %v1548_v44 = vor.u32 %v1764_v27, %v1547_v26 }
  0x22   : > { %895 = vmatpush.bf16.msrb.mxu1 %v1540_v54  ;;  %913 = vmatpush.bf16.msrb.mxu3 %v1668_v57  ;;  %v1341_v19 = vld [vmem:[%s2538_s1 + $0x60] sm:$0xf0]  ;;  %v1340_v24 = vor.u32 %v1714_v16, %v1339_v15  ;;  %v1307_v29 = vld [vmem:[%s2538_s1] sm:$0xf]  ;;  %v1731_v35 = vld [vmem:[%s2538_s1 + $0xe4] sm:$0xf0] }
  0x23   : > { %1690 = vmatmul.msk.bf16.vlgmr.msra.gmra.mxu3 %vm835_vm0, %v2052_v12  ;;  %1689 = vmatmul.msk.bf16.vlgmr.msra.gmra.mxu1 %vm835_vm0, %v2052_v12  ;;  %v1344_v28 = vor.u32 %v1710_v18, %v1341_v19  ;;  %v1706_v30 = vld [vmem:[%s2538_s1 + $0x1c] sm:$0xf0]  ;;  %v1702_v31 = vld [vmem:[%s2538_s1 + $0x4] sm:$0xf]  ;;  %v1759_v36 = vld [vmem:[%s2538_s1 + $0x1cc] sm:$0xf]  ;;  %v1412_v46 = vor.u32 %v1731_v35, %v1411_v34 }
  0x24   : > { %844 = vmatpush.bf16.msra.mxu0 %v1372_v10  ;;  %872 = vmatpush.bf16.msra.mxu2 %v1376_v13  ;;  %v1309_v33 = vld [vmem:[%s2538_s1 + $0x20] sm:$0xf0]  ;;  %v1541_v37 = vld [vmem:[%s2538_s1 + $0x1e8] sm:$0xf0]  ;;  %v1308_v40 = vor.u32 %v1706_v30, %v1307_v29  ;;  %v1299_v42 = vld [vmem:[%s2039_s23] sm:$0xf] }
  0x25   : > { %v1791_v38 = vld [vmem:[%s2538_s1 + $0x2cc] sm:$0xf]  ;;  %v1701_v43 = vld [vmem:[%s2039_s23 + $0x4] sm:$0xf0]  ;;  %v1312_v45 = vor.u32 %v1702_v31, %v1309_v33  ;;  %v1544_v47 = vor.u32 %v1759_v36, %v1541_v37  ;;  %v1515_v48 = vld [vmem:[%s2538_s1 + $0x190] sm:$0xf] }
  0x26   : > { %896 = vmatpush.bf16.msrb.mxu1 %v1508_v2  ;;  %914 = vmatpush.bf16.msrb.mxu3 %v1636_v9  ;;  %v1669_v41 = vld [vmem:[%s2538_s1 + $0x2e8] sm:$0xf0]  ;;  %v1756_v49 = vld [vmem:[%s2538_s1 + $0x1ac] sm:$0xf0]  ;;  %v1379_v50 = vld [vmem:[%s2538_s1 + $0x88] sm:$0xf]  ;;  %v2132_v52 = vor.u32 %v1701_v43, %v1299_v42 }
  0x27   : > { %v1672_v51 = vor.u32 %v1791_v38, %v1669_v41  ;;  %v1723_v53 = vld [vmem:[%s2538_s1 + $0xa4] sm:$0xf0]  ;;  %v1751_v54 = vld [vmem:[%s2538_s1 + $0x18c] sm:$0xf]  ;;  %v1516_v58 = vor.u32 %v1756_v49, %v1515_v48  ;;  %v1483_v61 = vld [vmem:[%s2538_s1 + $0x150] sm:$0xf] }
  0x28   : > { %845 = vmatpush.bf16.msra.mxu0 %v1340_v24  ;;  %873 = vmatpush.bf16.msra.mxu2 %v1344_v28  ;;  %v1509_v55 = vld [vmem:[%s2538_s1 + $0x1a8] sm:$0xf0]  ;;  %v1380_v59 = vor.u32 %v1723_v53, %v1379_v50  ;;  %v1748_v62 = vld [vmem:[%s2538_s1 + $0x16c] sm:$0xf0]  ;;  %v1347_v63 = vld [vmem:[%s2538_s1 + $0x48] sm:$0xf] }
  0x29   : > { %v1783_v56 = vld [vmem:[%s2538_s1 + $0x28c] sm:$0xf]  ;;  %v1512_v60 = vor.u32 %v1751_v54, %v1509_v55  ;;  %v1715_v1 = vld [vmem:[%s2538_s1 + $0x64] sm:$0xf0]  ;;  %v1484_v6 = vor.u32 %v1748_v62, %v1483_v61  ;;  %v1451_v7 = vld [vmem:[%s2538_s1 + $0x110] sm:$0xf] }
  0x2a   : > { %897 = vmatpush.bf16.msrb.mxu1 %v1476_v17  ;;  %915 = vmatpush.bf16.msrb.mxu3 %v1604_v23  ;;  %v1637_v57 = vld [vmem:[%s2538_s1 + $0x2a8] sm:$0xf0]  ;;  %v1348_v8 = vor.u32 %v1715_v1, %v1347_v63  ;;  %v1740_v10 = vld [vmem:[%s2538_s1 + $0x12c] sm:$0xf0]  ;;  %v1315_v11 = vld [vmem:[%s2538_s1 + $0x8] sm:$0xf] }
  0x2b   : > { %v1640_v0 = vor.u32 %v1783_v56, %v1637_v57  ;;  %v1743_v2 = vld [vmem:[%s2538_s1 + $0x14c] sm:$0xf]  ;;  %v1707_v13 = vld [vmem:[%s2538_s1 + $0x24] sm:$0xf0]  ;;  %v1675_v19 = vld [vmem:[%s2538_s1 + $0x2d0] sm:$0xf]  ;;  %v1452_v21 = vor.u32 %v1740_v10, %v1451_v7 }
  0x2c   : > { %846 = vmatpush.bf16.msra.mxu0 %v1308_v40  ;;  %874 = vmatpush.bf16.msra.mxu2 %v1312_v45  ;;  %v1477_v3 = vld [vmem:[%s2538_s1 + $0x168] sm:$0xf0]  ;;  %v1796_v20 = vld [vmem:[%s2538_s1 + $0x2ec] sm:$0xf0]  ;;  %v1760_v22 = vld [vmem:[%s2538_s1 + $0x1d4] sm:$0xf]  ;;  %v1316_v24 = vor.u32 %v1707_v13, %v1315_v11 }
  0x2d   : > { %v1775_v4 = vld [vmem:[%s2538_s1 + $0x24c] sm:$0xf]  ;;  %v1480_v9 = vor.u32 %v1743_v2, %v1477_v3  ;;  %v1549_v23 = vld [vmem:[%s2538_s1 + $0x1f0] sm:$0xf0]  ;;  %v1419_v26 = vld [vmem:[%s2538_s1 + $0xd0] sm:$0xf]  ;;  %v1676_v29 = vor.u32 %v1796_v20, %v1675_v19 }
  0x2e   : > { %898 = vmatpush.bf16.msrb.mxu1 %v1444_v32  ;;  %916 = vmatpush.bf16.msrb.mxu3 %v1572_v39  ;;  %v1605_v5 = vld [vmem:[%s2538_s1 + $0x268] sm:$0xf0]  ;;  %v1732_v27 = vld [vmem:[%s2538_s1 + $0xec] sm:$0xf0]  ;;  %v1552_v32 = vor.u32 %v1760_v22, %v1549_v23  ;;  %v1752_v36 = vld [vmem:[%s2538_s1 + $0x194] sm:$0xf] }
  0x2f   : > { %847 = vmatmul.bf16.vlgmr.msra.gmra.mxu0 %v2132_v52  ;;  %875 = vmatmul.bf16.vlgmr.msra.gmra.mxu2 %v2132_v52  ;;  %v1608_v14 = vor.u32 %v1775_v4, %v1605_v5  ;;  %v1735_v15 = vld [vmem:[%s2538_s1 + $0x10c] sm:$0xf]  ;;  %v1643_v33 = vld [vmem:[%s2538_s1 + $0x290] sm:$0xf]  ;;  %v1420_v35 = vor.u32 %v1732_v27, %v1419_v26  ;;  %v1517_v37 = vld [vmem:[%s2538_s1 + $0x1b0] sm:$0xf0] }
  0x30   : > { %923 = vmatpush.bf16.msrb.mxu0 %v1544_v47  ;;  %941 = vmatpush.bf16.msrb.mxu2 %v1672_v51  ;;  %v1445_v16 = vld [vmem:[%s2538_s1 + $0x128] sm:$0xf0]  ;;  %v1788_v34 = vld [vmem:[%s2538_s1 + $0x2ac] sm:$0xf0]  ;;  %v1744_v48 = vld [vmem:[%s2538_s1 + $0x154] sm:$0xf] }
  0x31   : > { %v1767_v17 = vld [vmem:[%s2538_s1 + $0x20c] sm:$0xf]  ;;  %v1448_v25 = vor.u32 %v1735_v15, %v1445_v16  ;;  %v1387_v39 = vld [vmem:[%s2538_s1 + $0x90] sm:$0xf]  ;;  %v1644_v41 = vor.u32 %v1788_v34, %v1643_v33  ;;  %v1485_v49 = vld [vmem:[%s2538_s1 + $0x170] sm:$0xf0] }
  0x32   : > { %951 = vmatpush.bf16.msra.mxu3 %v1548_v44  ;;  %899 = vmatpush.bf16.msrb.mxu1 %v1412_v46  ;;  %v1573_v18 = vld [vmem:[%s2538_s1 + $0x228] sm:$0xf0]  ;;  %v1724_v40 = vld [vmem:[%s2538_s1 + $0xac] sm:$0xf0]  ;;  %v1520_v44 = vor.u32 %v1752_v36, %v1517_v37  ;;  %v1488_v57 = vor.u32 %v1744_v48, %v1485_v49  ;;  %v1453_v62 = vld [vmem:[%s2538_s1 + $0x130] sm:$0xf0] }
  0x33   : > { %1691 = vmatmul.msk.bf16.vlgmr.msrb.gmra.mxu3 %vm835_vm0, %v2052_v12  ;;  %v1576_v28 = vor.u32 %v1767_v17, %v1573_v18  ;;  %v1727_v30 = vld [vmem:[%s2538_s1 + $0xcc] sm:$0xf]  ;;  %v1611_v45 = vld [vmem:[%s2538_s1 + $0x250] sm:$0xf]  ;;  %v1388_v47 = vor.u32 %v1724_v40, %v1387_v39  ;;  %v1555_v63 = vld [vmem:[%s2538_s1 + $0x1d8] sm:$0xf] }
  0x34   : > { %924 = vmatpush.bf16.msrb.mxu0 %v1512_v60  ;;  %942 = vmatpush.bf16.msrb.mxu2 %v1640_v0  ;;  %v1413_v31 = vld [vmem:[%s2538_s1 + $0xe8] sm:$0xf0]  ;;  %v1780_v46 = vld [vmem:[%s2538_s1 + $0x26c] sm:$0xf0]  ;;  %v1736_v60 = vld [vmem:[%s2538_s1 + $0x114] sm:$0xf] }
  0x35   : > { %v1416_v38 = vor.u32 %v1727_v30, %v1413_v31  ;;  %v1719_v42 = vld [vmem:[%s2538_s1 + $0x8c] sm:$0xf]  ;;  %v1355_v51 = vld [vmem:[%s2538_s1 + $0x50] sm:$0xf]  ;;  %v1612_v54 = vor.u32 %v1780_v46, %v1611_v45  ;;  %v1765_v0 = vld [vmem:[%s2538_s1 + $0x1f4] sm:$0xf0] }
  0x36   : > { %952 = vmatpush.bf16.msra.mxu3 %v1516_v58  ;;  %900 = vmatpush.bf16.msrb.mxu1 %v1380_v59  ;;  %v1381_v43 = vld [vmem:[%s2538_s1 + $0xa8] sm:$0xf0]  ;;  %v1716_v53 = vld [vmem:[%s2538_s1 + $0x6c] sm:$0xf0]  ;;  %v1792_v7 = vld [vmem:[%s2538_s1 + $0x2d4] sm:$0xf]  ;;  %v1556_v10 = vor.u32 %v1765_v0, %v1555_v63 }
  0x37   : > { %v1384_v50 = vor.u32 %v1719_v42, %v1381_v43  ;;  %v1711_v55 = vld [vmem:[%s2538_s1 + $0x4c] sm:$0xf]  ;;  %v1579_v58 = vld [vmem:[%s2538_s1 + $0x210] sm:$0xf]  ;;  %v1356_v61 = vor.u32 %v1716_v53, %v1355_v51  ;;  %v1761_v11 = vld [vmem:[%s2538_s1 + $0x1dc] sm:$0xf] }
  0x38   : > { %925 = vmatpush.bf16.msrb.mxu0 %v1480_v9  ;;  %943 = vmatpush.bf16.msrb.mxu2 %v1608_v14  ;;  %v1349_v56 = vld [vmem:[%s2538_s1 + $0x68] sm:$0xf0]  ;;  %v1772_v59 = vld [vmem:[%s2538_s1 + $0x22c] sm:$0xf0]  ;;  %v1456_v9 = vor.u32 %v1736_v60, %v1453_v62  ;;  %v1557_v13 = vld [vmem:[%s2538_s1 + $0x1f8] sm:$0xf0] }
  0x39   : > { %v1352_v1 = vor.u32 %v1711_v55, %v1349_v56  ;;  %v1323_v2 = vld [vmem:[%s2538_s1 + $0x10] sm:$0xf]  ;;  %v1703_v4 = vld [vmem:[%s2538_s1 + $0xc] sm:$0xf]  ;;  %v1580_v5 = vor.u32 %v1772_v59, %v1579_v58  ;;  %v1728_v15 = vld [vmem:[%s2538_s1 + $0xd4] sm:$0xf] }
  0x3a   : > { %953 = vmatpush.bf16.msra.mxu3 %v1484_v6  ;;  %901 = vmatpush.bf16.msrb.mxu1 %v1348_v8  ;;  %v1708_v3 = vld [vmem:[%s2538_s1 + $0x2c] sm:$0xf0]  ;;  %v1317_v6 = vld [vmem:[%s2538_s1 + $0x28] sm:$0xf0]  ;;  %v1677_v8 = vld [vmem:[%s2538_s1 + $0x2f0] sm:$0xf0] }
  0x3b   : > { %v1324_v14 = vor.u32 %v1708_v3, %v1323_v2  ;;  %v1421_v16 = vld [vmem:[%s2538_s1 + $0xf0] sm:$0xf0]  ;;  %v1320_v17 = vor.u32 %v1703_v4, %v1317_v6  ;;  %v1680_v18 = vor.u32 %v1792_v7, %v1677_v8  ;;  %v1523_v19 = vld [vmem:[%s2538_s1 + $0x198] sm:$0xf]  ;;  %v1525_v26 = vld [vmem:[%s2538_s1 + $0x1b8] sm:$0xf0] }
  0x3c   : > { %926 = vmatpush.bf16.msrb.mxu0 %v1448_v25  ;;  %944 = vmatpush.bf16.msrb.mxu2 %v1576_v28  ;;  %v1757_v20 = vld [vmem:[%s2538_s1 + $0x1b4] sm:$0xf0]  ;;  %v1784_v22 = vld [vmem:[%s2538_s1 + $0x294] sm:$0xf]  ;;  %v1753_v25 = vld [vmem:[%s2538_s1 + $0x19c] sm:$0xf] }
  0x3d   : > { %v1645_v23 = vld [vmem:[%s2538_s1 + $0x2b0] sm:$0xf0]  ;;  %v1524_v27 = vor.u32 %v1757_v20, %v1523_v19  ;;  %v1491_v31 = vld [vmem:[%s2538_s1 + $0x158] sm:$0xf]  ;;  %v1528_v33 = vor.u32 %v1753_v25, %v1525_v26  ;;  %v1745_v37 = vld [vmem:[%s2538_s1 + $0x15c] sm:$0xf] }
  0x3e   : > { %954 = vmatpush.bf16.msra.mxu3 %v1452_v21  ;;  %902 = vmatpush.bf16.msrb.mxu1 %v1316_v24  ;;  %v1560_v21 = vor.u32 %v1761_v11, %v1557_v13  ;;  %v1424_v24 = vor.u32 %v1728_v15, %v1421_v16  ;;  %v1720_v28 = vld [vmem:[%s2538_s1 + $0x94] sm:$0xf]  ;;  %v1648_v30 = vor.u32 %v1784_v22, %v1645_v23  ;;  %v1459_v43 = vld [vmem:[%s2538_s1 + $0x118] sm:$0xf]  ;;  %v1737_v48 = vld [vmem:[%s2538_s1 + $0x11c] sm:$0xf] }
  0x3f   : > { %1692 = vmatmul.msk.bf16.vlgmr.msrb.gmra.mxu2 %vm835_vm0, %v2052_v12  ;;  %v1776_v34 = vld [vmem:[%s2538_s1 + $0x254] sm:$0xf]  ;;  %v1683_v51 = vld [vmem:[%s2538_s1 + $0x2d8] sm:$0xf]  ;;  %v1793_v60 = vld [vmem:[%s2538_s1 + $0x2dc] sm:$0xf] }
  0x40   : > { %979 = vmatpush.bf16.msra.mxu2 %v1552_v32  ;;  %927 = vmatpush.bf16.msrb.mxu0 %v1416_v38  ;;  %v1749_v32 = vld [vmem:[%s2538_s1 + $0x174] sm:$0xf0]  ;;  %v1493_v38 = vld [vmem:[%s2538_s1 + $0x178] sm:$0xf0]  ;;  %v1712_v40 = vld [vmem:[%s2538_s1 + $0x54] sm:$0xf] }
  0x41   : > { %903 = vmatmul.bf16.vlgmr.msrb.gmra.mxu1 %v2132_v52  ;;  %v1492_v39 = vor.u32 %v1749_v32, %v1491_v31  ;;  %v1496_v45 = vor.u32 %v1745_v37, %v1493_v38  ;;  %v1768_v46 = vld [vmem:[%s2538_s1 + $0x214] sm:$0xf]  ;;  %v1797_v53 = vld [vmem:[%s2538_s1 + $0x2f4] sm:$0xf0]  ;;  %v1429_v2 = vld [vmem:[%s2538_s1 + $0xf8] sm:$0xf0] }
  0x42   : > { %969 = vmatpush.bf16.msra.mxu1 %v1676_v29  ;;  %955 = vmatpush.bf16.msra.mxu3 %v1420_v35  ;;  %v1389_v29 = vld [vmem:[%s2538_s1 + $0xb0] sm:$0xf0]  ;;  %v1733_v59 = vld [vmem:[%s2538_s1 + $0xf4] sm:$0xf0]  ;;  %v1684_v63 = vor.u32 %v1797_v53, %v1683_v51  ;;  %v1653_v11 = vld [vmem:[%s2538_s1 + $0x2b8] sm:$0xf0] }
  0x43   : > { %v1613_v35 = vld [vmem:[%s2538_s1 + $0x270] sm:$0xf0]  ;;  %v1392_v36 = vor.u32 %v1720_v28, %v1389_v29  ;;  %v1725_v6 = vld [vmem:[%s2538_s1 + $0xb4] sm:$0xf0]  ;;  %v1721_v13 = vld [vmem:[%s2538_s1 + $0x9c] sm:$0xf] }
  0x44   : > { %980 = vmatpush.bf16.msra.mxu2 %v1520_v44  ;;  %928 = vmatpush.bf16.msrb.mxu0 %v1384_v50  ;;  %v1616_v42 = vor.u32 %v1776_v34, %v1613_v35  ;;  %v1741_v44 = vld [vmem:[%s2538_s1 + $0x134] sm:$0xf0]  ;;  %v1461_v50 = vld [vmem:[%s2538_s1 + $0x138] sm:$0xf0]  ;;  %v1704_v55 = vld [vmem:[%s2538_s1 + $0x14] sm:$0xf] }
  0x45   : > { %v1325_v56 = vld [vmem:[%s2538_s1 + $0x30] sm:$0xf0]  ;;  %v1464_v62 = vor.u32 %v1737_v48, %v1461_v50  ;;  %v1651_v7 = vld [vmem:[%s2538_s1 + $0x298] sm:$0xf]  ;;  %v1777_v23 = vld [vmem:[%s2538_s1 + $0x25c] sm:$0xf] }
  0x46   : > { %970 = vmatpush.bf16.msra.mxu1 %v1644_v41  ;;  %956 = vmatpush.bf16.msra.mxu3 %v1388_v47  ;;  %v1357_v41 = vld [vmem:[%s2538_s1 + $0x70] sm:$0xf0]  ;;  %v1328_v0 = vor.u32 %v1704_v55, %v1325_v56  ;;  %v1789_v8 = vld [vmem:[%s2538_s1 + $0x2b4] sm:$0xf0]  ;;  %v1713_v25 = vld [vmem:[%s2538_s1 + $0x5c] sm:$0xf] }
  0x47   : > { %v1581_v47 = vld [vmem:[%s2538_s1 + $0x230] sm:$0xf0]  ;;  %v1360_v49 = vor.u32 %v1712_v40, %v1357_v41  ;;  %v1652_v16 = vor.u32 %v1789_v8, %v1651_v7  ;;  %v1717_v19 = vld [vmem:[%s2538_s1 + $0x74] sm:$0xf0]  ;;  %v1365_v26 = vld [vmem:[%s2538_s1 + $0x78] sm:$0xf0] }
  0x48   : > { %981 = vmatpush.bf16.msra.mxu2 %v1488_v57  ;;  %929 = vmatpush.bf16.msrb.mxu0 %v1352_v1  ;;  %v1427_v57 = vld [vmem:[%s2538_s1 + $0xd8] sm:$0xf]  ;;  %v1584_v58 = vor.u32 %v1768_v46, %v1581_v47  ;;  %v1729_v1 = vld [vmem:[%s2538_s1 + $0xdc] sm:$0xf]  ;;  %v1368_v34 = vor.u32 %v1713_v25, %v1365_v26  ;;  %s1296_s16 = sshll.u32 %s2546_s12, 3 }
  0x49   : > { %v1428_v3 = vor.u32 %v1733_v59, %v1427_v57  ;;  %v1619_v20 = vld [vmem:[%s2538_s1 + $0x258] sm:$0xf]  ;;  %v1769_v35 = vld [vmem:[%s2538_s1 + $0x21c] sm:$0xf]  ;;  %s223_s19 = scalar_lea.vmem %s2540_s3, %s1296_s16 }
  0x4a   : > { %971 = vmatpush.bf16.msra.mxu1 %v1612_v54  ;;  %957 = vmatpush.bf16.msra.mxu3 %v1356_v61  ;;  %v1460_v54 = vor.u32 %v1741_v44, %v1459_v43  ;;  %v1685_v61 = vld [vmem:[%s2538_s1 + $0x2f8] sm:$0xf0]  ;;  %v1331_v29 = vld [vmem:[%s2538_s1 + $0x18] sm:$0xf]  ;;  %v2508_v44 = vld [vmem:[%s2539_s2] sm:$0xff] }
  0x4b   : > { %v1688_v4 = vor.u32 %v1793_v60, %v1685_v61  ;;  %v1709_v31 = vld [vmem:[%s2538_s1 + $0x34] sm:$0xf0]  ;;  %v1705_v37 = vld [vmem:[%s2538_s1 + $0x1c] sm:$0xf]  ;;  %v331_v46 = vperm.slane %v2508_v44, 1  ;;  %v332_v8 = vperm.slane %v2508_v44, 2 }
  0x4c   : > { %982 = vmatpush.bf16.msra.mxu2 %v1456_v9  ;;  %930 = vmatpush.bf16.msrb.mxu0 %v1320_v17  ;;  %v1432_v9 = vor.u32 %v1729_v1, %v1429_v2  ;;  %v1363_v17 = vld [vmem:[%s2538_s1 + $0x58] sm:$0xf]  ;;  %v1333_v38 = vld [vmem:[%s2538_s1 + $0x38] sm:$0xf0] }
  0x4d   : > { %v1587_v32 = vld [vmem:[%s2538_s1 + $0x218] sm:$0xf] }
  0x4e   : > { %972 = vmatpush.bf16.msra.mxu1 %v1580_v5  ;;  %958 = vmatpush.bf16.msra.mxu3 %v1324_v14  ;;  %v1395_v5 = vld [vmem:[%s2538_s1 + $0x98] sm:$0xf]  ;;  %v1397_v14 = vld [vmem:[%s2538_s1 + $0xb8] sm:$0xf0] }
  0x4f   : > { %931 = vmatmul.bf16.vlgmr.msrb.gmra.mxu0 %v2132_v52  ;;  %v1396_v15 = vor.u32 %v1725_v6, %v1395_v5  ;;  %v1400_v22 = vor.u32 %v1721_v13, %v1397_v14  ;;  %v330_v5 = vperm.slane %v2508_v44, 0 }
  0x50   : > { %1035 = vmatpush.bf16.msra.mxu0 %v1560_v21  ;;  %983 = vmatpush.bf16.msra.mxu2 %v1424_v24  ;;  %v1781_v21 = vld [vmem:[%s2538_s1 + $0x274] sm:$0xf0]  ;;  %v1621_v24 = vld [vmem:[%s2538_s1 + $0x278] sm:$0xf0] }
  0x51   : > { %959 = vmatmul.bf16.vlgmr.msra.gmra.mxu3 %v2132_v52  ;;  %1693 = vmatmul.msk.bf16.vlgmr.msra.gmra.mxu1 %vm835_vm0, %v2052_v12  ;;  %v1620_v28 = vor.u32 %v1781_v21, %v1619_v20 }
  0x52   : > { %1007 = vmatpush.bf16.msrb.mxu1 %v1556_v10  ;;  %997 = vmatpush.bf16.msrb.mxu3 %v1680_v18  ;;  %v1785_v10 = vld [vmem:[%s2538_s1 + $0x29c] sm:$0xf] }
  0x53   : > { %v1656_v18 = vor.u32 %v1785_v10, %v1653_v11  ;;  %v333_v10 = vperm.slane %v2508_v44, 3 }
  0x54   : > { %1036 = vmatpush.bf16.msra.mxu0 %v1528_v33  ;;  %984 = vmatpush.bf16.msra.mxu2 %v1392_v36  ;;  %v1773_v33 = vld [vmem:[%s2538_s1 + $0x234] sm:$0xf0]  ;;  %v1589_v36 = vld [vmem:[%s2538_s1 + $0x238] sm:$0xf0] }
  0x55   : > { %v1588_v40 = vor.u32 %v1773_v33, %v1587_v32  ;;  %v1592_v41 = vor.u32 %v1769_v35, %v1589_v36 }
  0x56   : > { %1008 = vmatpush.bf16.msrb.mxu1 %v1524_v27  ;;  %998 = vmatpush.bf16.msrb.mxu3 %v1648_v30  ;;  %v1364_v27 = vor.u32 %v1717_v19, %v1363_v17  ;;  %v1624_v30 = vor.u32 %v1777_v23, %v1621_v24  ;;  %v335_v17 = vperm.slane %v2508_v44, 5  ;;  %v334_v19 = vperm.slane %v2508_v44, 4 }
  0x58   : > { %1037 = vmatpush.bf16.msra.mxu0 %v1496_v45  ;;  %985 = vmatpush.bf16.msra.mxu2 %v1360_v49 }
  0x5a   : > { %1009 = vmatpush.bf16.msrb.mxu1 %v1492_v39  ;;  %999 = vmatpush.bf16.msrb.mxu3 %v1616_v42  ;;  %v1332_v39 = vor.u32 %v1709_v31, %v1331_v29  ;;  %v1336_v42 = vor.u32 %v1705_v37, %v1333_v38 }
  0x5c   : > { %1038 = vmatpush.bf16.msra.mxu0 %v1464_v62  ;;  %986 = vmatpush.bf16.msra.mxu2 %v1328_v0 }
  0x5e   : > { %1010 = vmatpush.bf16.msrb.mxu1 %v1460_v54  ;;  %1000 = vmatpush.bf16.msrb.mxu3 %v1584_v58 }
  0x5f   : > { %987 = vmatmul.bf16.vlgmr.msra.gmra.mxu2 %v2132_v52 }
  0x60   : > { %1053 = vmatpush.bf16.msrb.mxu2 %v1688_v4  ;;  %1039 = vmatpush.bf16.msra.mxu0 %v1432_v9 }
  0x61   : > { %1694 = vmatmul.msk.bf16.vlgmr.msrb.gmra.mxu3 %vm835_vm0, %v2052_v12 }
  0x62   : > { %1025 = vmatpush.bf16.msra.mxu3 %v1684_v63  ;;  %1011 = vmatpush.bf16.msrb.mxu1 %v1428_v3 }
  0x64   : > { %1054 = vmatpush.bf16.msrb.mxu2 %v1656_v18  ;;  %1040 = vmatpush.bf16.msra.mxu0 %v1400_v22 }
  0x66   : > { %1012 = vmatpush.bf16.msrb.mxu1 %v1396_v15  ;;  %1026 = vmatpush.bf16.msra.mxu3 %v1652_v16 }
  0x68   : > { %1055 = vmatpush.bf16.msrb.mxu2 %v1624_v30  ;;  %1041 = vmatpush.bf16.msra.mxu0 %v1368_v34 }
  0x6a   : > { %1013 = vmatpush.bf16.msrb.mxu1 %v1364_v27  ;;  %1027 = vmatpush.bf16.msra.mxu3 %v1620_v28 }
  0x6c   : > { %1056 = vmatpush.bf16.msrb.mxu2 %v1592_v41  ;;  %1042 = vmatpush.bf16.msra.mxu0 %v1336_v42 }
  0x6e   : > { %1014 = vmatpush.bf16.msrb.mxu1 %v1332_v39  ;;  %1028 = vmatpush.bf16.msra.mxu3 %v1588_v40 }
  0x6f   : > { %1043 = vmatmul.bf16.vlgmr.msra.gmra.mxu0 %v2132_v52  ;;  %1696 = vmatmul.msk.bf16.vlgmr.msrb.gmra.mxu2 %vm835_vm0, %v2052_v12 }
  0x71   : > { %1015 = vmatmul.bf16.vlgmr.msrb.gmra.mxu1 %v2132_v52  ;;  %1695 = vmatmul.msk.bf16.vlgmr.msra.gmra.mxu3 %vm835_vm0, %v2052_v12 }
  0xa0   : > { %v862_v45 = vpop.f32.mrf.mxu1 }
  0xa6   : > { %v890_v43 = vpop.f32.mrf.mxu3 }
  0xa8   : > { %v864_v50 = vpop.f32.mrf.mxu1 }
  0xac   : > { %v848_v54 = vpop.f32.mrf.mxu0 }
  0xad   : > { %v849_v11 = vadd.f32 %v848_v54, %v330_v5 }
  0xae   : > { %v892_v47 = vpop.f32.mrf.mxu3 }
  0xaf   : > { %v863_v21 = vadd.f32 %v862_v45, %v849_v11 }
  0xb1   : > { %vm1063_vm3 = vcmp.gt.f32.partialorder %v863_v21, 0.0  ;;  %v1079_v32 = vmul.f32 0.2, %v863_v21 }
  0xb2   : > { %v876_v48 = vpop.f32.mrf.mxu2 }
  0xb3   : > { %v877_v49 = vadd.f32 %v876_v48, %v331_v46  ;;  %v1095_v42 = vsel %vm1063_vm3, %v863_v21, %v1079_v32  ;;  %vm1187_vm3 = vcmask 1041408  }
  0xb4   : > { %v850_v62 = vpop.f32.mrf.mxu0 }
  0xb5   : > { %v891_v52 = vadd.f32 %v890_v43, %v877_v49  ;;  %v851_v13 = vadd.f32 %v850_v62, %v330_v5  ;;  %v336_v62 = vperm.slane %v2508_v44, 6 }
  0xb6   : > { %v918_v55 = vpop.f32.mrf.mxu3 }
  0xb7   : > { %v1080_v56 = vmul.f32 0.2, %v891_v52  ;;  %vm1064_vm1 = vcmp.gt.f32.partialorder %v891_v52, 0.0  ;;  %v865_v22 = vadd.f32 %v864_v50, %v851_v13 }
  0xb9   : > { %v1096_v58 = vsel %vm1064_vm1, %v891_v52, %v1080_v56  ;;  %vm1071_vm4 = vcmp.gt.f32.partialorder %v865_v22, 0.0  ;;  %v1087_v33 = vmul.f32 0.2, %v865_v22  ;;  %vm1183_vm1 = vcmask 1040384  }
  0xba   : > { %v878_v51 = vpop.f32.mrf.mxu2 }
  0xbb   : > { %v879_v53 = vadd.f32 %v878_v51, %v331_v46  ;;  %v1103_v46 = vsel %vm1071_vm4, %v865_v22, %v1087_v33  ;;  %vm1189_vm4 = vcmask 1044484  }
  0xbd   : > { %v893_v12 = vadd.f32 %v892_v47, %v879_v53 }
  0xbe   : > { %v904_v61 = vpop.f32.mrf.mxu1  ;;  %v920_v63 = vpop.f32.mrf.mxu3 }
  0xbf   : > { %vm1072_vm2 = vcmp.gt.f32.partialorder %v893_v12, 0.0  ;;  %v1088_v57 = vmul.f32 0.2, %v893_v12  ;;  %v905_v14 = vadd.f32 %v904_v61, %v332_v8 }
  0xc1   : > { %v1104_v59 = vsel %vm1072_vm2, %v893_v12, %v1088_v57  ;;  %v919_v24 = vadd.f32 %v918_v55, %v905_v14  ;;  %v337_v12 = vperm.slane %v2508_v44, 7  ;;  %vm1185_vm2 = vcmask 1042434  }
  0xc2   : > { %v2511_v60 = vmax.f32 %v1096_v58, %v1104_v59  ;;  %v946_v0 = vpop.f32.mrf.mxu2 }
  0xc3   : > { %v1081_v34 = vmul.f32 0.2, %v919_v24  ;;  %vm1065_vm5 = vcmp.gt.f32.partialorder %v919_v24, 0.0 }
  0xc5   : > { %v1097_v47 = vsel %vm1065_vm5, %v919_v24, %v1081_v34  ;;  %vm1191_vm5 = vcmask 1046534  }
  0xc6   : > { %v906_v1 = vpop.f32.mrf.mxu1 }
  0xc7   : > { %v907_v16 = vadd.f32 %v906_v1, %v332_v8  ;;  %v1112_v1 = vmax.f32 %v1095_v42, %v1103_v46 }
  0xc9   : > { %v921_v27 = vadd.f32 %v920_v63, %v907_v16  ;;  %v1113_v14 = vrot.slane %v1112_v1, 4 }
  0xca   : > { %v948_v4 = vpop.f32.mrf.mxu2 }
  0xcb   : > { %v1089_v37 = vmul.f32 0.2, %v921_v27  ;;  %vm1073_vm7 = vcmp.gt.f32.partialorder %v921_v27, 0.0  ;;  %v1114_v24 = vmax.f32 %v1112_v1, %v1113_v14 }
  0xcc   : > { %v932_v2 = vpop.f32.mrf.mxu0 }
  0xcd   : > { %v933_v18 = vadd.f32 %v932_v2, %v333_v10  ;;  %v1105_v52 = vsel %vm1073_vm7, %v921_v27, %v1089_v37  ;;  %v1120_v2 = vrot.slane %v2511_v60, 4  ;;  %v1115_v42 = vrot.slane %v1114_v24, 2 }
  0xce   : > { %v974_v6 = vpop.f32.mrf.mxu1  ;;  %v1126_v59 = vmax.f32 %v1097_v47, %v1105_v52  ;;  %vm1195_vm7 = vcmask 1043456  }
  0xcf   : > { %v947_v30 = vadd.f32 %v946_v0, %v933_v18 }
  0xd1   : > { %v1082_v39 = vmul.f32 0.2, %v947_v30  ;;  %vm1066_vm8 = vcmp.gt.f32.partialorder %v947_v30, 0.0 }
  0xd3   : > { %v1098_v55 = vsel %vm1066_vm8, %v947_v30, %v1082_v39 }
  0xd4   : > { %v960_v3 = vpop.f32.mrf.mxu3  ;;  %v934_v9 = vpop.f32.mrf.mxu0 }
  0xd5   : > { %v935_v15 = vadd.f32 %v934_v9, %v333_v10  ;;  %v961_v31 = vadd.f32 %v960_v3, %v334_v19  ;;  %v1127_v10 = vrot.slane %v1126_v59, 4 }
  0xd6   : > { %v976_v28 = vpop.f32.mrf.mxu1 }
  0xd7   : > { %v949_v25 = vadd.f32 %v948_v4, %v935_v15  ;;  %v975_v40 = vadd.f32 %v974_v6, %v961_v31  ;;  %v1121_v15 = vmax.f32 %v2511_v60, %v1120_v2 }
  0xd9   : > { %v1090_v35 = vmul.f32 0.2, %v949_v25  ;;  %vm1074_vm6 = vcmp.gt.f32.partialorder %v949_v25, 0.0  ;;  %v1083_v56 = vmul.f32 0.2, %v975_v40  ;;  %vm1067_vm11 = vcmp.gt.f32.partialorder %v975_v40, 0.0 }
  0xdb   : > { %v1106_v48 = vsel %vm1074_vm6, %v949_v25, %v1090_v35  ;;  %v1099_v3 = vsel %vm1067_vm11, %v975_v40, %v1083_v56  ;;  %v1122_v25 = vrot.slane %v1121_v15, 2  ;;  %vm1193_vm6 = vcmask 1045508  }
  0xdc   : > { %v962_v7 = vpop.f32.mrf.mxu3  ;;  %v1133_v57 = vmax.f32 %v1098_v55, %v1106_v48  ;;  %v1116_v55 = vmax.f32 %v1114_v24, %v1115_v42 }
  0xdd   : > { %v963_v26 = vadd.f32 %v962_v7, %v334_v19  ;;  %v1123_v47 = vmax.f32 %v1121_v15, %v1122_v25 }
  0xde   : > { %v1134_v6 = vrot.slane %v1133_v57, 4  ;;  %v1117_v1 = vrot.slane %v1116_v55, 1 }
  0xdf   : > { %v977_v36 = vadd.f32 %v976_v28, %v963_v26 }
  0xe0   : > { %v1135_v44 = vmax.f32 %v1133_v57, %v1134_v6 }
  0xe1   : > { %v1091_v49 = vmul.f32 0.2, %v977_v36  ;;  %vm1075_vm9 = vcmp.gt.f32.partialorder %v977_v36, 0.0 }
  0xe2   : > { %v988_v20 = vpop.f32.mrf.mxu2  ;;  %v1136_v28 = vrot.slane %v1135_v44, 2 }
  0xe3   : > { %v989_v29 = vadd.f32 %v988_v20, %v335_v17  ;;  %v1107_v61 = vsel %vm1075_vm9, %v977_v36, %v1091_v49  ;;  %v1128_v20 = vmax.f32 %v1126_v59, %v1127_v10 }
  0xe4   : > { %v1002_v23 = vpop.f32.mrf.mxu3  ;;  %v1140_v7 = vmax.f32 %v1099_v3, %v1107_v61 }
  0xe5   : > { %v1003_v38 = vadd.f32 %v1002_v23, %v989_v29  ;;  %v1129_v33 = vrot.slane %v1128_v20, 2 }
  0xe7   : > { %v1084_v51 = vmul.f32 0.2, %v1003_v38  ;;  %vm1068_vm10 = vcmp.gt.f32.partialorder %v1003_v38, 0.0  ;;  %v1130_v48 = vmax.f32 %v1128_v20, %v1129_v33 }
  0xe9   : > { %v1100_v63 = vsel %vm1068_vm10, %v1003_v38, %v1084_v51  ;;  %v1137_v38 = vmax.f32 %v1135_v44, %v1136_v28  ;;  %v1131_v57 = vrot.slane %v1130_v48, 1 }
  0xea   : > { %v990_v41 = vpop.f32.mrf.mxu2 }
  0xeb   : > { %v991_v43 = vadd.f32 %v990_v41, %v335_v17  ;;  %v1141_v17 = vrot.slane %v1140_v7, 4  ;;  %v1138_v51 = vrot.slane %v1137_v38, 1 }
  0xec   : > { %v1004_v45 = vpop.f32.mrf.mxu3  ;;  %v1044_v50 = vpop.f32.mrf.mxu0 }
  0xed   : > { %v1005_v54 = vadd.f32 %v1004_v45, %v991_v43  ;;  %v1045_v8 = vadd.f32 %v1044_v50, %v337_v12  ;;  %v1142_v29 = vmax.f32 %v1140_v7, %v1141_v17 }
  0xee   : > { %v1016_v53 = vpop.f32.mrf.mxu1 }
  0xef   : > { %vm1076_vm12 = vcmp.gt.f32.partialorder %v1005_v54, 0.0  ;;  %v1092_v58 = vmul.f32 0.2, %v1005_v54  ;;  %v1017_v11 = vadd.f32 %v1016_v53, %v336_v62  ;;  %v1143_v39 = vrot.slane %v1142_v29, 2 }
  0xf1   : > { %v1108_v0 = vsel %vm1076_vm12, %v1005_v54, %v1092_v58  ;;  %v1144_v53 = vmax.f32 %v1142_v29, %v1143_v39 }
  0xf2   : > { %v1147_v4 = vmax.f32 %v1100_v63, %v1108_v0  ;;  %v1058_v5 = vpop.f32.mrf.mxu2 }
  0xf3   : > { %v1059_v19 = vadd.f32 %v1058_v5, %v1045_v8  ;;  %v1145_v63 = vrot.slane %v1144_v53, 1 }
  0xf4   : > { %v1030_v9 = vpop.f32.mrf.mxu3  ;;  %v1148_v13 = vrot.slane %v1147_v4, 4  ;;  %v1046_v16 = vpop.f32.mrf.mxu0 }
  0xf5   : > { %v1031_v21 = vadd.f32 %v1030_v9, %v1017_v11  ;;  %v1047_v23 = vadd.f32 %v1046_v16, %v337_v12  ;;  %v1086_v30 = vmul.f32 0.2, %v1059_v19  ;;  %vm1070_vm13 = vcmp.gt.f32.partialorder %v1059_v19, 0.0 }
  0xf6   : > { %v1018_v18 = vpop.f32.mrf.mxu1  ;;  %v1149_v22 = vmax.f32 %v1147_v4, %v1148_v13  ;;  %v1124_v12 = vrot.slane %v1123_v47, 1  ;;  %v1132_v4 = vmax.f32 %v1130_v48, %v1131_v57  ;;  %v1146_v9 = vmax.f32 %v1144_v53, %v1145_v63 }
  0xf7   : > { %v1019_v26 = vadd.f32 %v1018_v18, %v336_v62  ;;  %v1085_v60 = vmul.f32 0.2, %v1031_v21  ;;  %vm1069_vm14 = vcmp.gt.f32.partialorder %v1031_v21, 0.0  ;;  %v1102_v40 = vsel %vm1070_vm13, %v1059_v19, %v1086_v30 }
  0xf8   : > { %v1150_v35 = vrot.slane %v1149_v22, 2  ;;  %v1139_v62 = vmax.f32 %v1137_v38, %v1138_v51  ;;  %v1125_v3 = vmax.f32 %v1123_v47, %v1124_v12  ;;  %v1118_v11 = vmax.f32 %v1116_v55, %v1117_v1 }
  0xf9   : > { %v1101_v43 = vsel %vm1069_vm14, %v1031_v21, %v1085_v60  ;;  %v1177_v15 = vrot.slane %v1132_v4, 6  ;;  %v1179_v19 = vrot.slane %v1146_v9, 4 }
  0xfa   : > { %v1060_v27 = vpop.f32.mrf.mxu2  ;;  %v1151_v49 = vmax.f32 %v1149_v22, %v1150_v35  ;;  %v1178_v8 = vrot.slane %v1139_v62, 5  ;;  %v1176_v14 = vrot.slane %v1125_v3, 7 }
  0xfb   : > { %v1061_v32 = vadd.f32 %v1060_v27, %v1047_v23 }
  0xfc   : > { %v1032_v31 = vpop.f32.mrf.mxu3  ;;  %v1152_v58 = vrot.slane %v1151_v49, 1  ;;  %v1186_v18 = vsel %vm1185_vm2, %v1177_v15, %v1178_v8  ;;  %v1184_v21 = vsel %vm1183_vm1, %v1118_v11, %v1176_v14 }
  0xfd   : > { %v1033_v34 = vadd.f32 %v1032_v31, %v1019_v26  ;;  %vm1078_vm15 = vcmp.gt.f32.partialorder %v1061_v32, 0.0  ;;  %v1094_v36 = vmul.f32 0.2, %v1061_v32  ;;  %v1188_v24 = vsel %vm1187_vm3, %v1184_v21, %v1186_v18 }
  0xfe   : > { %v1153_v5 = vmax.f32 %v1151_v49, %v1152_v58 }
  0xff   : > { %vm1077_vm0 = vcmp.gt.f32.partialorder %v1033_v34, 0.0  ;;  %v1093_v37 = vmul.f32 0.2, %v1033_v34  ;;  %v1110_v41 = vsel %vm1078_vm15, %v1061_v32, %v1094_v36 }
 0x100   : > { %v1161_v46 = vmax.f32 %v1102_v40, %v1110_v41  ;;  %v1180_v16 = vrot.slane %v1153_v5, 3 }
 0x101   : > { %v1109_v45 = vsel %vm1077_vm0, %v1033_v34, %v1093_v37 }
 0x102   : > { %v1154_v50 = vmax.f32 %v1101_v43, %v1109_v45  ;;  %v1162_v52 = vrot.slane %v1161_v46, 4  ;;  %v1190_v22 = vsel %vm1189_vm4, %v1179_v19, %v1180_v16 }
 0x104   : > { %v1155_v54 = vrot.slane %v1154_v50, 4  ;;  %v1163_v56 = vmax.f32 %v1161_v46, %v1162_v52 }
 0x106   : > { %v1156_v59 = vmax.f32 %v1154_v50, %v1155_v54  ;;  %v1164_v61 = vrot.slane %v1163_v56, 2 }
 0x108   : > { %v1157_v0 = vrot.slane %v1156_v59, 2  ;;  %v1165_v2 = vmax.f32 %v1163_v56, %v1164_v61 }
 0x10a   : > { %v1158_v6 = vmax.f32 %v1156_v59, %v1157_v0  ;;  %v1166_v7 = vrot.slane %v1165_v2, 1 }
 0x10c   : > { %v1159_v10 = vrot.slane %v1158_v6, 1  ;;  %v1167_v13 = vmax.f32 %v1165_v2, %v1166_v7 }
 0x10e   : > { %v1160_v44 = vmax.f32 %v1158_v6, %v1159_v10  ;;  %v1182_v17 = vrot.slane %v1167_v13, 1 }
 0x110   : > { %v1181_v20 = vrot.slane %v1160_v44, 2 }
 0x112   : > { %v1192_v23 = vsel %vm1191_vm5, %v1181_v20, %v1182_v17 }
 0x113   : > { %v1194_v25 = vsel %vm1193_vm6, %v1190_v22, %v1192_v23 }
 0x114   : > { %v1196_v26 = vsel %vm1195_vm7, %v1188_v24, %v1194_v25 }
 0x115   : > { %1199 = vst [vmem:[%s223_s19] sm:$0xff] %v1196_v26 }
 0x116 PF: > { %s13_s14 = sadd.s32 1, %s1845_s14   ;;  %s2541_s12 = smov %s1841_s13 }
 0x117   : > { %p10_p5 = scmp.ge.s32.totalorder %s13_s14, 4   ;;  %s2542_s13 = smov %s2544_s15 }
 0x119   :  { %12 = sbr.rel (!%p10_p5) target bundleno = 2 (0x2), region = 66 }

// kernel: dgcnn_semseg_forward.13
= control target key start
LH: loop header
LB: loop body
LE: loop exit
PB: predicated region body
PF: predicated region fallthrough
CT: control target
= control target key end

     0   :  { %s2292_s21 = smov 0   ;;  %s2294_s22 = smov 0   ;;  %s3097_s0 = inlined_call_operand.vmem [shape: f32[2,1,512], index: 0, kind: input, shape index: {}]   ;;  %s3098_s1 = inlined_call_operand.vmem [shape: bf16[2,16,192], index: 1, kind: input, shape index: {}]   ;;  %s3099_s2 = inlined_call_operand.vmem [shape: bf16[192,512], index: 2, kind: input, shape index: {}]   ;;  %s3100_s3 = inlined_call_operand.vmem [shape: bf16[512,256], index: 3, kind: input, shape index: {}]   ;;  %s3101_s4 = inlined_call_operand.vmem [shape: f32[1,256], index: 4, kind: input, shape index: {}]   ;;  %s3102_s5 = inlined_call_operand.vmem [shape: bf16[256,128], index: 5, kind: input, shape index: {}]   ;;  %s3103_s6 = inlined_call_operand.vmem [shape: f32[2,16,128], index: 6, kind: output, shape index: {}]  }
   0x1   :  { %s2296_s23 = smov 0  }
   0x2 LB: > { %s28_s24 = sadd.s32 1, %s2251_s22  ;;  %p1545_p0 = scmp.ge.s32.totalorder %s2255_s23, 1  ;;  %s2255_s23 = sphi %s2296_s23, %s16_s23   ;;  %s2251_s22 = sphi %s2294_s22, %s3105_s22   ;;  %s2247_s21 = sphi %s2292_s21, %s3104_s21  }
   0x3   : > { %p30_p1 = scmp.ge.s32.totalorder %s28_s24, 2  ;;  %p243_p2 = scmp.lt.s32.totalorder %s2255_s23, 3 }
   0x5   : > { %s3107_s24 = smov (%p30_p1, %s28_s24), 0  ;;  %p244_p3 = pnand %p1545_p0, %p243_p2 }
   0x6   : > { %p286_p4 = scmp.lt.s32.totalorder (!%p244_p3), %s2247_s21, 1 }
   0x7   : > { %247 = sbr.rel (%p244_p3) target bundleno = 520 (0x208), region = 44 }
   0xc   : > { %v1673_v0 = vld [vmem:[%s3099_s2 + $0xe0] sm:$0xf]  ;;  %v2111_v1 = vld [vmem:[%s3099_s2 + $0xec] sm:$0xf0]  ;;  %v2125_v5 = vld [vmem:[%s3099_s2 + $0x164] sm:$0xf] }
   0xd   : > { %v1737_v2 = vld [vmem:[%s3099_s2 + $0x160] sm:$0xf]  ;;  %v1674_v3 = vor.u32 %v2111_v1, %v1673_v0  ;;  %v2127_v4 = vld [vmem:[%s3099_s2 + $0x16c] sm:$0xf0]  ;;  %v1739_v6 = vld [vmem:[%s3099_s2 + $0x170] sm:$0xf0] }
   0xe   : > { %v1738_v7 = vor.u32 %v2127_v4, %v1737_v2  ;;  %v1742_v8 = vor.u32 %v2125_v5, %v1739_v6  ;;  %v1657_v9 = vld [vmem:[%s3099_s2 + $0xc0] sm:$0xf]  ;;  %v2107_v10 = vld [vmem:[%s3099_s2 + $0xcc] sm:$0xf0]  ;;  %v2121_v14 = vld [vmem:[%s3099_s2 + $0x144] sm:$0xf] }
   0xf   : > { %v1721_v11 = vld [vmem:[%s3099_s2 + $0x140] sm:$0xf]  ;;  %625 = vmatpush.bf16.msra.mxu0 %v1674_v3  ;;  %v1658_v12 = vor.u32 %v2107_v10, %v1657_v9  ;;  %v2123_v13 = vld [vmem:[%s3099_s2 + $0x14c] sm:$0xf0]  ;;  %v1723_v15 = vld [vmem:[%s3099_s2 + $0x150] sm:$0xf0] }
  0x10   : > { %643 = vmatpush.bf16.msra.mxu2 %v1738_v7  ;;  %671 = vmatpush.bf16.msra.mxu3 %v1742_v8  ;;  %v1722_v16 = vor.u32 %v2123_v13, %v1721_v11  ;;  %v1726_v17 = vor.u32 %v2121_v14, %v1723_v15  ;;  %v1681_v18 = vld [vmem:[%s3099_s2 + $0xe8] sm:$0xf]  ;;  %v2112_v19 = vld [vmem:[%s3099_s2 + $0xf4] sm:$0xf0]  ;;  %v1641_v20 = vld [vmem:[%s3099_s2 + $0xa0] sm:$0xf] }
  0x11   : > { %v1682_v21 = vor.u32 %v2112_v19, %v1681_v18  ;;  %v2103_v22 = vld [vmem:[%s3099_s2 + $0xac] sm:$0xf0]  ;;  %v1705_v23 = vld [vmem:[%s3099_s2 + $0x120] sm:$0xf]  ;;  %v2117_v25 = vld [vmem:[%s3099_s2 + $0x124] sm:$0xf] }
  0x12   : > { %v2119_v24 = vld [vmem:[%s3099_s2 + $0x12c] sm:$0xf0]  ;;  %v1707_v26 = vld [vmem:[%s3099_s2 + $0x130] sm:$0xf0]  ;;  %v1665_v27 = vld [vmem:[%s3099_s2 + $0xc8] sm:$0xf]  ;;  %v1642_v28 = vor.u32 %v2103_v22, %v1641_v20 }
  0x13   : > { %626 = vmatpush.bf16.msra.mxu0 %v1658_v12  ;;  %681 = vmatpush.bf16.msra.mxu1 %v1682_v21  ;;  %v2108_v29 = vld [vmem:[%s3099_s2 + $0xd4] sm:$0xf0]  ;;  %v1625_v30 = vld [vmem:[%s3099_s2 + $0x80] sm:$0xf]  ;;  %v2099_v31 = vld [vmem:[%s3099_s2 + $0x8c] sm:$0xf0]  ;;  %v1706_v32 = vor.u32 %v2119_v24, %v1705_v23  ;;  %v1710_v33 = vor.u32 %v2117_v25, %v1707_v26 }
  0x14   : > { %644 = vmatpush.bf16.msra.mxu2 %v1722_v16  ;;  %672 = vmatpush.bf16.msra.mxu3 %v1726_v17  ;;  %v1666_v34 = vor.u32 %v2108_v29, %v1665_v27  ;;  %v1689_v35 = vld [vmem:[%s3099_s2 + $0x100] sm:$0xf]  ;;  %v2115_v36 = vld [vmem:[%s3099_s2 + $0x10c] sm:$0xf0]  ;;  %v2113_v37 = vld [vmem:[%s3099_s2 + $0x104] sm:$0xf]  ;;  %v1626_v43 = vor.u32 %v2099_v31, %v1625_v30 }
  0x15   : > { %v1691_v38 = vld [vmem:[%s3099_s2 + $0x110] sm:$0xf0]  ;;  %v1649_v39 = vld [vmem:[%s3099_s2 + $0xa8] sm:$0xf]  ;;  %v2104_v40 = vld [vmem:[%s3099_s2 + $0xb4] sm:$0xf0]  ;;  %v1690_v46 = vor.u32 %v2115_v36, %v1689_v35 }
  0x16   : > { %v2109_v41 = vld [vmem:[%s3099_s2 + $0xe4] sm:$0xf]  ;;  %v1675_v42 = vld [vmem:[%s3099_s2 + $0xf0] sm:$0xf0]  ;;  %v1650_v44 = vor.u32 %v2104_v40, %v1649_v39  ;;  %v1609_v45 = vld [vmem:[%s3099_s2 + $0x60] sm:$0xf]  ;;  %v1694_v47 = vor.u32 %v2113_v37, %v1691_v38 }
  0x17   : > { %627 = vmatpush.bf16.msra.mxu0 %v1642_v28  ;;  %682 = vmatpush.bf16.msra.mxu1 %v1666_v34  ;;  %s3109_s21 = smov (!%p286_p4, %s2247_s21), 1  ;;  %v2095_v48 = vld [vmem:[%s3099_s2 + $0x6c] sm:$0xf0]  ;;  %v1745_v49 = vld [vmem:[%s3099_s2 + $0x168] sm:$0xf]  ;;  %v1678_v50 = vor.u32 %v2109_v41, %v1675_v42  ;;  %vm621_vm0 = vcmask 523264  }
  0x18   : > { %645 = vmatpush.bf16.msra.mxu2 %v1706_v32  ;;  %673 = vmatpush.bf16.msra.mxu3 %v1710_v33  ;;  %v1633_v51 = vld [vmem:[%s3099_s2 + $0x88] sm:$0xf]  ;;  %v2100_v52 = vld [vmem:[%s3099_s2 + $0x94] sm:$0xf0]  ;;  %s2077_s17 = sshll.u32 %s3109_s21, 4  ;;  %v1610_v57 = vor.u32 %v2095_v48, %v1609_v45  ;;  %s1546_s25 = sshll.u32 %s3109_s21, 2 }
  0x19   : > { %v2128_v53 = vld [vmem:[%s3099_s2 + $0x174] sm:$0xf0]  ;;  %v2105_v55 = vld [vmem:[%s3099_s2 + $0xc4] sm:$0xf]  ;;  %v1659_v56 = vld [vmem:[%s3099_s2 + $0xd0] sm:$0xf0]  ;;  %s2442_s28 = scalar_lea.vmem %s3098_s1, %s2077_s17  ;;  %v1634_v63 = vor.u32 %v2100_v52, %v1633_v51  ;;  %s289_s7 = scalar_lea.vmem %s3097_s0, %s1546_s25 }
  0x1a   : > { %v1746_v54 = vor.u32 %v2128_v53, %v1745_v49  ;;  %v1593_v58 = vld [vmem:[%s3099_s2 + $0x40] sm:$0xf]  ;;  %v2091_v59 = vld [vmem:[%s3099_s2 + $0x4c] sm:$0xf0]  ;;  %v1729_v60 = vld [vmem:[%s3099_s2 + $0x148] sm:$0xf]  ;;  %v1662_v2 = vor.u32 %v2105_v55, %v1659_v56  ;;  %s309_s16 = scalar_lea.vmem %s3103_s6, %s2077_s17 }
  0x1b   : > { %628 = vmatpush.bf16.msra.mxu0 %v1626_v43  ;;  %683 = vmatpush.bf16.msra.mxu1 %v1650_v44  ;;  %v2079_v61 = vld [vmem:[%s2442_s28 + $0x4] sm:$0xf]  ;;  %v1555_v62 = vld [vmem:[%s2442_s28 + $0x8] sm:$0xf0]  ;;  %v2124_v0 = vld [vmem:[%s3099_s2 + $0x154] sm:$0xf0]  ;;  %v1594_v8 = vor.u32 %v2091_v59, %v1593_v58 }
  0x1c   : > { %646 = vmatpush.bf16.msra.mxu2 %v1690_v46  ;;  %674 = vmatpush.bf16.msra.mxu3 %v1694_v47  ;;  %v2458_v1 = vor.u32 %v2079_v61, %v1555_v62  ;;  %v1617_v3 = vld [vmem:[%s3099_s2 + $0x68] sm:$0xf]  ;;  %v2096_v4 = vld [vmem:[%s3099_s2 + $0x74] sm:$0xf0]  ;;  %v1730_v5 = vor.u32 %v2124_v0, %v1729_v60  ;;  %v2101_v6 = vld [vmem:[%s3099_s2 + $0xa4] sm:$0xf] }
  0x1d   : > { %v1643_v7 = vld [vmem:[%s3099_s2 + $0xb0] sm:$0xf0]  ;;  %v1713_v9 = vld [vmem:[%s3099_s2 + $0x128] sm:$0xf]  ;;  %v2120_v10 = vld [vmem:[%s3099_s2 + $0x134] sm:$0xf0]  ;;  %v1618_v11 = vor.u32 %v2096_v4, %v1617_v3 }
  0x1e   : > { %v1577_v12 = vld [vmem:[%s3099_s2 + $0x20] sm:$0xf]  ;;  %v2087_v13 = vld [vmem:[%s3099_s2 + $0x2c] sm:$0xf0]  ;;  %v1646_v14 = vor.u32 %v2101_v6, %v1643_v7  ;;  %v1601_v15 = vld [vmem:[%s3099_s2 + $0x48] sm:$0xf]  ;;  %v1714_v17 = vor.u32 %v2120_v10, %v1713_v9 }
  0x1f   : > { %1752 = vmatmul.msk.bf16.vlgmr.msra.gmra.mxu3 %vm621_vm0, %v2458_v1  ;;  %629 = vmatpush.bf16.msra.mxu0 %v1610_v57  ;;  %v2092_v16 = vld [vmem:[%s3099_s2 + $0x54] sm:$0xf0]  ;;  %v2097_v18 = vld [vmem:[%s3099_s2 + $0x84] sm:$0xf]  ;;  %v1627_v19 = vld [vmem:[%s3099_s2 + $0x90] sm:$0xf0]  ;;  %v1578_v22 = vor.u32 %v2087_v13, %v1577_v12 }
  0x20   : > { %653 = vmatpush.bf16.msrb.mxu2 %v1678_v50  ;;  %699 = vmatpush.bf16.msrb.mxu3 %v1746_v54  ;;  %v1697_v20 = vld [vmem:[%s3099_s2 + $0x108] sm:$0xf]  ;;  %v2116_v21 = vld [vmem:[%s3099_s2 + $0x114] sm:$0xf0]  ;;  %v1602_v23 = vor.u32 %v2092_v16, %v1601_v15  ;;  %v1561_v24 = vld [vmem:[%s3099_s2] sm:$0xf]  ;;  %v1630_v27 = vor.u32 %v2097_v18, %v1627_v19 }
  0x21   : > { %684 = vmatpush.bf16.msra.mxu1 %v1634_v63  ;;  %1751 = vmatmul.msk.bf16.vlgmr.msra.gmra.mxu2 %vm621_vm0, %v2458_v1  ;;  %v2083_v25 = vld [vmem:[%s3099_s2 + $0xc] sm:$0xf0]  ;;  %v1585_v26 = vld [vmem:[%s3099_s2 + $0x28] sm:$0xf]  ;;  %v2088_v28 = vld [vmem:[%s3099_s2 + $0x34] sm:$0xf0]  ;;  %v1698_v29 = vor.u32 %v2116_v21, %v1697_v20 }
  0x22   : > { %v2110_v30 = vld [vmem:[%s3099_s2 + $0xec] sm:$0xf]  ;;  %v1683_v31 = vld [vmem:[%s3099_s2 + $0xf8] sm:$0xf0]  ;;  %v2093_v32 = vld [vmem:[%s3099_s2 + $0x64] sm:$0xf]  ;;  %v1562_v34 = vor.u32 %v2083_v25, %v1561_v24  ;;  %v1586_v37 = vor.u32 %v2088_v28, %v1585_v26 }
  0x23   : > { %630 = vmatpush.bf16.msra.mxu0 %v1594_v8  ;;  %v1611_v33 = vld [vmem:[%s3099_s2 + $0x70] sm:$0xf0]  ;;  %v1553_v35 = vld [vmem:[%s2442_s28] sm:$0xf]  ;;  %v2080_v36 = vld [vmem:[%s2442_s28 + $0x4] sm:$0xf0]  ;;  %v1686_v38 = vor.u32 %v2110_v30, %v1683_v31 }
  0x24   : > { %654 = vmatpush.bf16.msrb.mxu2 %v1662_v2  ;;  %700 = vmatpush.bf16.msrb.mxu3 %v1730_v5  ;;  %v1569_v39 = vld [vmem:[%s3099_s2 + $0x8] sm:$0xf]  ;;  %v1614_v40 = vor.u32 %v2093_v32, %v1611_v33  ;;  %v2084_v41 = vld [vmem:[%s3099_s2 + $0x14] sm:$0xf0]  ;;  %v2106_v42 = vld [vmem:[%s3099_s2 + $0xcc] sm:$0xf]  ;;  %v2544_v44 = vor.u32 %v2080_v36, %v1553_v35 }
  0x25   : > { %685 = vmatpush.bf16.msra.mxu1 %v1618_v11  ;;  %v1667_v43 = vld [vmem:[%s3099_s2 + $0xd8] sm:$0xf0]  ;;  %v2089_v45 = vld [vmem:[%s3099_s2 + $0x44] sm:$0xf]  ;;  %v1595_v46 = vld [vmem:[%s3099_s2 + $0x50] sm:$0xf0]  ;;  %v1570_v47 = vor.u32 %v2084_v41, %v1569_v39 }
  0x26   : > { %v1670_v48 = vor.u32 %v2106_v42, %v1667_v43  ;;  %v1598_v49 = vor.u32 %v2089_v45, %v1595_v46  ;;  %v2085_v50 = vld [vmem:[%s3099_s2 + $0x24] sm:$0xf]  ;;  %v2102_v51 = vld [vmem:[%s3099_s2 + $0xac] sm:$0xf]  ;;  %v1651_v52 = vld [vmem:[%s3099_s2 + $0xb8] sm:$0xf0] }
  0x27   : > { %631 = vmatpush.bf16.msra.mxu0 %v1578_v22  ;;  %v1579_v53 = vld [vmem:[%s3099_s2 + $0x30] sm:$0xf0]  ;;  %v1813_v54 = vld [vmem:[%s3100_s3 + $0x70] sm:$0xf]  ;;  %v2144_v55 = vld [vmem:[%s3100_s3 + $0x74] sm:$0xf0]  ;;  %v1654_v59 = vor.u32 %v2102_v51, %v1651_v52 }
  0x28   : > { %655 = vmatpush.bf16.msrb.mxu2 %v1646_v14  ;;  %701 = vmatpush.bf16.msrb.mxu3 %v1714_v17  ;;  %v1814_v56 = vor.u32 %v2144_v55, %v1813_v54  ;;  %v1805_v57 = vld [vmem:[%s3100_s3 + $0x60] sm:$0xf]  ;;  %v2142_v58 = vld [vmem:[%s3100_s3 + $0x64] sm:$0xf0]  ;;  %v1582_v60 = vor.u32 %v2085_v50, %v1579_v53  ;;  %v2081_v61 = vld [vmem:[%s3099_s2 + $0x4] sm:$0xf] }
  0x29   : > { %686 = vmatpush.bf16.msra.mxu1 %v1602_v23  ;;  %v2098_v62 = vld [vmem:[%s3099_s2 + $0x8c] sm:$0xf]  ;;  %v1635_v63 = vld [vmem:[%s3099_s2 + $0x98] sm:$0xf0]  ;;  %v1806_v0 = vor.u32 %v2142_v58, %v1805_v57  ;;  %v1563_v2 = vld [vmem:[%s3099_s2 + $0x10] sm:$0xf0] }
  0x2a   : > { %v1797_v3 = vld [vmem:[%s3100_s3 + $0x50] sm:$0xf]  ;;  %v2140_v4 = vld [vmem:[%s3100_s3 + $0x54] sm:$0xf0]  ;;  %v2126_v5 = vld [vmem:[%s3099_s2 + $0x16c] sm:$0xf]  ;;  %v1638_v7 = vor.u32 %v2098_v62, %v1635_v63  ;;  %v1566_v8 = vor.u32 %v2081_v61, %v1563_v2 }
  0x2b   : > { %632 = vmatpush.bf16.msra.mxu0 %v1562_v34  ;;  %v1747_v6 = vld [vmem:[%s3099_s2 + $0x178] sm:$0xf0]  ;;  %v2094_v9 = vld [vmem:[%s3099_s2 + $0x6c] sm:$0xf]  ;;  %v1798_v11 = vor.u32 %v2140_v4, %v1797_v3  ;;  %v1789_v13 = vld [vmem:[%s3100_s3 + $0x40] sm:$0xf] }
  0x2c   : > { %656 = vmatpush.bf16.msrb.mxu2 %v1630_v27  ;;  %702 = vmatpush.bf16.msrb.mxu3 %v1698_v29  ;;  %v1619_v10 = vld [vmem:[%s3099_s2 + $0x78] sm:$0xf0]  ;;  %v1750_v12 = vor.u32 %v2126_v5, %v1747_v6  ;;  %v2138_v14 = vld [vmem:[%s3100_s3 + $0x44] sm:$0xf0]  ;;  %v2122_v15 = vld [vmem:[%s3099_s2 + $0x14c] sm:$0xf] }
  0x2d   : > { %687 = vmatpush.bf16.msra.mxu1 %v1586_v37  ;;  %v1731_v16 = vld [vmem:[%s3099_s2 + $0x158] sm:$0xf0]  ;;  %v1622_v17 = vor.u32 %v2094_v9, %v1619_v10  ;;  %v2090_v18 = vld [vmem:[%s3099_s2 + $0x4c] sm:$0xf]  ;;  %v1790_v20 = vor.u32 %v2138_v14, %v1789_v13  ;;  %v1941_v31 = vld [vmem:[%s3100_s3 + $0x170] sm:$0xf] }
  0x2e   : > { %633 = vmatmul.bf16.vlgmr.msra.gmra.mxu0 %v2544_v44  ;;  %v1603_v19 = vld [vmem:[%s3099_s2 + $0x58] sm:$0xf0]  ;;  %v1734_v21 = vor.u32 %v2122_v15, %v1731_v16  ;;  %v2118_v22 = vld [vmem:[%s3099_s2 + $0x12c] sm:$0xf]  ;;  %v2176_v32 = vld [vmem:[%s3100_s3 + $0x174] sm:$0xf0] }
  0x2f   : > { %709 = vmatpush.bf16.msrb.mxu0 %v1686_v38  ;;  %1753 = vmatmul.msk.bf16.vlgmr.msrb.gmra.mxu3 %vm621_vm0, %v2458_v1  ;;  %v1715_v23 = vld [vmem:[%s3099_s2 + $0x138] sm:$0xf0]  ;;  %v1606_v24 = vor.u32 %v2090_v18, %v1603_v19  ;;  %v2086_v25 = vld [vmem:[%s3099_s2 + $0x2c] sm:$0xf]  ;;  %v1942_v36 = vor.u32 %v2176_v32, %v1941_v31  ;;  %v1933_v38 = vld [vmem:[%s3100_s3 + $0x160] sm:$0xf] }
  0x30   : > { %657 = vmatpush.bf16.msrb.mxu2 %v1614_v40  ;;  %1155 = vmatpush.bf16.msra.mxu3 %v1814_v56  ;;  %v1587_v26 = vld [vmem:[%s3099_s2 + $0x38] sm:$0xf0]  ;;  %v1718_v27 = vor.u32 %v2118_v22, %v1715_v23  ;;  %v2114_v28 = vld [vmem:[%s3099_s2 + $0x10c] sm:$0xf]  ;;  %v2174_v39 = vld [vmem:[%s3100_s3 + $0x164] sm:$0xf0] }
  0x31   : > { %688 = vmatpush.bf16.msra.mxu1 %v1570_v47  ;;  %v1699_v29 = vld [vmem:[%s3099_s2 + $0x118] sm:$0xf0]  ;;  %v1590_v30 = vor.u32 %v2086_v25, %v1587_v26  ;;  %v2082_v33 = vld [vmem:[%s3099_s2 + $0xc] sm:$0xf]  ;;  %v1934_v40 = vor.u32 %v2174_v39, %v1933_v38  ;;  %v1925_v41 = vld [vmem:[%s3100_s3 + $0x150] sm:$0xf] }
  0x32   : > { %v1571_v34 = vld [vmem:[%s3099_s2 + $0x18] sm:$0xf0]  ;;  %v1702_v35 = vor.u32 %v2114_v28, %v1699_v29  ;;  %v2172_v42 = vld [vmem:[%s3100_s3 + $0x154] sm:$0xf0]  ;;  %v1781_v45 = vld [vmem:[%s3100_s3 + $0x30] sm:$0xf] }
  0x33   : > { %710 = vmatpush.bf16.msrb.mxu0 %v1670_v48  ;;  %v1574_v37 = vor.u32 %v2082_v33, %v1571_v34  ;;  %v1926_v43 = vor.u32 %v2172_v42, %v1925_v41  ;;  %v2136_v46 = vld [vmem:[%s3100_s3 + $0x34] sm:$0xf0]  ;;  %v1917_v47 = vld [vmem:[%s3100_s3 + $0x140] sm:$0xf]  ;;  %v2134_v53 = vld [vmem:[%s3100_s3 + $0x24] sm:$0xf0] }
  0x34   : > { %658 = vmatpush.bf16.msrb.mxu2 %v1598_v49  ;;  %689 = vmatmul.bf16.vlgmr.msra.gmra.mxu1 %v2544_v44  ;;  %v1782_v48 = vor.u32 %v2136_v46, %v1781_v45  ;;  %v2160_v50 = vld [vmem:[%s3100_s3 + $0xf4] sm:$0xf0]  ;;  %v1773_v51 = vld [vmem:[%s3100_s3 + $0x20] sm:$0xf]  ;;  %v1909_v54 = vld [vmem:[%s3100_s3 + $0x130] sm:$0xf] }
  0x35   : > { %1156 = vmatpush.bf16.msra.mxu3 %v1806_v0  ;;  %v2168_v55 = vld [vmem:[%s3100_s3 + $0x134] sm:$0xf0]  ;;  %v1774_v56 = vor.u32 %v2134_v53, %v1773_v51  ;;  %v1869_v58 = vld [vmem:[%s3100_s3 + $0xe0] sm:$0xf]  ;;  %v1765_v61 = vld [vmem:[%s3100_s3 + $0x10] sm:$0xf] }
  0x36   : > { %v1910_v57 = vor.u32 %v2168_v55, %v1909_v54  ;;  %v2132_v62 = vld [vmem:[%s3100_s3 + $0x14] sm:$0xf0]  ;;  %v1901_v63 = vld [vmem:[%s3100_s3 + $0x120] sm:$0xf]  ;;  %v2166_v2 = vld [vmem:[%s3100_s3 + $0x124] sm:$0xf0] }
  0x37   : > { %711 = vmatpush.bf16.msrb.mxu0 %v1654_v59  ;;  %v2158_v59 = vld [vmem:[%s3100_s3 + $0xe4] sm:$0xf0]  ;;  %v1766_v0 = vor.u32 %v2132_v62, %v1765_v61  ;;  %v1902_v3 = vor.u32 %v2166_v2, %v1901_v63  ;;  %v1861_v4 = vld [vmem:[%s3100_s3 + $0xd0] sm:$0xf]  ;;  %v2156_v5 = vld [vmem:[%s3100_s3 + $0xd4] sm:$0xf0] }
  0x38   : > { %659 = vmatpush.bf16.msrb.mxu2 %v1582_v60  ;;  %v1870_v60 = vor.u32 %v2158_v59, %v1869_v58  ;;  %v1862_v6 = vor.u32 %v2156_v5, %v1861_v4  ;;  %v1893_v10 = vld [vmem:[%s3100_s3 + $0x110] sm:$0xf]  ;;  %v1815_v14 = vld [vmem:[%s3100_s3 + $0x78] sm:$0xf0]  ;;  %v1853_v16 = vld [vmem:[%s3100_s3 + $0xc0] sm:$0xf] }
  0x39   : > { %1157 = vmatpush.bf16.msra.mxu3 %v1798_v11  ;;  %v2164_v11 = vld [vmem:[%s3100_s3 + $0x114] sm:$0xf0]  ;;  %v1885_v19 = vld [vmem:[%s3100_s3 + $0x100] sm:$0xf]  ;;  %v2005_v22 = vld [vmem:[%s3100_s3 + $0x1f0] sm:$0xf] }
  0x3a   : > { %v1894_v13 = vor.u32 %v2164_v11, %v1893_v10  ;;  %v2192_v23 = vld [vmem:[%s3100_s3 + $0x1f4] sm:$0xf0]  ;;  %v1807_v26 = vld [vmem:[%s3100_s3 + $0x68] sm:$0xf0]  ;;  %v1943_v28 = vld [vmem:[%s3100_s3 + $0x178] sm:$0xf0] }
  0x3b   : > { %712 = vmatpush.bf16.msrb.mxu0 %v1638_v7  ;;  %v1757_v7 = vld [vmem:[%s3100_s3] sm:$0xf]  ;;  %v2006_v25 = vor.u32 %v2192_v23, %v2005_v22  ;;  %v1845_v31 = vld [vmem:[%s3100_s3 + $0xb0] sm:$0xf]  ;;  %v2152_v32 = vld [vmem:[%s3100_s3 + $0xb4] sm:$0xf0] }
  0x3c   : > { %660 = vmatpush.bf16.msrb.mxu2 %v1566_v8  ;;  %v2130_v8 = vld [vmem:[%s3100_s3 + $0x4] sm:$0xf0]  ;;  %v1846_v33 = vor.u32 %v2152_v32, %v1845_v31  ;;  %v1997_v34 = vld [vmem:[%s3100_s3 + $0x1e0] sm:$0xf]  ;;  %v1799_v38 = vld [vmem:[%s3100_s3 + $0x58] sm:$0xf0] }
  0x3d   : > { %1158 = vmatpush.bf16.msra.mxu3 %v1790_v20  ;;  %v1758_v9 = vor.u32 %v2130_v8, %v1757_v7  ;;  %v2162_v20 = vld [vmem:[%s3100_s3 + $0x104] sm:$0xf0]  ;;  %v2173_v39 = vld [vmem:[%s3100_s3 + $0x164] sm:$0xf]  ;;  %v1927_v51 = vld [vmem:[%s3100_s3 + $0x158] sm:$0xf0] }
  0x3e   : > { %v2150_v45 = vld [vmem:[%s3100_s3 + $0xa4] sm:$0xf0]  ;;  %v1829_v54 = vld [vmem:[%s3100_s3 + $0x90] sm:$0xf]  ;;  %v2148_v55 = vld [vmem:[%s3100_s3 + $0x94] sm:$0xf0] }
  0x3f   : > { %661 = vmatmul.bf16.vlgmr.msrb.gmra.mxu2 %v2544_v44  ;;  %713 = vmatpush.bf16.msrb.mxu0 %v1622_v17  ;;  %v2154_v17 = vld [vmem:[%s3100_s3 + $0xc4] sm:$0xf0]  ;;  %v2135_v59 = vld [vmem:[%s3100_s3 + $0x34] sm:$0xf]  ;;  %v1783_v61 = vld [vmem:[%s3100_s3 + $0x38] sm:$0xf0] }
  0x40   : > { %727 = vmatpush.bf16.msra.mxu2 %v1750_v12  ;;  %v2143_v12 = vld [vmem:[%s3100_s3 + $0x74] sm:$0xf]  ;;  %v1854_v18 = vor.u32 %v2154_v17, %v1853_v16  ;;  %v2186_v58 = vld [vmem:[%s3100_s3 + $0x1c4] sm:$0xf0]  ;;  %v2169_v62 = vld [vmem:[%s3100_s3 + $0x144] sm:$0xf] }
  0x41   : > { %1159 = vmatpush.bf16.msra.mxu3 %v1782_v48  ;;  %v1818_v15 = vor.u32 %v2143_v12, %v1815_v14  ;;  %v2188_v48 = vld [vmem:[%s3100_s3 + $0x1d4] sm:$0xf0]  ;;  %v1919_v63 = vld [vmem:[%s3100_s3 + $0x148] sm:$0xf0]  ;;  %v2146_v4 = vld [vmem:[%s3100_s3 + $0x84] sm:$0xf0] }
  0x42   : > { %v1922_v2 = vor.u32 %v2169_v62, %v1919_v63  ;;  %v1879_v7 = vld [vmem:[%s3100_s3 + $0xf8] sm:$0xf0]  ;;  %v2184_v10 = vld [vmem:[%s3100_s3 + $0x1b4] sm:$0xf0]  ;;  %v2133_v11 = vld [vmem:[%s3100_s3 + $0x24] sm:$0xf] }
  0x43   : > { %714 = vmatpush.bf16.msrb.mxu0 %v1606_v24  ;;  %v2141_v24 = vld [vmem:[%s3100_s3 + $0x64] sm:$0xf]  ;;  %v2167_v14 = vld [vmem:[%s3100_s3 + $0x134] sm:$0xf]  ;;  %v1965_v22 = vld [vmem:[%s3100_s3 + $0x1a0] sm:$0xf] }
  0x44   : > { %728 = vmatpush.bf16.msra.mxu2 %v1734_v21  ;;  %v1886_v21 = vor.u32 %v2162_v20, %v1885_v19  ;;  %v1810_v29 = vor.u32 %v2141_v24, %v1807_v26  ;;  %v2157_v19 = vld [vmem:[%s3100_s3 + $0xe4] sm:$0xf]  ;;  %v1871_v20 = vld [vmem:[%s3100_s3 + $0xe8] sm:$0xf0]  ;;  %v2182_v23 = vld [vmem:[%s3100_s3 + $0x1a4] sm:$0xf0] }
  0x45   : > { %1160 = vmatpush.bf16.msra.mxu3 %v1774_v56  ;;  %v1830_v56 = vor.u32 %v2148_v55, %v1829_v54  ;;  %v2131_v24 = vld [vmem:[%s3100_s3 + $0x14] sm:$0xf]  ;;  %v1767_v26 = vld [vmem:[%s3100_s3 + $0x18] sm:$0xf0]  ;;  %v2908_v31 = vld [vmem:[%s289_s7] sm:$0xf] }
  0x46   : > { %v2155_v32 = vld [vmem:[%s3100_s3 + $0xd4] sm:$0xf]  ;;  %v2161_v54 = vld [vmem:[%s3100_s3 + $0x104] sm:$0xf]  ;;  %v1887_v55 = vld [vmem:[%s3100_s3 + $0x108] sm:$0xf0] }
  0x47   : > { %715 = vmatpush.bf16.msrb.mxu0 %v1590_v30  ;;  %v1847_v62 = vld [vmem:[%s3100_s3 + $0xb8] sm:$0xf0] }
  0x48   : > { %729 = vmatpush.bf16.msra.mxu2 %v1718_v27  ;;  %v2175_v27 = vld [vmem:[%s3100_s3 + $0x174] sm:$0xf] }
  0x49   : > { %1161 = vmatpush.bf16.msra.mxu3 %v1766_v0  ;;  %v1946_v30 = vor.u32 %v2175_v27, %v1943_v28  ;;  %v1786_v0 = vor.u32 %v2135_v59, %v1783_v61  ;;  %v2165_v27 = vld [vmem:[%s3100_s3 + $0x124] sm:$0xf]  ;;  %v1903_v28 = vld [vmem:[%s3100_s3 + $0x128] sm:$0xf0]  ;;  %v2007_v59 = vld [vmem:[%s3100_s3 + $0x1f8] sm:$0xf0] }
  0x4a   : > { %v2151_v61 = vld [vmem:[%s3100_s3 + $0xb4] sm:$0xf] }
  0x4b   : > { %716 = vmatpush.bf16.msrb.mxu0 %v1574_v37 }
  0x4c   : > { %730 = vmatpush.bf16.msra.mxu2 %v1702_v35  ;;  %v2190_v35 = vld [vmem:[%s3100_s3 + $0x1e4] sm:$0xf0] }
  0x4d   : > { %1162 = vmatpush.bf16.msra.mxu3 %v1758_v9  ;;  %v1998_v37 = vor.u32 %v2190_v35, %v1997_v34  ;;  %v1973_v9 = vld [vmem:[%s3100_s3 + $0x1b0] sm:$0xf] }
  0x4e   : > { %717 = vmatmul.bf16.vlgmr.msrb.gmra.mxu0 %v2544_v44  ;;  %v2170_v44 = vld [vmem:[%s3100_s3 + $0x144] sm:$0xf0]  ;;  %v1974_v12 = vor.u32 %v2184_v10, %v1973_v9  ;;  %v1957_v35 = vld [vmem:[%s3100_s3 + $0x190] sm:$0xf]  ;;  %v2149_v9 = vld [vmem:[%s3100_s3 + $0xa4] sm:$0xf] }
  0x4f   : > { %1754 = vmatmul.msk.bf16.vlgmr.msra.gmra.mxu2 %vm621_vm0, %v2458_v1  ;;  %v1918_v49 = vor.u32 %v2170_v44, %v1917_v47  ;;  %v1877_v1 = vld [vmem:[%s3100_s3 + $0xf0] sm:$0xf]  ;;  %1197 = vmatpush.bf16.msra.mxu0 %v2006_v25  ;;  %v2137_v44 = vld [vmem:[%s3100_s3 + $0x44] sm:$0xf]  ;;  %v1966_v25 = vor.u32 %v2182_v23, %v1965_v22  ;;  %v1839_v10 = vld [vmem:[%s3100_s3 + $0xa8] sm:$0xf0] }
  0x50   : > { %1183 = vmatpush.bf16.msrb.mxu2 %v1942_v36  ;;  %v1878_v52 = vor.u32 %v2160_v50, %v1877_v1  ;;  %v2139_v36 = vld [vmem:[%s3100_s3 + $0x54] sm:$0xf]  ;;  %v1989_v47 = vld [vmem:[%s3100_s3 + $0x1d0] sm:$0xf]  ;;  %v1791_v1 = vld [vmem:[%s3100_s3 + $0x48] sm:$0xf0] }
  0x51   : > { %1211 = vmatpush.bf16.msrb.mxu3 %v1818_v15  ;;  %v1802_v41 = vor.u32 %v2139_v36, %v1799_v38  ;;  %v2171_v50 = vld [vmem:[%s3100_s3 + $0x154] sm:$0xf]  ;;  %v1911_v15 = vld [vmem:[%s3100_s3 + $0x138] sm:$0xf0]  ;;  %v2180_v36 = vld [vmem:[%s3100_s3 + $0x194] sm:$0xf0] }
  0x52   : > { %1169 = vmatpush.bf16.msrb.mxu1 %v1878_v52  ;;  %v1794_v52 = vor.u32 %v2137_v44, %v1791_v1  ;;  %v1930_v53 = vor.u32 %v2171_v50, %v1927_v51  ;;  %v1958_v38 = vor.u32 %v2180_v36, %v1957_v35  ;;  %v2153_v44 = vld [vmem:[%s3100_s3 + $0xc4] sm:$0xf]  ;;  %v366_v1 = vperm.slane %v2908_v31, 2  ;;  %v1949_v51 = vld [vmem:[%s3100_s3 + $0x180] sm:$0xf] }
  0x53   : > { %1198 = vmatpush.bf16.msra.mxu0 %v1998_v37  ;;  %v2129_v37 = vld [vmem:[%s3100_s3 + $0x4] sm:$0xf]  ;;  %v1831_v22 = vld [vmem:[%s3100_s3 + $0x98] sm:$0xf0] }
  0x54   : > { %1184 = vmatpush.bf16.msrb.mxu2 %v1934_v40  ;;  %v1935_v40 = vld [vmem:[%s3100_s3 + $0x168] sm:$0xf0] }
  0x55   : > { %1212 = vmatpush.bf16.msrb.mxu3 %v1810_v29  ;;  %v1938_v42 = vor.u32 %v2173_v39, %v1935_v40  ;;  %v1770_v29 = vor.u32 %v2131_v24, %v1767_v26  ;;  %v1759_v39 = vld [vmem:[%s3100_s3 + $0x8] sm:$0xf0]  ;;  %v2163_v40 = vld [vmem:[%s3100_s3 + $0x114] sm:$0xf] }
  0x56   : > { %1170 = vmatpush.bf16.msrb.mxu1 %v1870_v60 }
  0x58   : > { %1185 = vmatpush.bf16.msrb.mxu2 %v1926_v43  ;;  %v1837_v43 = vld [vmem:[%s3100_s3 + $0xa0] sm:$0xf] }
  0x59   : > { %v1838_v46 = vor.u32 %v2150_v45, %v1837_v43  ;;  %1213 = vmatpush.bf16.msrb.mxu3 %v1802_v41  ;;  %v1895_v41 = vld [vmem:[%s3100_s3 + $0x118] sm:$0xf0]  ;;  %v364_v43 = vperm.slane %v2908_v31, 0  ;;  %v1762_v45 = vor.u32 %v2129_v37, %v1759_v39  ;;  %v2145_v37 = vld [vmem:[%s3100_s3 + $0x84] sm:$0xf] }
  0x5a   : > { %1171 = vmatpush.bf16.msrb.mxu1 %v1862_v6  ;;  %v2159_v6 = vld [vmem:[%s3100_s3 + $0xf4] sm:$0xf] }
  0x5b   : > { %v1882_v8 = vor.u32 %v2159_v6, %v1879_v7 }
  0x5c   : > { %1186 = vmatpush.bf16.msrb.mxu2 %v1918_v49  ;;  %v1990_v49 = vor.u32 %v2188_v48, %v1989_v47 }
  0x5d   : > { %1214 = vmatpush.bf16.msrb.mxu3 %v1794_v52  ;;  %v2178_v52 = vld [vmem:[%s3100_s3 + $0x184] sm:$0xf0] }
  0x5e   : > { %1172 = vmatpush.bf16.msrb.mxu1 %v1854_v18  ;;  %1199 = vmatpush.bf16.msra.mxu0 %v1990_v49  ;;  %v1914_v18 = vor.u32 %v2167_v14, %v1911_v15  ;;  %v1855_v49 = vld [vmem:[%s3100_s3 + $0xc8] sm:$0xf0]  ;;  %v2187_v15 = vld [vmem:[%s3100_s3 + $0x1d4] sm:$0xf] }
  0x5f   : > { %v1858_v50 = vor.u32 %v2153_v44, %v1855_v49 }
  0x60   : > { %1187 = vmatpush.bf16.msrb.mxu2 %v1910_v57  ;;  %v1981_v57 = vld [vmem:[%s3100_s3 + $0x1c0] sm:$0xf] }
  0x61   : > { %v1982_v60 = vor.u32 %v2186_v58, %v1981_v57  ;;  %1215 = vmatpush.bf16.msrb.mxu3 %v1786_v0  ;;  %v1890_v58 = vor.u32 %v2161_v54, %v1887_v55  ;;  %v1850_v0 = vor.u32 %v2151_v61, %v1847_v62  ;;  %v1959_v54 = vld [vmem:[%s3100_s3 + $0x198] sm:$0xf0] }
  0x62   : > { %1173 = vmatpush.bf16.msrb.mxu1 %v1846_v33  ;;  %v1863_v33 = vld [vmem:[%s3100_s3 + $0xd8] sm:$0xf0] }
  0x63   : > { %1200 = vmatpush.bf16.msra.mxu0 %v1982_v60  ;;  %v1866_v34 = vor.u32 %v2155_v32, %v1863_v33 }
  0x64   : > { %1188 = vmatpush.bf16.msrb.mxu2 %v1902_v3  ;;  %v1821_v3 = vld [vmem:[%s3100_s3 + $0x80] sm:$0xf] }
  0x65   : > { %v1822_v5 = vor.u32 %v2146_v4, %v1821_v3  ;;  %v2189_v3 = vld [vmem:[%s3100_s3 + $0x1e4] sm:$0xf]  ;;  %v1999_v4 = vld [vmem:[%s3100_s3 + $0x1e8] sm:$0xf0] }
  0x66   : > { %1174 = vmatpush.bf16.msrb.mxu1 %v1838_v46  ;;  %v1898_v46 = vor.u32 %v2163_v40, %v1895_v41  ;;  %v2002_v7 = vor.u32 %v2189_v3, %v1999_v4 }
  0x67   : > { %1201 = vmatpush.bf16.msra.mxu0 %v1974_v12  ;;  %v1842_v12 = vor.u32 %v2149_v9, %v1839_v10 }
  0x68   : > { %1189 = vmatpush.bf16.msrb.mxu2 %v1894_v13  ;;  %v1775_v13 = vld [vmem:[%s3100_s3 + $0x28] sm:$0xf0] }
  0x69   : > { %v1778_v17 = vor.u32 %v2133_v11, %v1775_v13 }
  0x6a   : > { %1175 = vmatpush.bf16.msrb.mxu1 %v1830_v56  ;;  %v2191_v56 = vld [vmem:[%s3100_s3 + $0x1f4] sm:$0xf] }
  0x6b   : > { %1216 = vmatpush.bf16.msrb.mxu3 %v1778_v17  ;;  %1202 = vmatpush.bf16.msra.mxu0 %v1966_v25  ;;  %v2010_v60 = vor.u32 %v2191_v56, %v2007_v59 }
  0x6c   : > { %1190 = vmatpush.bf16.msrb.mxu2 %v1886_v21  ;;  %v1874_v21 = vor.u32 %v2157_v19, %v1871_v20  ;;  %v1991_v19 = vld [vmem:[%s3100_s3 + $0x1d8] sm:$0xf0] }
  0x6d   : > { %v1994_v20 = vor.u32 %v2187_v15, %v1991_v19  ;;  %v2198_v19 = vld [vmem:[%s3102_s5 + $0x28] sm:$0xff] }
  0x6e   : > { %1176 = vmatpush.bf16.msrb.mxu1 %v1822_v5 }
  0x6f   : > { %1217 = vmatpush.bf16.msrb.mxu3 %v1770_v29  ;;  %1203 = vmatpush.bf16.msra.mxu0 %v1958_v38  ;;  %v1983_v29 = vld [vmem:[%s3100_s3 + $0x1c8] sm:$0xf0] }
  0x70   : > { %1239 = vmatpush.bf16.msra.mxu2 %v1946_v30  ;;  %v1906_v30 = vor.u32 %v2165_v27, %v1903_v28  ;;  %v2185_v28 = vld [vmem:[%s3100_s3 + $0x1c4] sm:$0xf]  ;;  %v1823_v38 = vld [vmem:[%s3100_s3 + $0x88] sm:$0xf0] }
  0x71   : > { %v1826_v39 = vor.u32 %v2145_v37, %v1823_v38 }
  0x72   : > { %1225 = vmatpush.bf16.msra.mxu1 %v1882_v8 }
  0x73   : > { %1218 = vmatpush.bf16.msrb.mxu3 %v1762_v45  ;;  %v365_v45 = vperm.slane %v2908_v31, 1 }
  0x74   : > { %1240 = vmatpush.bf16.msra.mxu2 %v1938_v42 }
  0x76   : > { %1226 = vmatpush.bf16.msra.mxu1 %v1874_v21  ;;  %v2147_v21 = vld [vmem:[%s3100_s3 + $0x94] sm:$0xf] }
  0x77   : > { %v1834_v25 = vor.u32 %v2147_v21, %v1831_v22  ;;  %v2196_v21 = vld [vmem:[%s3102_s5 + $0x18] sm:$0xff] }
  0x78   : > { %1241 = vmatpush.bf16.msra.mxu2 %v1930_v53  ;;  %v1950_v53 = vor.u32 %v2178_v52, %v1949_v51  ;;  %v2208_v22 = vld [vmem:[%s3102_s5 + $0x78] sm:$0xff] }
  0x7a   : > { %1227 = vmatpush.bf16.msra.mxu1 %v1866_v34  ;;  %1204 = vmatpush.bf16.msra.mxu0 %v1950_v53  ;;  %v1986_v34 = vor.u32 %v2185_v28, %v1983_v29  ;;  %v2179_v53 = vld [vmem:[%s3100_s3 + $0x194] sm:$0xf]  ;;  %v2205_v28 = vld [vmem:[%s3102_s5 + $0x60] sm:$0xff]  ;;  %v2204_v29 = vld [vmem:[%s3102_s5 + $0x58] sm:$0xff] }
  0x7b   : > { %v1962_v55 = vor.u32 %v2179_v53, %v1959_v54 }
  0x7c   : > { %1242 = vmatpush.bf16.msra.mxu2 %v1922_v2 }
  0x7e   : > { %1228 = vmatpush.bf16.msra.mxu1 %v1858_v50  ;;  %1253 = vmatpush.bf16.msrb.mxu0 %v2010_v60  ;;  %v1967_v50 = vld [vmem:[%s3100_s3 + $0x1a8] sm:$0xf0] }
  0x80   : > { %1243 = vmatpush.bf16.msra.mxu2 %v1914_v18 }
  0x82   : > { %1229 = vmatpush.bf16.msra.mxu1 %v1850_v0  ;;  %1254 = vmatpush.bf16.msrb.mxu0 %v2002_v7 }
  0x84   : > { %1244 = vmatpush.bf16.msra.mxu2 %v1906_v30 }
  0x86   : > { %1230 = vmatpush.bf16.msra.mxu1 %v1842_v12  ;;  %1255 = vmatpush.bf16.msrb.mxu0 %v1994_v20  ;;  %v2197_v20 = vld [vmem:[%s3102_s5 + $0x20] sm:$0xff] }
  0x88   : > { %1245 = vmatpush.bf16.msra.mxu2 %v1898_v46  ;;  %v1975_v46 = vld [vmem:[%s3100_s3 + $0x1b8] sm:$0xf0] }
  0x8a   : > { %1231 = vmatpush.bf16.msra.mxu1 %v1834_v25  ;;  %1256 = vmatpush.bf16.msrb.mxu0 %v1986_v34  ;;  %v2194_v25 = vld [vmem:[%s3102_s5 + $0x8] sm:$0xff]  ;;  %v829_v34 = vld [vmem:[%s3101_s4] sm:$0x3] }
  0x8b   : > { %v831_v37 = vperm.slane %v829_v34, 0  ;;  %v832_v53 = vperm.slane %v829_v34, 1 }
  0x8c   : > { %1246 = vmatpush.bf16.msra.mxu2 %v1890_v58  ;;  %v1951_v58 = vld [vmem:[%s3100_s3 + $0x188] sm:$0xf0] }
  0x8e   : > { %1232 = vmatpush.bf16.msra.mxu1 %v1826_v39  ;;  %v2201_v39 = vld [vmem:[%s3102_s5 + $0x40] sm:$0xff] }
  0xa2   : > { %v2879_v16 = vpop.f32.mrf.mxu3 }
  0xa4   : > { %v648_v47 = vpop.f32.mrf.mxu2 }
  0xaa   : > { %v2934_v42 = vpop.f32.mrf.mxu3 }
  0xab   : > { %v634_v48 = vpop.f32.mrf.mxu0 }
  0xac   : > { %v635_v57 = vadd.f32 %v634_v48, %v364_v43  ;;  %v650_v13 = vpop.f32.mrf.mxu2 }
  0xae   : > { %v649_v5 = vadd.f32 %v648_v47, %v635_v57  ;;  %v2177_v57 = vld [vmem:[%s3100_s3 + $0x184] sm:$0xf] }
  0xaf   : > { %v1954_v62 = vor.u32 %v2177_v57, %v1951_v58 }
  0xb0   : > { %v745_v17 = vmul.f32 0.2, %v649_v5  ;;  %vm737_vm1 = vcmp.gt.f32.partialorder %v649_v5, 0.0 }
  0xb1   : > { %v690_v63 = vpop.f32.mrf.mxu1 }
  0xb2   : > { %v691_v2 = vadd.f32 %v690_v63, %v366_v1  ;;  %v704_v6 = vpop.f32.mrf.mxu3  ;;  %v753_v30 = vsel %vm737_vm1, %v649_v5, %v745_v17  ;;  %v2200_v17 = vld [vmem:[%s3102_s5 + $0x38] sm:$0xff] }
  0xb3   : > { %v636_v8 = vpop.f32.mrf.mxu0 }
  0xb4   : > { %v637_v11 = vadd.f32 %v636_v8, %v364_v43  ;;  %v705_v14 = vadd.f32 %v704_v6, %v691_v2  ;;  %v2183_v43 = vld [vmem:[%s3100_s3 + $0x1b4] sm:$0xf] }
  0xb5   : > { %v1978_v44 = vor.u32 %v2183_v43, %v1975_v46 }
  0xb6   : > { %v651_v18 = vadd.f32 %v650_v13, %v637_v11  ;;  %v747_v26 = vmul.f32 0.2, %v705_v14  ;;  %vm739_vm3 = vcmp.gt.f32.partialorder %v705_v14, 0.0 }
  0xb7   : > { %1257 = vmatpush.bf16.msrb.mxu0 %v1978_v44 }
  0xb8   : > { %vm741_vm2 = vcmp.gt.f32.partialorder %v651_v18, 0.0  ;;  %v749_v23 = vmul.f32 0.2, %v651_v18  ;;  %v755_v40 = vsel %vm739_vm3, %v705_v14, %v747_v26  ;;  %v2206_v26 = vld [vmem:[%s3102_s5 + $0x68] sm:$0xff] }
  0xb9   : > { %v692_v24 = vpop.f32.mrf.mxu1 }
  0xba   : > { %v693_v27 = vadd.f32 %v692_v24, %v366_v1  ;;  %v757_v32 = vsel %vm741_vm2, %v651_v18, %v749_v23  ;;  %v706_v33 = vpop.f32.mrf.mxu3  ;;  %v2181_v1 = vld [vmem:[%s3100_s3 + $0x1a4] sm:$0xf]  ;;  %v2199_v18 = vld [vmem:[%s3102_s5 + $0x30] sm:$0xff] }
  0xbb   : > { %v761_v36 = vpack.c.bf16 %v757_v32, %v753_v30  ;;  %v1970_v52 = vor.u32 %v2181_v1, %v1967_v50  ;;  %v2195_v23 = vld [vmem:[%s3102_s5 + $0x10] sm:$0xff] }
  0xbc   : > { %v707_v35 = vadd.f32 %v706_v33, %v693_v27  ;;  %v2207_v24 = vld [vmem:[%s3102_s5 + $0x70] sm:$0xff]  ;;  %v2193_v27 = vld [vmem:[%s3102_s5] sm:$0xff] }
  0xbd   : > { %1163 = vmatmul.bf16.vlgmr.msra.gmra.mxu3 %v761_v36  ;;  %1258 = vmatpush.bf16.msrb.mxu0 %v1970_v52  ;;  %v2203_v33 = vld [vmem:[%s3102_s5 + $0x50] sm:$0xff] }
  0xbe   : > { %vm743_vm4 = vcmp.gt.f32.partialorder %v707_v35, 0.0  ;;  %v751_v41 = vmul.f32 0.2, %v707_v35  ;;  %1409 = vmatpush.bf16.msra.mxu3 %v2200_v17 }
  0xc0   : > { %v759_v47 = vsel %vm743_vm4, %v707_v35, %v751_v41  ;;  %v2202_v35 = vld [vmem:[%s3102_s5 + $0x48] sm:$0xff] }
  0xc1   : > { %v763_v49 = vpack.c.bf16 %v759_v47, %v755_v40  ;;  %1259 = vmatpush.bf16.msrb.mxu0 %v1962_v55 }
  0xc2   : > { %v662_v48 = vpop.f32.mrf.mxu2  ;;  %1410 = vmatpush.bf16.msra.mxu3 %v2199_v18 }
  0xc3   : > { %v663_v51 = vadd.f32 %v662_v48, %v365_v45  ;;  %1191 = vmatmul.bf16.vlgmr.msrb.gmra.mxu2 %v763_v49 }
  0xc5   : > { %v677_v56 = vadd.f32 %v2879_v16, %v663_v51  ;;  %v367_v16 = vperm.slane %v2908_v31, 3  ;;  %1260 = vmatpush.bf16.msrb.mxu0 %v1954_v62 }
  0xc6   : > { %1411 = vmatpush.bf16.msra.mxu3 %v2198_v19 }
  0xc7   : > { %v746_v63 = vmul.f32 0.2, %v677_v56  ;;  %vm738_vm5 = vcmp.gt.f32.partialorder %v677_v56, 0.0 }
  0xc9   : > { %v754_v3 = vsel %vm738_vm5, %v677_v56, %v746_v63 }
  0xca   : > { %v664_v59 = vpop.f32.mrf.mxu2  ;;  %1412 = vmatpush.bf16.msra.mxu3 %v2197_v20 }
  0xcb   : > { %v665_v60 = vadd.f32 %v664_v59, %v365_v45  ;;  %v718_v61 = vpop.f32.mrf.mxu0 }
  0xcc   : > { %v719_v7 = vadd.f32 %v718_v61, %v367_v16 }
  0xcd   : > { %v679_v0 = vadd.f32 %v2934_v42, %v665_v60  ;;  %1219 = vmatmul.bf16.vlgmr.msrb.gmra.mxu3 %v761_v36 }
  0xce   : > { %1413 = vmatpush.bf16.msra.mxu3 %v2196_v21 }
  0xcf   : > { %vm742_vm6 = vcmp.gt.f32.partialorder %v679_v0, 0.0  ;;  %v750_v2 = vmul.f32 0.2, %v679_v0 }
  0xd1   : > { %v758_v4 = vsel %vm742_vm6, %v679_v0, %v750_v2 }
  0xd2   : > { %v732_v5 = vpop.f32.mrf.mxu2  ;;  %v762_v6 = vpack.c.bf16 %v758_v4, %v754_v3  ;;  %1414 = vmatpush.bf16.msra.mxu3 %v2195_v23 }
  0xd3   : > { %1247 = vmatmul.bf16.vlgmr.msra.gmra.mxu2 %v763_v49  ;;  %v720_v8 = vpop.f32.mrf.mxu0  ;;  %v733_v9 = vadd.f32 %v732_v5, %v719_v7 }
  0xd4   : > { %1177 = vmatmul.bf16.vlgmr.msrb.gmra.mxu1 %v762_v6  ;;  %v721_v10 = vadd.f32 %v720_v8, %v367_v16 }
  0xd5   : > { %v748_v12 = vmul.f32 0.2, %v733_v9  ;;  %vm740_vm7 = vcmp.gt.f32.partialorder %v733_v9, 0.0  ;;  %1423 = vmatpush.bf16.msrb.mxu1 %v2208_v22 }
  0xd6   : > { %1415 = vmatpush.bf16.msra.mxu3 %v2194_v25 }
  0xd7   : > { %v756_v14 = vsel %vm740_vm7, %v733_v9, %v748_v12 }
  0xd9   : > { %1424 = vmatpush.bf16.msrb.mxu1 %v2207_v24 }
  0xda   : > { %v734_v11 = vpop.f32.mrf.mxu2  ;;  %1416 = vmatpush.bf16.msra.mxu3 %v2193_v27 }
  0xdb   : > { %v735_v42 = vadd.f32 %v734_v11, %v721_v10 }
  0xdd   : > { %vm744_vm8 = vcmp.gt.f32.partialorder %v735_v42, 0.0  ;;  %v752_v13 = vmul.f32 0.2, %v735_v42  ;;  %1425 = vmatpush.bf16.msrb.mxu1 %v2206_v26 }
  0xdf   : > { %v760_v31 = vsel %vm744_vm8, %v735_v42, %v752_v13 }
  0xe0   : > { %v764_v15 = vpack.c.bf16 %v760_v31, %v756_v14 }
  0xe1   : > { %1426 = vmatpush.bf16.msrb.mxu1 %v2205_v28 }
  0xe2   : > { %1205 = vmatmul.bf16.vlgmr.msra.gmra.mxu0 %v764_v15 }
  0xe4   : > { %1233 = vmatmul.bf16.vlgmr.msra.gmra.mxu1 %v762_v6 }
  0xe5   : > { %1427 = vmatpush.bf16.msrb.mxu1 %v2204_v29 }
  0xe9   : > { %1428 = vmatpush.bf16.msrb.mxu1 %v2203_v33 }
  0xed   : > { %1429 = vmatpush.bf16.msrb.mxu1 %v2202_v35 }
  0xf1   : > { %1430 = vmatpush.bf16.msrb.mxu1 %v2201_v39 }
  0xf2   : > { %1261 = vmatmul.bf16.vlgmr.msrb.gmra.mxu0 %v764_v15 }
 0x140   : > { %v1164_v30 = vpop.f32.mrf.mxu3 }
 0x141   : > { %v1165_v41 = vadd.f32 %v1164_v30, %v831_v37 }
 0x146   : > { %v1192_v36 = vpop.f32.mrf.mxu2 }
 0x148   : > { %v1166_v38 = vpop.f32.mrf.mxu3 }
 0x149   : > { %v1167_v46 = vadd.f32 %v1166_v38, %v831_v37 }
 0x14e   : > { %v1194_v47 = vpop.f32.mrf.mxu2 }
 0x150   : > { %v1220_v49 = vpop.f32.mrf.mxu3 }
 0x151   : > { %v1178_v32 = vpop.f32.mrf.mxu1  ;;  %v1221_v58 = vadd.f32 %v1220_v49, %v832_v53 }
 0x152   : > { %v1179_v43 = vadd.f32 %v1178_v32, %v1165_v41 }
 0x154   : > { %v1193_v44 = vadd.f32 %v1192_v36, %v1179_v43 }
 0x156   : > { %v1248_v57 = vpop.f32.mrf.mxu2 }
 0x158   : > { %v1222_v61 = vpop.f32.mrf.mxu3 }
 0x159   : > { %v1180_v40 = vpop.f32.mrf.mxu1  ;;  %v1223_v16 = vadd.f32 %v1222_v61, %v832_v53 }
 0x15a   : > { %v1181_v48 = vadd.f32 %v1180_v40, %v1167_v46 }
 0x15c   : > { %v1195_v51 = vadd.f32 %v1194_v47, %v1181_v48 }
 0x15e   : > { %v1250_v6 = vpop.f32.mrf.mxu2 }
 0x15f   : > { %v1206_v45 = vpop.f32.mrf.mxu0 }
 0x160   : > { %v1207_v1 = vadd.f32 %v1206_v45, %v1193_v44 }
 0x161   : > { %v1234_v50 = vpop.f32.mrf.mxu1 }
 0x162   : > { %v1271_v54 = vmul.f32 0.2, %v1207_v1  ;;  %vm1267_vm9 = vcmp.gt.f32.partialorder %v1207_v1, 0.0  ;;  %v1235_v63 = vadd.f32 %v1234_v50, %v1221_v58 }
 0x164   : > { %v1275_v59 = vsel %vm1267_vm9, %v1207_v1, %v1271_v54  ;;  %v1249_v4 = vadd.f32 %v1248_v57, %v1235_v63 }
 0x167   : > { %v1208_v52 = vpop.f32.mrf.mxu0 }
 0x168   : > { %v1209_v55 = vadd.f32 %v1208_v52, %v1195_v51 }
 0x169   : > { %v1236_v0 = vpop.f32.mrf.mxu1 }
 0x16a   : > { %vm1269_vm10 = vcmp.gt.f32.partialorder %v1209_v55, 0.0  ;;  %v1273_v56 = vmul.f32 0.2, %v1209_v55  ;;  %v1237_v3 = vadd.f32 %v1236_v0, %v1223_v16 }
 0x16c   : > { %v1277_v60 = vsel %vm1269_vm10, %v1209_v55, %v1273_v56  ;;  %v1251_v7 = vadd.f32 %v1250_v6, %v1237_v3 }
 0x16d   : > { %v1279_v62 = vpack.c.bf16 %v1277_v60, %v1275_v59 }
 0x16f   : > { %v1262_v2 = vpop.f32.mrf.mxu0  ;;  %1417 = vmatmul.bf16.vlgmr.msra.gmra.mxu3 %v1279_v62 }
 0x170   : > { %v1263_v5 = vadd.f32 %v1262_v2, %v1249_v4 }
 0x172   : > { %v1272_v9 = vmul.f32 0.2, %v1263_v5  ;;  %vm1268_vm11 = vcmp.gt.f32.partialorder %v1263_v5, 0.0 }
 0x174   : > { %v1276_v12 = vsel %vm1268_vm11, %v1263_v5, %v1272_v9 }
 0x177   : > { %v1264_v8 = vpop.f32.mrf.mxu0 }
 0x178   : > { %v1265_v10 = vadd.f32 %v1264_v8, %v1251_v7 }
 0x17a   : > { %vm1270_vm12 = vcmp.gt.f32.partialorder %v1265_v10, 0.0  ;;  %v1274_v11 = vmul.f32 0.2, %v1265_v10 }
 0x17c   : > { %v1278_v42 = vsel %vm1270_vm12, %v1265_v10, %v1274_v11 }
 0x17d   : > { %v1280_v13 = vpack.c.bf16 %v1278_v42, %v1276_v12 }
 0x17f   : > { %1431 = vmatmul.bf16.vlgmr.msrb.gmra.mxu1 %v1280_v13 }
 0x1f2   : > { %v1418_v14 = vpop.f32.mrf.mxu3 }
 0x1fa   : > { %v1420_v17 = vpop.f32.mrf.mxu3 }
 0x1fc   : > { %v1432_v31 = vpop.f32.mrf.mxu1 }
 0x1fd   : > { %v1433_v15 = vadd.f32 %v1432_v31, %v1418_v14 }
 0x1ff   : > { %1437 = vst [vmem:[%s309_s16] sm:$0xff] %v1433_v15 }
 0x204   : > { %v1434_v18 = vpop.f32.mrf.mxu1 }
 0x205   : > { %v1435_v19 = vadd.f32 %v1434_v18, %v1420_v17 }
 0x207   : > { %1438 = vst [vmem:[%s309_s16 + $0x8] sm:$0xff] %v1435_v19 }
 0x208 PF: > { %s16_s23 = sadd.s32 1, %s2255_s23   ;;  %s3104_s21 = smov %s2251_s22 }
 0x209   : > { %p13_p5 = scmp.ge.s32.totalorder %s16_s23, 4   ;;  %s3105_s22 = smov %s3107_s24 }
 0x20b   :  { %15 = sbr.rel (!%p13_p5) target bundleno = 2 (0x2), region = 77 }

</bundles_post_ra>
